<compile_context>
chip_gen: v7x
topology: tpu7x:2x2x1
jax: 0.10.0
libtpu: 0.0.40
codegen_flags: <defaults>
</compile_context>

<pallas_src>
import jax
import jax.numpy as jnp
from jax.experimental import pallas as pl
from jax.experimental.pallas import tpu as pltpu

LANE = 128   # TPU lane width: channel axes are padded to a multiple of this.


def _round_up(x, m):
    return (x + m - 1) // m * m


def _bottleneck_kernel(x_ref, w1_ref, b1_ref, w2_ref, b2_ref, w3_ref, b3_ref,
                       o_ref, pad_ref, col_ref):
    B, H, W, Cp = x_ref.shape
    Pp = w1_ref.shape[1]
    Wp = pad_ref.shape[2]
    lpad = (Wp - W) // 2                  # left halo width of the conv2 slab
    M = B * H * W
    cdt = w1_ref.dtype                    # MXU compute dtype (bf16 or f32)

    # ---- conv1 (1x1) + folded BN1 + ReLU : one MXU matmul, K = Cp ----
    x = x_ref[...].reshape(M, Cp)
    t1 = jnp.dot(x.astype(cdt), w1_ref[...], preferred_element_type=jnp.float32)
    t1 = jnp.maximum(t1 + b1_ref[...], 0.0)

    # ---- conv2 (3x3, stride=1, pad=1) + folded BN2 + ReLU ----
    # pad_ref holds the zero-haloed conv2 input in the compute dtype.  Only
    # the halo cells a 3x3 window can actually read (2 rows + 2 columns) are
    # re-zeroed each step (no cross-step scratch state -> megacore safe).
    # The interior store lands at sublane offset `lpad` (16 for bf16, 8 for
    # f32), i.e. tile-aligned => unmasked stores.
    zrow = jnp.zeros((B, 1, Wp, Pp), cdt)
    zcol = jnp.zeros((B, H, 1, Pp), cdt)
    pad_ref[:, 0:1, :, :] = zrow
    pad_ref[:, H + 1:H + 2, :, :] = zrow
    pad_ref[:, 1:H + 1, lpad - 1:lpad, :] = zcol
    pad_ref[:, 1:H + 1, lpad + W:lpad + W + 1, :] = zcol
    pad_ref[:, 1:H + 1, lpad:lpad + W, :] = t1.reshape(B, H, W, Pp).astype(cdt)

    # One (B, H, W, 3*Pp) column slab reused across the three kernel rows.
    # Windows are stored as 4-D slices (no per-window materializing reshape);
    # the slab is flattened to (M, 3*Pp) once per row right before the matmul,
    # and the three K=3*Pp matmuls accumulate into an f32 value.
    t2 = jnp.zeros((M, Pp), jnp.float32)
    for dh in range(3):
        for dw in range(3):
            off = lpad - 1 + dw
            col_ref[:, :, :, dw * Pp:(dw + 1) * Pp] = \
                pad_ref[:, dh:dh + H, off:off + W, :]
        t2 = t2 + jnp.dot(col_ref[...].reshape(M, 3 * Pp),
                          w2_ref[dh * 3 * Pp:(dh + 1) * 3 * Pp, :],
                          preferred_element_type=jnp.float32)
    t2 = jnp.maximum(t2 + b2_ref[...], 0.0)

    # ---- conv3 (1x1) + folded BN3 + identity residual add + ReLU ----
    t3 = jnp.dot(t2.astype(cdt), w3_ref[...], preferred_element_type=jnp.float32)
    res = x_ref[...].reshape(M, Cp)       # re-read residual late (short live range)
    out = jnp.maximum(t3 + b3_ref[...] + res, 0.0)
    o_ref[...] = out.reshape(B, H, W, Cp)


def _vmem_capacity_bytes():
    """Best-effort per-core VMEM capacity; conservative (v7x-sized) fallback."""
    try:
        info = pltpu.get_tpu_info()
        return int(getattr(info, "vmem_capacity_bytes", 64 * 1024 * 1024))
    except Exception:
        return 64 * 1024 * 1024


def bottleneck_forward(x_nchw, params, eps=1e-5, compute_dtype=jnp.bfloat16):
    """Bottleneck forward (stride=1, downsample=None), BatchNorm in eval mode.

    x_nchw: (N, Cin, H, W) float32  ->  (N, 4*planes, H, W) float32.
    Note: with the default compute_dtype, matmul operands are cast to bfloat16
    (f32 accumulation on the MXU); pass compute_dtype=jnp.float32 for an
    f32-exact path.
    """
    N, Cin, H, W = x_nchw.shape
    P = params["conv1_w"].shape[0]
    Cout = params["conv3_w"].shape[0]
    assert Cout == Cin, "stride=1 / downsample=None requires inplanes == 4*planes"
    # Aligned interior stores and free leading-dim flattens assume W % 8 == 0
    # (W % 16 is ideal when compute_dtype is bf16).
    assert W % 8 == 0, "W must be a multiple of 8"

    Cp = _round_up(Cin, LANE)   # lane-padded residual/in/out channels (Cin == Cout)
    Pp = _round_up(P, LANE)     # lane-padded bottleneck width
    # Left halo of the conv2 slab: sublane-tile aligned for the slab dtype.
    lpad = 16 if jnp.dtype(compute_dtype).itemsize < 4 else 8

    # NHWC + lane padding of the channel axis (padded channels stay zero all
    # the way through the block, so the residual add and final slice are exact).
    x_nhwc = jnp.transpose(x_nchw, (0, 2, 3, 1)).astype(jnp.float32)
    x_p = jnp.pad(x_nhwc, ((0, 0), (0, 0), (0, 0), (0, Cp - Cin)))

    def bn_fold(prefix):  # eval-mode BN -> (scale, bias)
        g, b, m, v = (params[prefix + k] for k in ("_g", "_b", "_m", "_v"))
        s = g / jnp.sqrt(v + eps)
        return s, b - m * s

    s1, bias1 = bn_fold("bn1")
    s2, bias2 = bn_fold("bn2")
    s3, bias3 = bn_fold("bn3")

    # Channels-last weights with the BN scale folded into the output axis,
    # zero-padded to lane multiples and cast to the MXU compute dtype.
    w1 = jnp.transpose(params["conv1_w"][:, :, 0, 0]) * s1[None, :]      # (Cin, P)
    w1 = jnp.pad(w1, ((0, Cp - Cin), (0, Pp - P))).astype(compute_dtype)
    w2 = jnp.transpose(params["conv2_w"], (2, 3, 1, 0)) * s2[None, None, None, :]
    w2 = jnp.pad(w2, ((0, 0), (0, 0), (0, Pp - P), (0, Pp - P)))         # (3,3,Pp,Pp)
    w2 = w2.reshape(9 * Pp, Pp).astype(compute_dtype)                    # (dh,dw,cin) rows
    w3 = jnp.transpose(params["conv3_w"][:, :, 0, 0]) * s3[None, :]      # (P, Cout)
    w3 = jnp.pad(w3, ((0, Pp - P), (0, Cp - Cout))).astype(compute_dtype)

    b1 = jnp.pad(bias1, (0, Pp - P))[None, :]        # biases stay f32
    b2 = jnp.pad(bias2, (0, Pp - P))[None, :]
    b3 = jnp.pad(bias3, (0, Cp - Cout))[None, :]

    # Generation gating: small-VMEM chips (v7x-like, 64 MiB, 2 TensorCores)
    # keep an even "parallel" grid so both cores get work and cap the VMEM
    # budget; 128 MiB single-TC chips (v5e/v6e) take one fat step (all N
    # images -> max MXU rows per matmul, no per-step overhead) with a larger
    # VMEM limit.
    vmem_cap = _vmem_capacity_bytes()
    small_vmem = vmem_cap <= 64 * 1024 * 1024
    if small_vmem:
        B = N // 2 if (N % 2 == 0 and N >= 2) else 1
        vmem_limit = min(vmem_cap * 3 // 4, 48 * 1024 * 1024)
    else:
        B = N
        vmem_limit = 96 * 1024 * 1024
    grid = (N // B,)

    def run(buffered_weights):
        def rep(shape):  # whole-array operand, same block every grid step
            nd = len(shape)
            idx = lambda n: (0,) * nd
            if buffered_weights:
                # Grid-invariant weights/biases: single buffer (no double
                # buffering) -> frees VMEM headroom (w2 is the big one).
                return pl.BlockSpec(shape, idx, pipeline_mode=pl.Buffered(1))
            return pl.BlockSpec(shape, idx)

        grid_spec = pltpu.PrefetchScalarGridSpec(
            num_scalar_prefetch=0,
            grid=grid,
            in_specs=[
                pl.BlockSpec((B, H, W, Cp), lambda n: (n, 0, 0, 0)),
                rep(w1.shape), rep(b1.shape),
                rep(w2.shape), rep(b2.shape),
                rep(w3.shape), rep(b3.shape),
            ],
            out_specs=pl.BlockSpec((B, H, W, Cp), lambda n: (n, 0, 0, 0)),
            scratch_shapes=[
                # zero-haloed conv2 slab + reused 3-row im2col slab, both in
                # the compute dtype (bf16 default -> half the copy bytes).
                pltpu.VMEM((B, H + 2, W + 2 * lpad, Pp), compute_dtype),
                pltpu.VMEM((B, H, W, 3 * Pp), compute_dtype),
            ],
        )
        return pl.pallas_call(
            _bottleneck_kernel,
            out_shape=jax.ShapeDtypeStruct((N, H, W, Cp), jnp.float32),
            grid_spec=grid_spec,
            compiler_params=pltpu.CompilerParams(
                dimension_semantics=("parallel",),
                vmem_limit_bytes=vmem_limit,
            ),
        )(x_p, w1, b1, w2, b2, w3, b3)

    try:
        out_nhwc = run(True)
    except Exception:
        # Fallback for jax versions that don't accept pipeline_mode=pl.Buffered
        # on pallas_call input BlockSpecs.
        out_nhwc = run(False)

    out = out_nhwc[..., :Cout]
    return jnp.transpose(out, (0, 3, 1, 2))


def _bottleneck_ref(x, params, eps=1e-5):
    """Pure-JAX NCHW reference (mirrors the PyTorch eval-mode forward)."""
    def conv(t, w, pad):
        return jax.lax.conv_general_dilated(
            t, w, (1, 1), [(pad, pad), (pad, pad)],
            dimension_numbers=("NCHW", "OIHW", "NCHW"))

    def bn(t, prefix):
        g, b, m, v = (params[prefix + k] for k in ("_g", "_b", "_m", "_v"))
        s = (g / jnp.sqrt(v + eps))[None, :, None, None]
        o = (b - m * g / jnp.sqrt(v + eps))[None, :, None, None]
        return t * s + o

    out = jax.nn.relu(bn(conv(x, params["conv1_w"], 0), "bn1"))
    out = jax.nn.relu(bn(conv(out, params["conv2_w"], 1), "bn2"))
    out = bn(conv(out, params["conv3_w"], 0), "bn3")
    return jax.nn.relu(out + x)          # downsample=None -> identity residual


if __name__ == "__main__":
    inplanes, planes = 32, 8             # expansion=4 -> output channels == inplanes
    N, H, W = 2, 8, 8

    key = jax.random.PRNGKey(0)
    ks = jax.random.split(key, 16)
    params = {
        "conv1_w": 0.1 * jax.random.normal(ks[0], (planes, inplanes, 1, 1), jnp.float32),
        "conv2_w": 0.1 * jax.random.normal(ks[1], (planes, planes, 3, 3), jnp.float32),
        "conv3_w": 0.1 * jax.random.normal(ks[2], (4 * planes, planes, 1, 1), jnp.float32),
        "bn1_g": jax.random.uniform(ks[3], (planes,), jnp.float32, 0.5, 1.5),
        "bn1_b": 0.1 * jax.random.normal(ks[4], (planes,), jnp.float32),
        "bn1_m": 0.1 * jax.random.normal(ks[5], (planes,), jnp.float32),
        "bn1_v": jax.random.uniform(ks[6], (planes,), jnp.float32, 0.5, 1.5),
        "bn2_g": jax.random.uniform(ks[7], (planes,), jnp.float32, 0.5, 1.5),
        "bn2_b": 0.1 * jax.random.normal(ks[8], (planes,), jnp.float32),
        "bn2_m": 0.1 * jax.random.normal(ks[9], (planes,), jnp.float32),
        "bn2_v": jax.random.uniform(ks[10], (planes,), jnp.float32, 0.5, 1.5),
        "bn3_g": jax.random.uniform(ks[11], (4 * planes,), jnp.float32, 0.5, 1.5),
        "bn3_b": 0.1 * jax.random.normal(ks[12], (4 * planes,), jnp.float32),
        "bn3_m": 0.1 * jax.random.normal(ks[13], (4 * planes,), jnp.float32),
        "bn3_v": jax.random.uniform(ks[14], (4 * planes,), jnp.float32, 0.5, 1.5),
    }
    x = jax.random.normal(ks[15], (N, inplanes, H, W), jnp.float32)

    ref = _bottleneck_ref(x, params)

    # f32 compute path: tight check against the pure-JAX reference.
    out_f32 = jax.block_until_ready(
        bottleneck_forward(x, params, compute_dtype=jnp.float32))
    assert out_f32.shape == (N, 4 * planes, H, W)
    err32 = float(jnp.max(jnp.abs(out_f32 - ref)))
    assert jnp.allclose(out_f32, ref, atol=5e-4, rtol=5e-4), f"f32 max_err={err32}"

    # Default bf16-matmul path (v6e/v7x MXU): f32 accumulation, looser tolerance.
    out_bf16 = jax.block_until_ready(bottleneck_forward(x, params))
    errbf = float(jnp.max(jnp.abs(out_bf16 - ref)))
    assert jnp.allclose(out_bf16, ref, atol=5e-2, rtol=5e-2), f"bf16 max_err={errbf}"

    print("KERNEL_OK")
</pallas_src>

<mosaic_0001>
module attributes {stable_mosaic.version = 11 : i64} {
  func.func @_bottleneck_kernel(%arg0: i32, %arg1: memref<1x8x8x128xf32, #tpu.memory_space<vmem>>, %arg2: memref<128x128xf32, #tpu.memory_space<vmem>>, %arg3: memref<1x128xf32, #tpu.memory_space<vmem>>, %arg4: memref<1152x128xf32, #tpu.memory_space<vmem>>, %arg5: memref<1x128xf32, #tpu.memory_space<vmem>>, %arg6: memref<128x128xf32, #tpu.memory_space<vmem>>, %arg7: memref<1x128xf32, #tpu.memory_space<vmem>>, %arg8: memref<1x8x8x128xf32, #tpu.memory_space<vmem>>, %arg9: memref<1x10x24x128xf32, #tpu.memory_space<vmem>>, %arg10: memref<1x8x8x384xf32, #tpu.memory_space<vmem>>) attributes {dimension_semantics = [#tpu.dimension_semantics<parallel>], iteration_bounds = array<i64: 2>, scalar_prefetch = 0 : i64, scratch_operands = 2 : i64, tpu.core_type = #tpu.core_type<tc>, window_params = [{transform_indices = @transform_0, window_bounds = array<i64: 1, 8, 8, 128>}, {pipeline_mode = #tpu.pipeline_mode<synchronous>, transform_indices = @transform_1, window_bounds = array<i64: 128, 128>}, {pipeline_mode = #tpu.pipeline_mode<synchronous>, transform_indices = @transform_2, window_bounds = array<i64: 1, 128>}, {pipeline_mode = #tpu.pipeline_mode<synchronous>, transform_indices = @transform_3, window_bounds = array<i64: 1152, 128>}, {pipeline_mode = #tpu.pipeline_mode<synchronous>, transform_indices = @transform_4, window_bounds = array<i64: 1, 128>}, {pipeline_mode = #tpu.pipeline_mode<synchronous>, transform_indices = @transform_5, window_bounds = array<i64: 128, 128>}, {pipeline_mode = #tpu.pipeline_mode<synchronous>, transform_indices = @transform_6, window_bounds = array<i64: 1, 128>}, {transform_indices = @transform_7, window_bounds = array<i64: 1, 8, 8, 128>}]} {
    %c0 = arith.constant 0 : index
    %c0_0 = arith.constant 0 : index
    %c0_1 = arith.constant 0 : index
    %c0_2 = arith.constant 0 : index
    %0 = vector.load %arg1[%c0, %c0_0, %c0_1, %c0_2] : memref<1x8x8x128xf32, #tpu.memory_space<vmem>>, vector<1x8x8x128xf32>
    %1 = vector.shape_cast %0 : vector<1x8x8x128xf32> to vector<64x128xf32>
    %c0_3 = arith.constant 0 : index
    %c0_4 = arith.constant 0 : index
    %2 = vector.load %arg2[%c0_3, %c0_4] : memref<128x128xf32, #tpu.memory_space<vmem>>, vector<128x128xf32>
    %cst = arith.constant dense<0.000000e+00> : vector<64x128xf32>
    %3 = tpu.matmul %1, %2, %cst {dimension_numbers = #tpu.dot_dimension_numbers<[1], [0], [0], [1], [0, 0, 1, 1], [], []>} : vector<64x128xf32>, vector<128x128xf32>, vector<64x128xf32> -> vector<64x128xf32>
    %c0_5 = arith.constant 0 : index
    %c0_6 = arith.constant 0 : index
    %4 = vector.load %arg3[%c0_5, %c0_6] : memref<1x128xf32, #tpu.memory_space<vmem>>, vector<1x128xf32>
    %5 = vector.broadcast %4 : vector<1x128xf32> to vector<64x128xf32>
    %6 = arith.addf %3, %5 : vector<64x128xf32>
    %cst_7 = arith.constant 0.000000e+00 : f32
    %7 = vector.broadcast %cst_7 : f32 to vector<64x128xf32>
    %8 = arith.maximumf %6, %7 : vector<64x128xf32>
    %cst_8 = arith.constant 0.000000e+00 : f32
    %9 = vector.broadcast %cst_8 : f32 to vector<1x1x24x128xf32>
    %cst_9 = arith.constant 0.000000e+00 : f32
    %10 = vector.broadcast %cst_9 : f32 to vector<1x8x1x128xf32>
    %c0_10 = arith.constant 0 : index
    %c0_11 = arith.constant 0 : index
    %c0_12 = arith.constant 0 : index
    %c0_13 = arith.constant 0 : index
    %11 = vector.load %arg9[%c0_10, %c0_11, %c0_12, %c0_13] : memref<1x10x24x128xf32, #tpu.memory_space<vmem>>, vector<1x1x24x128xf32>
    tpu.vector_store %arg9[%c0_10, %c0_11, %c0_12, %c0_13], %9 {strides = array<i32>} : memref<1x10x24x128xf32, #tpu.memory_space<vmem>>, vector<1x1x24x128xf32>,
    %c0_14 = arith.constant 0 : index
    %c9 = arith.constant 9 : index
    %c0_15 = arith.constant 0 : index
    %c0_16 = arith.constant 0 : index
    %12 = vector.load %arg9[%c0_14, %c9, %c0_15, %c0_16] : memref<1x10x24x128xf32, #tpu.memory_space<vmem>>, vector<1x1x24x128xf32>
    tpu.vector_store %arg9[%c0_14, %c9, %c0_15, %c0_16], %9 {strides = array<i32>} : memref<1x10x24x128xf32, #tpu.memory_space<vmem>>, vector<1x1x24x128xf32>,
    %c0_17 = arith.constant 0 : index
    %c1 = arith.constant 1 : index
    %c7 = arith.constant 7 : index
    %c0_18 = arith.constant 0 : index
    %13 = vector.load %arg9[%c0_17, %c1, %c7, %c0_18] : memref<1x10x24x128xf32, #tpu.memory_space<vmem>>, vector<1x8x1x128xf32>
    tpu.vector_store %arg9[%c0_17, %c1, %c7, %c0_18], %10 {strides = array<i32>} : memref<1x10x24x128xf32, #tpu.memory_space<vmem>>, vector<1x8x1x128xf32>,
    %c0_19 = arith.constant 0 : index
    %c1_20 = arith.constant 1 : index
    %c16 = arith.constant 16 : index
    %c0_21 = arith.constant 0 : index
    %14 = vector.load %arg9[%c0_19, %c1_20, %c16, %c0_21] : memref<1x10x24x128xf32, #tpu.memory_space<vmem>>, vector<1x8x1x128xf32>
    tpu.vector_store %arg9[%c0_19, %c1_20, %c16, %c0_21], %10 {strides = array<i32>} : memref<1x10x24x128xf32, #tpu.memory_space<vmem>>, vector<1x8x1x128xf32>,
    %15 = vector.shape_cast %8 : vector<64x128xf32> to vector<1x8x8x128xf32>
    %c0_22 = arith.constant 0 : index
    %c1_23 = arith.constant 1 : index
    %c8 = arith.constant 8 : index
    %c0_24 = arith.constant 0 : index
    %16 = vector.load %arg9[%c0_22, %c1_23, %c8, %c0_24] : memref<1x10x24x128xf32, #tpu.memory_space<vmem>>, vector<1x8x8x128xf32>
    tpu.vector_store %arg9[%c0_22, %c1_23, %c8, %c0_24], %15 {strides = array<i32>} : memref<1x10x24x128xf32, #tpu.memory_space<vmem>>, vector<1x8x8x128xf32>,
    %cst_25 = arith.constant 0.000000e+00 : f32
    %17 = vector.broadcast %cst_25 : f32 to vector<64x128xf32>
    %c0_26 = arith.constant 0 : index
    %c0_27 = arith.constant 0 : index
    %c7_28 = arith.constant 7 : index
    %c0_29 = arith.constant 0 : index
    %18 = vector.load %arg9[%c0_26, %c0_27, %c7_28, %c0_29] : memref<1x10x24x128xf32, #tpu.memory_space<vmem>>, vector<1x8x8x128xf32>
    %c0_30 = arith.constant 0 : index
    %c0_31 = arith.constant 0 : index
    %c0_32 = arith.constant 0 : index
    %c0_33 = arith.constant 0 : index
    %19 = vector.load %arg10[%c0_30, %c0_31, %c0_32, %c0_33] : memref<1x8x8x384xf32, #tpu.memory_space<vmem>>, vector<1x8x8x128xf32>
    tpu.vector_store %arg10[%c0_30, %c0_31, %c0_32, %c0_33], %18 {strides = array<i32>} : memref<1x8x8x384xf32, #tpu.memory_space<vmem>>, vector<1x8x8x128xf32>,
    %c0_34 = arith.constant 0 : index
    %c0_35 = arith.constant 0 : index
    %c8_36 = arith.constant 8 : index
    %c0_37 = arith.constant 0 : index
    %20 = vector.load %arg9[%c0_34, %c0_35, %c8_36, %c0_37] : memref<1x10x24x128xf32, #tpu.memory_space<vmem>>, vector<1x8x8x128xf32>
    %c0_38 = arith.constant 0 : index
    %c0_39 = arith.constant 0 : index
    %c0_40 = arith.constant 0 : index
    %c128 = arith.constant 128 : index
    %21 = vector.load %arg10[%c0_38, %c0_39, %c0_40, %c128] : memref<1x8x8x384xf32, #tpu.memory_space<vmem>>, vector<1x8x8x128xf32>
    tpu.vector_store %arg10[%c0_38, %c0_39, %c0_40, %c128], %20 {strides = array<i32>} : memref<1x8x8x384xf32, #tpu.memory_space<vmem>>, vector<1x8x8x128xf32>,
    %c0_41 = arith.constant 0 : index
    %c0_42 = arith.constant 0 : index
    %c9_43 = arith.constant 9 : index
    %c0_44 = arith.constant 0 : index
    %22 = vector.load %arg9[%c0_41, %c0_42, %c9_43, %c0_44] : memref<1x10x24x128xf32, #tpu.memory_space<vmem>>, vector<1x8x8x128xf32>
    %c0_45 = arith.constant 0 : index
    %c0_46 = arith.constant 0 : index
    %c0_47 = arith.constant 0 : index
    %c256 = arith.constant 256 : index
    %23 = vector.load %arg10[%c0_45, %c0_46, %c0_47, %c256] : memref<1x8x8x384xf32, #tpu.memory_space<vmem>>, vector<1x8x8x128xf32>
    tpu.vector_store %arg10[%c0_45, %c0_46, %c0_47, %c256], %22 {strides = array<i32>} : memref<1x8x8x384xf32, #tpu.memory_space<vmem>>, vector<1x8x8x128xf32>,
    %c0_48 = arith.constant 0 : index
    %c0_49 = arith.constant 0 : index
    %c0_50 = arith.constant 0 : index
    %c0_51 = arith.constant 0 : index
    %24 = vector.load %arg10[%c0_48, %c0_49, %c0_50, %c0_51] : memref<1x8x8x384xf32, #tpu.memory_space<vmem>>, vector<1x8x8x384xf32>
    %25 = vector.shape_cast %24 : vector<1x8x8x384xf32> to vector<64x384xf32>
    %c0_52 = arith.constant 0 : index
    %c0_53 = arith.constant 0 : index
    %26 = vector.load %arg4[%c0_52, %c0_53] : memref<1152x128xf32, #tpu.memory_space<vmem>>, vector<384x128xf32>
    %cst_54 = arith.constant dense<0.000000e+00> : vector<64x128xf32>
    %27 = tpu.matmul %25, %26, %cst_54 {dimension_numbers = #tpu.dot_dimension_numbers<[1], [0], [0], [1], [0, 0, 1, 1], [], []>} : vector<64x384xf32>, vector<384x128xf32>, vector<64x128xf32> -> vector<64x128xf32>
    %28 = arith.addf %17, %27 : vector<64x128xf32>
    %c0_55 = arith.constant 0 : index
    %c1_56 = arith.constant 1 : index
    %c7_57 = arith.constant 7 : index
    %c0_58 = arith.constant 0 : index
    %29 = vector.load %arg9[%c0_55, %c1_56, %c7_57, %c0_58] : memref<1x10x24x128xf32, #tpu.memory_space<vmem>>, vector<1x8x8x128xf32>
    %c0_59 = arith.constant 0 : index
    %c0_60 = arith.constant 0 : index
    %c0_61 = arith.constant 0 : index
    %c0_62 = arith.constant 0 : index
    %30 = vector.load %arg10[%c0_59, %c0_60, %c0_61, %c0_62] : memref<1x8x8x384xf32, #tpu.memory_space<vmem>>, vector<1x8x8x128xf32>
    tpu.vector_store %arg10[%c0_59, %c0_60, %c0_61, %c0_62], %29 {strides = array<i32>} : memref<1x8x8x384xf32, #tpu.memory_space<vmem>>, vector<1x8x8x128xf32>,
    %c0_63 = arith.constant 0 : index
    %c1_64 = arith.constant 1 : index
    %c8_65 = arith.constant 8 : index
    %c0_66 = arith.constant 0 : index
    %31 = vector.load %arg9[%c0_63, %c1_64, %c8_65, %c0_66] : memref<1x10x24x128xf32, #tpu.memory_space<vmem>>, vector<1x8x8x128xf32>
    %c0_67 = arith.constant 0 : index
    %c0_68 = arith.constant 0 : index
    %c0_69 = arith.constant 0 : index
    %c128_70 = arith.constant 128 : index
    %32 = vector.load %arg10[%c0_67, %c0_68, %c0_69, %c128_70] : memref<1x8x8x384xf32, #tpu.memory_space<vmem>>, vector<1x8x8x128xf32>
    tpu.vector_store %arg10[%c0_67, %c0_68, %c0_69, %c128_70], %31 {strides = array<i32>} : memref<1x8x8x384xf32, #tpu.memory_space<vmem>>, vector<1x8x8x128xf32>,
    %c0_71 = arith.constant 0 : index
    %c1_72 = arith.constant 1 : index
    %c9_73 = arith.constant 9 : index
    %c0_74 = arith.constant 0 : index
    %33 = vector.load %arg9[%c0_71, %c1_72, %c9_73, %c0_74] : memref<1x10x24x128xf32, #tpu.memory_space<vmem>>, vector<1x8x8x128xf32>
    %c0_75 = arith.constant 0 : index
    %c0_76 = arith.constant 0 : index
    %c0_77 = arith.constant 0 : index
    %c256_78 = arith.constant 256 : index
    %34 = vector.load %arg10[%c0_75, %c0_76, %c0_77, %c256_78] : memref<1x8x8x384xf32, #tpu.memory_space<vmem>>, vector<1x8x8x128xf32>
    tpu.vector_store %arg10[%c0_75, %c0_76, %c0_77, %c256_78], %33 {strides = array<i32>} : memref<1x8x8x384xf32, #tpu.memory_space<vmem>>, vector<1x8x8x128xf32>,
    %c0_79 = arith.constant 0 : index
    %c0_80 = arith.constant 0 : index
    %c0_81 = arith.constant 0 : index
    %c0_82 = arith.constant 0 : index
    %35 = vector.load %arg10[%c0_79, %c0_80, %c0_81, %c0_82] : memref<1x8x8x384xf32, #tpu.memory_space<vmem>>, vector<1x8x8x384xf32>
    %36 = vector.shape_cast %35 : vector<1x8x8x384xf32> to vector<64x384xf32>
    %c384 = arith.constant 384 : index
    %c0_83 = arith.constant 0 : index
    %37 = vector.load %arg4[%c384, %c0_83] : memref<1152x128xf32, #tpu.memory_space<vmem>>, vector<384x128xf32>
    %cst_84 = arith.constant dense<0.000000e+00> : vector<64x128xf32>
    %38 = tpu.matmul %36, %37, %cst_84 {dimension_numbers = #tpu.dot_dimension_numbers<[1], [0], [0], [1], [0, 0, 1, 1], [], []>} : vector<64x384xf32>, vector<384x128xf32>, vector<64x128xf32> -> vector<64x128xf32>
    %39 = arith.addf %28, %38 : vector<64x128xf32>
    %c0_85 = arith.constant 0 : index
    %c2 = arith.constant 2 : index
    %c7_86 = arith.constant 7 : index
    %c0_87 = arith.constant 0 : index
    %40 = vector.load %arg9[%c0_85, %c2, %c7_86, %c0_87] : memref<1x10x24x128xf32, #tpu.memory_space<vmem>>, vector<1x8x8x128xf32>
    %c0_88 = arith.constant 0 : index
    %c0_89 = arith.constant 0 : index
    %c0_90 = arith.constant 0 : index
    %c0_91 = arith.constant 0 : index
    %41 = vector.load %arg10[%c0_88, %c0_89, %c0_90, %c0_91] : memref<1x8x8x384xf32, #tpu.memory_space<vmem>>, vector<1x8x8x128xf32>
    tpu.vector_store %arg10[%c0_88, %c0_89, %c0_90, %c0_91], %40 {strides = array<i32>} : memref<1x8x8x384xf32, #tpu.memory_space<vmem>>, vector<1x8x8x128xf32>,
    %c0_92 = arith.constant 0 : index
    %c2_93 = arith.constant 2 : index
    %c8_94 = arith.constant 8 : index
    %c0_95 = arith.constant 0 : index
    %42 = vector.load %arg9[%c0_92, %c2_93, %c8_94, %c0_95] : memref<1x10x24x128xf32, #tpu.memory_space<vmem>>, vector<1x8x8x128xf32>
    %c0_96 = arith.constant 0 : index
    %c0_97 = arith.constant 0 : index
    %c0_98 = arith.constant 0 : index
    %c128_99 = arith.constant 128 : index
    %43 = vector.load %arg10[%c0_96, %c0_97, %c0_98, %c128_99] : memref<1x8x8x384xf32, #tpu.memory_space<vmem>>, vector<1x8x8x128xf32>
    tpu.vector_store %arg10[%c0_96, %c0_97, %c0_98, %c128_99], %42 {strides = array<i32>} : memref<1x8x8x384xf32, #tpu.memory_space<vmem>>, vector<1x8x8x128xf32>,
    %c0_100 = arith.constant 0 : index
    %c2_101 = arith.constant 2 : index
    %c9_102 = arith.constant 9 : index
    %c0_103 = arith.constant 0 : index
    %44 = vector.load %arg9[%c0_100, %c2_101, %c9_102, %c0_103] : memref<1x10x24x128xf32, #tpu.memory_space<vmem>>, vector<1x8x8x128xf32>
    %c0_104 = arith.constant 0 : index
    %c0_105 = arith.constant 0 : index
    %c0_106 = arith.constant 0 : index
    %c256_107 = arith.constant 256 : index
    %45 = vector.load %arg10[%c0_104, %c0_105, %c0_106, %c256_107] : memref<1x8x8x384xf32, #tpu.memory_space<vmem>>, vector<1x8x8x128xf32>
    tpu.vector_store %arg10[%c0_104, %c0_105, %c0_106, %c256_107], %44 {strides = array<i32>} : memref<1x8x8x384xf32, #tpu.memory_space<vmem>>, vector<1x8x8x128xf32>,
    %c0_108 = arith.constant 0 : index
    %c0_109 = arith.constant 0 : index
    %c0_110 = arith.constant 0 : index
    %c0_111 = arith.constant 0 : index
    %46 = vector.load %arg10[%c0_108, %c0_109, %c0_110, %c0_111] : memref<1x8x8x384xf32, #tpu.memory_space<vmem>>, vector<1x8x8x384xf32>
    %47 = vector.shape_cast %46 : vector<1x8x8x384xf32> to vector<64x384xf32>
    %c768 = arith.constant 768 : index
    %c0_112 = arith.constant 0 : index
    %48 = vector.load %arg4[%c768, %c0_112] : memref<1152x128xf32, #tpu.memory_space<vmem>>, vector<384x128xf32>
    %cst_113 = arith.constant dense<0.000000e+00> : vector<64x128xf32>
    %49 = tpu.matmul %47, %48, %cst_113 {dimension_numbers = #tpu.dot_dimension_numbers<[1], [0], [0], [1], [0, 0, 1, 1], [], []>} : vector<64x384xf32>, vector<384x128xf32>, vector<64x128xf32> -> vector<64x128xf32>
    %50 = arith.addf %39, %49 : vector<64x128xf32>
    %c0_114 = arith.constant 0 : index
    %c0_115 = arith.constant 0 : index
    %51 = vector.load %arg5[%c0_114, %c0_115] : memref<1x128xf32, #tpu.memory_space<vmem>>, vector<1x128xf32>
    %52 = vector.broadcast %51 : vector<1x128xf32> to vector<64x128xf32>
    %53 = arith.addf %50, %52 : vector<64x128xf32>
    %cst_116 = arith.constant 0.000000e+00 : f32
    %54 = vector.broadcast %cst_116 : f32 to vector<64x128xf32>
    %55 = arith.maximumf %53, %54 : vector<64x128xf32>
    %c0_117 = arith.constant 0 : index
    %c0_118 = arith.constant 0 : index
    %56 = vector.load %arg6[%c0_117, %c0_118] : memref<128x128xf32, #tpu.memory_space<vmem>>, vector<128x128xf32>
    %cst_119 = arith.constant dense<0.000000e+00> : vector<64x128xf32>
    %57 = tpu.matmul %55, %56, %cst_119 {dimension_numbers = #tpu.dot_dimension_numbers<[1], [0], [0], [1], [0, 0, 1, 1], [], []>} : vector<64x128xf32>, vector<128x128xf32>, vector<64x128xf32> -> vector<64x128xf32>
    %c0_120 = arith.constant 0 : index
    %c0_121 = arith.constant 0 : index
    %c0_122 = arith.constant 0 : index
    %c0_123 = arith.constant 0 : index
    %58 = vector.load %arg1[%c0_120, %c0_121, %c0_122, %c0_123] : memref<1x8x8x128xf32, #tpu.memory_space<vmem>>, vector<1x8x8x128xf32>
    %59 = vector.shape_cast %58 : vector<1x8x8x128xf32> to vector<64x128xf32>
    %c0_124 = arith.constant 0 : index
    %c0_125 = arith.constant 0 : index
    %60 = vector.load %arg7[%c0_124, %c0_125] : memref<1x128xf32, #tpu.memory_space<vmem>>, vector<1x128xf32>
    %61 = vector.broadcast %60 : vector<1x128xf32> to vector<64x128xf32>
    %62 = arith.addf %57, %61 : vector<64x128xf32>
    %63 = arith.addf %62, %59 : vector<64x128xf32>
    %cst_126 = arith.constant 0.000000e+00 : f32
    %64 = vector.broadcast %cst_126 : f32 to vector<64x128xf32>
    %65 = arith.maximumf %63, %64 : vector<64x128xf32>
    %66 = vector.shape_cast %65 : vector<64x128xf32> to vector<1x8x8x128xf32>
    %c0_127 = arith.constant 0 : index
    %c0_128 = arith.constant 0 : index
    %c0_129 = arith.constant 0 : index
    %c0_130 = arith.constant 0 : index
    %67 = vector.load %arg8[%c0_127, %c0_128, %c0_129, %c0_130] : memref<1x8x8x128xf32, #tpu.memory_space<vmem>>, vector<1x8x8x128xf32>
    tpu.vector_store %arg8[%c0_127, %c0_128, %c0_129, %c0_130], %66 {strides = array<i32>} : memref<1x8x8x128xf32, #tpu.memory_space<vmem>>, vector<1x8x8x128xf32>,
    return
  }
  func.func @transform_0(%arg0: i32) -> (i32, i32, i32, i32) {
    %c0_i32 = arith.constant 0 : i32
    %c0_i32_0 = arith.constant 0 : i32
    %c0_i32_1 = arith.constant 0 : i32
    %c0_i32_2 = arith.constant 0 : i32
    return %arg0, %c0_i32, %c0_i32_0, %c0_i32_1 : i32, i32, i32, i32
  }
  func.func @transform_1(%arg0: i32) -> (i32, i32) {
    %c0_i32 = arith.constant 0 : i32
    %c0_i32_0 = arith.constant 0 : i32
    %c0_i32_1 = arith.constant 0 : i32
    return %c0_i32, %c0_i32_0 : i32, i32
  }
  func.func @transform_2(%arg0: i32) -> (i32, i32) {
    %c0_i32 = arith.constant 0 : i32
    %c0_i32_0 = arith.constant 0 : i32
    %c0_i32_1 = arith.constant 0 : i32
    return %c0_i32, %c0_i32_0 : i32, i32
  }
  func.func @transform_3(%arg0: i32) -> (i32, i32) {
    %c0_i32 = arith.constant 0 : i32
    %c0_i32_0 = arith.constant 0 : i32
    %c0_i32_1 = arith.constant 0 : i32
    return %c0_i32, %c0_i32_0 : i32, i32
  }
  func.func @transform_4(%arg0: i32) -> (i32, i32) {
    %c0_i32 = arith.constant 0 : i32
    %c0_i32_0 = arith.constant 0 : i32
    %c0_i32_1 = arith.constant 0 : i32
    return %c0_i32, %c0_i32_0 : i32, i32
  }
  func.func @transform_5(%arg0: i32) -> (i32, i32) {
    %c0_i32 = arith.constant 0 : i32
    %c0_i32_0 = arith.constant 0 : i32
    %c0_i32_1 = arith.constant 0 : i32
    return %c0_i32, %c0_i32_0 : i32, i32
  }
  func.func @transform_6(%arg0: i32) -> (i32, i32) {
    %c0_i32 = arith.constant 0 : i32
    %c0_i32_0 = arith.constant 0 : i32
    %c0_i32_1 = arith.constant 0 : i32
    return %c0_i32, %c0_i32_0 : i32, i32
  }
  func.func @transform_7(%arg0: i32) -> (i32, i32, i32, i32) {
    %c0_i32 = arith.constant 0 : i32
    %c0_i32_0 = arith.constant 0 : i32
    %c0_i32_1 = arith.constant 0 : i32
    %c0_i32_2 = arith.constant 0 : i32
    return %arg0, %c0_i32, %c0_i32_0, %c0_i32_1 : i32, i32, i32, i32
  }
}

module attributes {stable_mosaic.version = 11 : i64} {
  func.func @_bottleneck_kernel(%arg0: i32, %arg1: memref<1x8x8x128xf32, #tpu.memory_space<vmem>>, %arg2: memref<128x128xf32, #tpu.memory_space<vmem>>, %arg3: memref<1x128xf32, #tpu.memory_space<vmem>>, %arg4: memref<1152x128xf32, #tpu.memory_space<vmem>>, %arg5: memref<1x128xf32, #tpu.memory_space<vmem>>, %arg6: memref<128x128xf32, #tpu.memory_space<vmem>>, %arg7: memref<1x128xf32, #tpu.memory_space<vmem>>, %arg8: memref<1x8x8x128xf32, #tpu.memory_space<vmem>>, %arg9: memref<1x10x24x128xf32, #tpu.memory_space<vmem>>, %arg10: memref<1x8x8x384xf32, #tpu.memory_space<vmem>>) attributes {dimension_semantics = [#tpu.dimension_semantics<parallel>], iteration_bounds = array<i64: 2>, scalar_prefetch = 0 : i64, scratch_operands = 2 : i64, tpu.core_type = #tpu.core_type<tc>, window_params = [{transform_indices = @transform_0, window_bounds = array<i64: 1, 8, 8, 128>}, {pipeline_mode = #tpu.pipeline_mode<synchronous>, transform_indices = @transform_1, window_bounds = array<i64: 128, 128>}, {pipeline_mode = #tpu.pipeline_mode<synchronous>, transform_indices = @transform_2, window_bounds = array<i64: 1, 128>}, {pipeline_mode = #tpu.pipeline_mode<synchronous>, transform_indices = @transform_3, window_bounds = array<i64: 1152, 128>}, {pipeline_mode = #tpu.pipeline_mode<synchronous>, transform_indices = @transform_4, window_bounds = array<i64: 1, 128>}, {pipeline_mode = #tpu.pipeline_mode<synchronous>, transform_indices = @transform_5, window_bounds = array<i64: 128, 128>}, {pipeline_mode = #tpu.pipeline_mode<synchronous>, transform_indices = @transform_6, window_bounds = array<i64: 1, 128>}, {transform_indices = @transform_7, window_bounds = array<i64: 1, 8, 8, 128>}]} {
    %c0 = arith.constant 0 : index
    %c0_0 = arith.constant 0 : index
    %c0_1 = arith.constant 0 : index
    %c0_2 = arith.constant 0 : index
    %0 = vector.load %arg1[%c0, %c0_0, %c0_1, %c0_2] : memref<1x8x8x128xf32, #tpu.memory_space<vmem>>, vector<1x8x8x128xf32>
    %1 = vector.shape_cast %0 : vector<1x8x8x128xf32> to vector<64x128xf32>
    %c0_3 = arith.constant 0 : index
    %c0_4 = arith.constant 0 : index
    %2 = vector.load %arg2[%c0_3, %c0_4] : memref<128x128xf32, #tpu.memory_space<vmem>>, vector<128x128xf32>
    %cst = arith.constant dense<0.000000e+00> : vector<64x128xf32>
    %3 = tpu.matmul %1, %2, %cst {dimension_numbers = #tpu.dot_dimension_numbers<[1], [0], [0], [1], [0, 0, 1, 1], [], []>} : vector<64x128xf32>, vector<128x128xf32>, vector<64x128xf32> -> vector<64x128xf32>
    %c0_5 = arith.constant 0 : index
    %c0_6 = arith.constant 0 : index
    %4 = vector.load %arg3[%c0_5, %c0_6] : memref<1x128xf32, #tpu.memory_space<vmem>>, vector<1x128xf32>
    %5 = vector.broadcast %4 : vector<1x128xf32> to vector<64x128xf32>
    %6 = arith.addf %3, %5 : vector<64x128xf32>
    %cst_7 = arith.constant 0.000000e+00 : f32
    %7 = vector.broadcast %cst_7 : f32 to vector<64x128xf32>
    %8 = arith.maximumf %6, %7 : vector<64x128xf32>
    %cst_8 = arith.constant 0.000000e+00 : f32
    %9 = vector.broadcast %cst_8 : f32 to vector<1x1x24x128xf32>
    %cst_9 = arith.constant 0.000000e+00 : f32
    %10 = vector.broadcast %cst_9 : f32 to vector<1x8x1x128xf32>
    %c0_10 = arith.constant 0 : index
    %c0_11 = arith.constant 0 : index
    %c0_12 = arith.constant 0 : index
    %c0_13 = arith.constant 0 : index
    %11 = vector.load %arg9[%c0_10, %c0_11, %c0_12, %c0_13] : memref<1x10x24x128xf32, #tpu.memory_space<vmem>>, vector<1x1x24x128xf32>
    tpu.vector_store %arg9[%c0_10, %c0_11, %c0_12, %c0_13], %9 {strides = array<i32>} : memref<1x10x24x128xf32, #tpu.memory_space<vmem>>, vector<1x1x24x128xf32>,
    %c0_14 = arith.constant 0 : index
    %c9 = arith.constant 9 : index
    %c0_15 = arith.constant 0 : index
    %c0_16 = arith.constant 0 : index
    %12 = vector.load %arg9[%c0_14, %c9, %c0_15, %c0_16] : memref<1x10x24x128xf32, #tpu.memory_space<vmem>>, vector<1x1x24x128xf32>
    tpu.vector_store %arg9[%c0_14, %c9, %c0_15, %c0_16], %9 {strides = array<i32>} : memref<1x10x24x128xf32, #tpu.memory_space<vmem>>, vector<1x1x24x128xf32>,
    %c0_17 = arith.constant 0 : index
    %c1 = arith.constant 1 : index
    %c7 = arith.constant 7 : index
    %c0_18 = arith.constant 0 : index
    %13 = vector.load %arg9[%c0_17, %c1, %c7, %c0_18] : memref<1x10x24x128xf32, #tpu.memory_space<vmem>>, vector<1x8x1x128xf32>
    tpu.vector_store %arg9[%c0_17, %c1, %c7, %c0_18], %10 {strides = array<i32>} : memref<1x10x24x128xf32, #tpu.memory_space<vmem>>, vector<1x8x1x128xf32>,
    %c0_19 = arith.constant 0 : index
    %c1_20 = arith.constant 1 : index
    %c16 = arith.constant 16 : index
    %c0_21 = arith.constant 0 : index
    %14 = vector.load %arg9[%c0_19, %c1_20, %c16, %c0_21] : memref<1x10x24x128xf32, #tpu.memory_space<vmem>>, vector<1x8x1x128xf32>
    tpu.vector_store %arg9[%c0_19, %c1_20, %c16, %c0_21], %10 {strides = array<i32>} : memref<1x10x24x128xf32, #tpu.memory_space<vmem>>, vector<1x8x1x128xf32>,
    %15 = vector.shape_cast %8 : vector<64x128xf32> to vector<1x8x8x128xf32>
    %c0_22 = arith.constant 0 : index
    %c1_23 = arith.constant 1 : index
    %c8 = arith.constant 8 : index
    %c0_24 = arith.constant 0 : index
    %16 = vector.load %arg9[%c0_22, %c1_23, %c8, %c0_24] : memref<1x10x24x128xf32, #tpu.memory_space<vmem>>, vector<1x8x8x128xf32>
    tpu.vector_store %arg9[%c0_22, %c1_23, %c8, %c0_24], %15 {strides = array<i32>} : memref<1x10x24x128xf32, #tpu.memory_space<vmem>>, vector<1x8x8x128xf32>,
    %cst_25 = arith.constant 0.000000e+00 : f32
    %17 = vector.broadcast %cst_25 : f32 to vector<64x128xf32>
    %c0_26 = arith.constant 0 : index
    %c0_27 = arith.constant 0 : index
    %c7_28 = arith.constant 7 : index
    %c0_29 = arith.constant 0 : index
    %18 = vector.load %arg9[%c0_26, %c0_27, %c7_28, %c0_29] : memref<1x10x24x128xf32, #tpu.memory_space<vmem>>, vector<1x8x8x128xf32>
    %c0_30 = arith.constant 0 : index
    %c0_31 = arith.constant 0 : index
    %c0_32 = arith.constant 0 : index
    %c0_33 = arith.constant 0 : index
    %19 = vector.load %arg10[%c0_30, %c0_31, %c0_32, %c0_33] : memref<1x8x8x384xf32, #tpu.memory_space<vmem>>, vector<1x8x8x128xf32>
    tpu.vector_store %arg10[%c0_30, %c0_31, %c0_32, %c0_33], %18 {strides = array<i32>} : memref<1x8x8x384xf32, #tpu.memory_space<vmem>>, vector<1x8x8x128xf32>,
    %c0_34 = arith.constant 0 : index
    %c0_35 = arith.constant 0 : index
    %c8_36 = arith.constant 8 : index
    %c0_37 = arith.constant 0 : index
    %20 = vector.load %arg9[%c0_34, %c0_35, %c8_36, %c0_37] : memref<1x10x24x128xf32, #tpu.memory_space<vmem>>, vector<1x8x8x128xf32>
    %c0_38 = arith.constant 0 : index
    %c0_39 = arith.constant 0 : index
    %c0_40 = arith.constant 0 : index
    %c128 = arith.constant 128 : index
    %21 = vector.load %arg10[%c0_38, %c0_39, %c0_40, %c128] : memref<1x8x8x384xf32, #tpu.memory_space<vmem>>, vector<1x8x8x128xf32>
    tpu.vector_store %arg10[%c0_38, %c0_39, %c0_40, %c128], %20 {strides = array<i32>} : memref<1x8x8x384xf32, #tpu.memory_space<vmem>>, vector<1x8x8x128xf32>,
    %c0_41 = arith.constant 0 : index
    %c0_42 = arith.constant 0 : index
    %c9_43 = arith.constant 9 : index
    %c0_44 = arith.constant 0 : index
    %22 = vector.load %arg9[%c0_41, %c0_42, %c9_43, %c0_44] : memref<1x10x24x128xf32, #tpu.memory_space<vmem>>, vector<1x8x8x128xf32>
    %c0_45 = arith.constant 0 : index
    %c0_46 = arith.constant 0 : index
    %c0_47 = arith.constant 0 : index
    %c256 = arith.constant 256 : index
    %23 = vector.load %arg10[%c0_45, %c0_46, %c0_47, %c256] : memref<1x8x8x384xf32, #tpu.memory_space<vmem>>, vector<1x8x8x128xf32>
    tpu.vector_store %arg10[%c0_45, %c0_46, %c0_47, %c256], %22 {strides = array<i32>} : memref<1x8x8x384xf32, #tpu.memory_space<vmem>>, vector<1x8x8x128xf32>,
    %c0_48 = arith.constant 0 : index
    %c0_49 = arith.constant 0 : index
    %c0_50 = arith.constant 0 : index
    %c0_51 = arith.constant 0 : index
    %24 = vector.load %arg10[%c0_48, %c0_49, %c0_50, %c0_51] : memref<1x8x8x384xf32, #tpu.memory_space<vmem>>, vector<1x8x8x384xf32>
    %25 = vector.shape_cast %24 : vector<1x8x8x384xf32> to vector<64x384xf32>
    %c0_52 = arith.constant 0 : index
    %c0_53 = arith.constant 0 : index
    %26 = vector.load %arg4[%c0_52, %c0_53] : memref<1152x128xf32, #tpu.memory_space<vmem>>, vector<384x128xf32>
    %cst_54 = arith.constant dense<0.000000e+00> : vector<64x128xf32>
    %27 = tpu.matmul %25, %26, %cst_54 {dimension_numbers = #tpu.dot_dimension_numbers<[1], [0], [0], [1], [0, 0, 1, 1], [], []>} : vector<64x384xf32>, vector<384x128xf32>, vector<64x128xf32> -> vector<64x128xf32>
    %28 = arith.addf %17, %27 : vector<64x128xf32>
    %c0_55 = arith.constant 0 : index
    %c1_56 = arith.constant 1 : index
    %c7_57 = arith.constant 7 : index
    %c0_58 = arith.constant 0 : index
    %29 = vector.load %arg9[%c0_55, %c1_56, %c7_57, %c0_58] : memref<1x10x24x128xf32, #tpu.memory_space<vmem>>, vector<1x8x8x128xf32>
    %c0_59 = arith.constant 0 : index
    %c0_60 = arith.constant 0 : index
    %c0_61 = arith.constant 0 : index
    %c0_62 = arith.constant 0 : index
    %30 = vector.load %arg10[%c0_59, %c0_60, %c0_61, %c0_62] : memref<1x8x8x384xf32, #tpu.memory_space<vmem>>, vector<1x8x8x128xf32>
    tpu.vector_store %arg10[%c0_59, %c0_60, %c0_61, %c0_62], %29 {strides = array<i32>} : memref<1x8x8x384xf32, #tpu.memory_space<vmem>>, vector<1x8x8x128xf32>,
    %c0_63 = arith.constant 0 : index
    %c1_64 = arith.constant 1 : index
    %c8_65 = arith.constant 8 : index
    %c0_66 = arith.constant 0 : index
    %31 = vector.load %arg9[%c0_63, %c1_64, %c8_65, %c0_66] : memref<1x10x24x128xf32, #tpu.memory_space<vmem>>, vector<1x8x8x128xf32>
    %c0_67 = arith.constant 0 : index
    %c0_68 = arith.constant 0 : index
    %c0_69 = arith.constant 0 : index
    %c128_70 = arith.constant 128 : index
    %32 = vector.load %arg10[%c0_67, %c0_68, %c0_69, %c128_70] : memref<1x8x8x384xf32, #tpu.memory_space<vmem>>, vector<1x8x8x128xf32>
    tpu.vector_store %arg10[%c0_67, %c0_68, %c0_69, %c128_70], %31 {strides = array<i32>} : memref<1x8x8x384xf32, #tpu.memory_space<vmem>>, vector<1x8x8x128xf32>,
    %c0_71 = arith.constant 0 : index
    %c1_72 = arith.constant 1 : index
    %c9_73 = arith.constant 9 : index
    %c0_74 = arith.constant 0 : index
    %33 = vector.load %arg9[%c0_71, %c1_72, %c9_73, %c0_74] : memref<1x10x24x128xf32, #tpu.memory_space<vmem>>, vector<1x8x8x128xf32>
    %c0_75 = arith.constant 0 : index
    %c0_76 = arith.constant 0 : index
    %c0_77 = arith.constant 0 : index
    %c256_78 = arith.constant 256 : index
    %34 = vector.load %arg10[%c0_75, %c0_76, %c0_77, %c256_78] : memref<1x8x8x384xf32, #tpu.memory_space<vmem>>, vector<1x8x8x128xf32>
    tpu.vector_store %arg10[%c0_75, %c0_76, %c0_77, %c256_78], %33 {strides = array<i32>} : memref<1x8x8x384xf32, #tpu.memory_space<vmem>>, vector<1x8x8x128xf32>,
    %c0_79 = arith.constant 0 : index
    %c0_80 = arith.constant 0 : index
    %c0_81 = arith.constant 0 : index
    %c0_82 = arith.constant 0 : index
    %35 = vector.load %arg10[%c0_79, %c0_80, %c0_81, %c0_82] : memref<1x8x8x384xf32, #tpu.memory_space<vmem>>, vector<1x8x8x384xf32>
    %36 = vector.shape_cast %35 : vector<1x8x8x384xf32> to vector<64x384xf32>
    %c384 = arith.constant 384 : index
    %c0_83 = arith.constant 0 : index
    %37 = vector.load %arg4[%c384, %c0_83] : memref<1152x128xf32, #tpu.memory_space<vmem>>, vector<384x128xf32>
    %cst_84 = arith.constant dense<0.000000e+00> : vector<64x128xf32>
    %38 = tpu.matmul %36, %37, %cst_84 {dimension_numbers = #tpu.dot_dimension_numbers<[1], [0], [0], [1], [0, 0, 1, 1], [], []>} : vector<64x384xf32>, vector<384x128xf32>, vector<64x128xf32> -> vector<64x128xf32>
    %39 = arith.addf %28, %38 : vector<64x128xf32>
    %c0_85 = arith.constant 0 : index
    %c2 = arith.constant 2 : index
    %c7_86 = arith.constant 7 : index
    %c0_87 = arith.constant 0 : index
    %40 = vector.load %arg9[%c0_85, %c2, %c7_86, %c0_87] : memref<1x10x24x128xf32, #tpu.memory_space<vmem>>, vector<1x8x8x128xf32>
    %c0_88 = arith.constant 0 : index
    %c0_89 = arith.constant 0 : index
    %c0_90 = arith.constant 0 : index
    %c0_91 = arith.constant 0 : index
    %41 = vector.load %arg10[%c0_88, %c0_89, %c0_90, %c0_91] : memref<1x8x8x384xf32, #tpu.memory_space<vmem>>, vector<1x8x8x128xf32>
    tpu.vector_store %arg10[%c0_88, %c0_89, %c0_90, %c0_91], %40 {strides = array<i32>} : memref<1x8x8x384xf32, #tpu.memory_space<vmem>>, vector<1x8x8x128xf32>,
    %c0_92 = arith.constant 0 : index
    %c2_93 = arith.constant 2 : index
    %c8_94 = arith.constant 8 : index
    %c0_95 = arith.constant 0 : index
    %42 = vector.load %arg9[%c0_92, %c2_93, %c8_94, %c0_95] : memref<1x10x24x128xf32, #tpu.memory_space<vmem>>, vector<1x8x8x128xf32>
    %c0_96 = arith.constant 0 : index
    %c0_97 = arith.constant 0 : index
    %c0_98 = arith.constant 0 : index
    %c128_99 = arith.constant 128 : index
    %43 = vector.load %arg10[%c0_96, %c0_97, %c0_98, %c128_99] : memref<1x8x8x384xf32, #tpu.memory_space<vmem>>, vector<1x8x8x128xf32>
    tpu.vector_store %arg10[%c0_96, %c0_97, %c0_98, %c128_99], %42 {strides = array<i32>} : memref<1x8x8x384xf32, #tpu.memory_space<vmem>>, vector<1x8x8x128xf32>,
    %c0_100 = arith.constant 0 : index
    %c2_101 = arith.constant 2 : index
    %c9_102 = arith.constant 9 : index
    %c0_103 = arith.constant 0 : index
    %44 = vector.load %arg9[%c0_100, %c2_101, %c9_102, %c0_103] : memref<1x10x24x128xf32, #tpu.memory_space<vmem>>, vector<1x8x8x128xf32>
    %c0_104 = arith.constant 0 : index
    %c0_105 = arith.constant 0 : index
    %c0_106 = arith.constant 0 : index
    %c256_107 = arith.constant 256 : index
    %45 = vector.load %arg10[%c0_104, %c0_105, %c0_106, %c256_107] : memref<1x8x8x384xf32, #tpu.memory_space<vmem>>, vector<1x8x8x128xf32>
    tpu.vector_store %arg10[%c0_104, %c0_105, %c0_106, %c256_107], %44 {strides = array<i32>} : memref<1x8x8x384xf32, #tpu.memory_space<vmem>>, vector<1x8x8x128xf32>,
    %c0_108 = arith.constant 0 : index
    %c0_109 = arith.constant 0 : index
    %c0_110 = arith.constant 0 : index
    %c0_111 = arith.constant 0 : index
    %46 = vector.load %arg10[%c0_108, %c0_109, %c0_110, %c0_111] : memref<1x8x8x384xf32, #tpu.memory_space<vmem>>, vector<1x8x8x384xf32>
    %47 = vector.shape_cast %46 : vector<1x8x8x384xf32> to vector<64x384xf32>
    %c768 = arith.constant 768 : index
    %c0_112 = arith.constant 0 : index
    %48 = vector.load %arg4[%c768, %c0_112] : memref<1152x128xf32, #tpu.memory_space<vmem>>, vector<384x128xf32>
    %cst_113 = arith.constant dense<0.000000e+00> : vector<64x128xf32>
    %49 = tpu.matmul %47, %48, %cst_113 {dimension_numbers = #tpu.dot_dimension_numbers<[1], [0], [0], [1], [0, 0, 1, 1], [], []>} : vector<64x384xf32>, vector<384x128xf32>, vector<64x128xf32> -> vector<64x128xf32>
    %50 = arith.addf %39, %49 : vector<64x128xf32>
    %c0_114 = arith.constant 0 : index
    %c0_115 = arith.constant 0 : index
    %51 = vector.load %arg5[%c0_114, %c0_115] : memref<1x128xf32, #tpu.memory_space<vmem>>, vector<1x128xf32>
    %52 = vector.broadcast %51 : vector<1x128xf32> to vector<64x128xf32>
    %53 = arith.addf %50, %52 : vector<64x128xf32>
    %cst_116 = arith.constant 0.000000e+00 : f32
    %54 = vector.broadcast %cst_116 : f32 to vector<64x128xf32>
    %55 = arith.maximumf %53, %54 : vector<64x128xf32>
    %c0_117 = arith.constant 0 : index
    %c0_118 = arith.constant 0 : index
    %56 = vector.load %arg6[%c0_117, %c0_118] : memref<128x128xf32, #tpu.memory_space<vmem>>, vector<128x128xf32>
    %cst_119 = arith.constant dense<0.000000e+00> : vector<64x128xf32>
    %57 = tpu.matmul %55, %56, %cst_119 {dimension_numbers = #tpu.dot_dimension_numbers<[1], [0], [0], [1], [0, 0, 1, 1], [], []>} : vector<64x128xf32>, vector<128x128xf32>, vector<64x128xf32> -> vector<64x128xf32>
    %c0_120 = arith.constant 0 : index
    %c0_121 = arith.constant 0 : index
    %c0_122 = arith.constant 0 : index
    %c0_123 = arith.constant 0 : index
    %58 = vector.load %arg1[%c0_120, %c0_121, %c0_122, %c0_123] : memref<1x8x8x128xf32, #tpu.memory_space<vmem>>, vector<1x8x8x128xf32>
    %59 = vector.shape_cast %58 : vector<1x8x8x128xf32> to vector<64x128xf32>
    %c0_124 = arith.constant 0 : index
    %c0_125 = arith.constant 0 : index
    %60 = vector.load %arg7[%c0_124, %c0_125] : memref<1x128xf32, #tpu.memory_space<vmem>>, vector<1x128xf32>
    %61 = vector.broadcast %60 : vector<1x128xf32> to vector<64x128xf32>
    %62 = arith.addf %57, %61 : vector<64x128xf32>
    %63 = arith.addf %62, %59 : vector<64x128xf32>
    %cst_126 = arith.constant 0.000000e+00 : f32
    %64 = vector.broadcast %cst_126 : f32 to vector<64x128xf32>
    %65 = arith.maximumf %63, %64 : vector<64x128xf32>
    %66 = vector.shape_cast %65 : vector<64x128xf32> to vector<1x8x8x128xf32>
    %c0_127 = arith.constant 0 : index
    %c0_128 = arith.constant 0 : index
    %c0_129 = arith.constant 0 : index
    %c0_130 = arith.constant 0 : index
    %67 = vector.load %arg8[%c0_127, %c0_128, %c0_129, %c0_130] : memref<1x8x8x128xf32, #tpu.memory_space<vmem>>, vector<1x8x8x128xf32>
    tpu.vector_store %arg8[%c0_127, %c0_128, %c0_129, %c0_130], %66 {strides = array<i32>} : memref<1x8x8x128xf32, #tpu.memory_space<vmem>>, vector<1x8x8x128xf32>,
    return
  }
  func.func @transform_0(%arg0: i32) -> (i32, i32, i32, i32) {
    %c0_i32 = arith.constant 0 : i32
    %c0_i32_0 = arith.constant 0 : i32
    %c0_i32_1 = arith.constant 0 : i32
    %c0_i32_2 = arith.constant 0 : i32
    return %arg0, %c0_i32, %c0_i32_0, %c0_i32_1 : i32, i32, i32, i32
  }
  func.func @transform_1(%arg0: i32) -> (i32, i32) {
    %c0_i32 = arith.constant 0 : i32
    %c0_i32_0 = arith.constant 0 : i32
    %c0_i32_1 = arith.constant 0 : i32
    return %c0_i32, %c0_i32_0 : i32, i32
  }
  func.func @transform_2(%arg0: i32) -> (i32, i32) {
    %c0_i32 = arith.constant 0 : i32
    %c0_i32_0 = arith.constant 0 : i32
    %c0_i32_1 = arith.constant 0 : i32
    return %c0_i32, %c0_i32_0 : i32, i32
  }
  func.func @transform_3(%arg0: i32) -> (i32, i32) {
    %c0_i32 = arith.constant 0 : i32
    %c0_i32_0 = arith.constant 0 : i32
    %c0_i32_1 = arith.constant 0 : i32
    return %c0_i32, %c0_i32_0 : i32, i32
  }
  func.func @transform_4(%arg0: i32) -> (i32, i32) {
    %c0_i32 = arith.constant 0 : i32
    %c0_i32_0 = arith.constant 0 : i32
    %c0_i32_1 = arith.constant 0 : i32
    return %c0_i32, %c0_i32_0 : i32, i32
  }
  func.func @transform_5(%arg0: i32) -> (i32, i32) {
    %c0_i32 = arith.constant 0 : i32
    %c0_i32_0 = arith.constant 0 : i32
    %c0_i32_1 = arith.constant 0 : i32
    return %c0_i32, %c0_i32_0 : i32, i32
  }
  func.func @transform_6(%arg0: i32) -> (i32, i32) {
    %c0_i32 = arith.constant 0 : i32
    %c0_i32_0 = arith.constant 0 : i32
    %c0_i32_1 = arith.constant 0 : i32
    return %c0_i32, %c0_i32_0 : i32, i32
  }
  func.func @transform_7(%arg0: i32) -> (i32, i32, i32, i32) {
    %c0_i32 = arith.constant 0 : i32
    %c0_i32_0 = arith.constant 0 : i32
    %c0_i32_1 = arith.constant 0 : i32
    %c0_i32_2 = arith.constant 0 : i32
    return %arg0, %c0_i32, %c0_i32_0, %c0_i32_1 : i32, i32, i32, i32
  }
}

</mosaic_0001>

<bundles_post_ra>
// kernel: tpu_custom_call.1
= control target key start
LH: loop header
LB: loop body
LE: loop exit
PB: predicated region body
PF: predicated region fallthrough
CT: control target
= control target key end

     0   :  { %12 = vsyncpa [#allocation5], 0  ;;  %s3428_s0 = inlined_call_operand.hbm [shape: f32[2,8,8,128], index: 0, kind: input, shape index: {}]   ;;  %s3429_s1 = inlined_call_operand.hbm [shape: f32[128,128], index: 1, kind: input, shape index: {}]   ;;  %s3430_s2 = inlined_call_operand.vmem [shape: f32[1,128], index: 2, kind: input, shape index: {}]   ;;  %s3431_s3 = inlined_call_operand.hbm [shape: f32[1152,128], index: 3, kind: input, shape index: {}]   ;;  %s3432_s4 = inlined_call_operand.vmem [shape: f32[1,128], index: 4, kind: input, shape index: {}]   ;;  %s3433_s5 = inlined_call_operand.hbm [shape: f32[128,128], index: 5, kind: input, shape index: {}]   ;;  %s3434_s6 = inlined_call_operand.vmem [shape: f32[1,128], index: 6, kind: input, shape index: {}]   ;;  %s3435_s7 = inlined_call_operand.hbm [shape: f32[2,8,8,128], index: 7, kind: output, shape index: {}]  }
   0x1   :  { %14 = vsyncpa [#allocation5 + $0x1], 0 }
   0x2   :  { %15 = vsyncpa [#allocation8], 0 }
   0x3   :  { %16 = vsyncpa [#allocation11], 0 }
   0x4   :  { %17 = vsyncpa [#allocation6], 0 }
   0x5   :  { %19 = vsyncpa [#allocation6 + $0x1], 0  ;;  %s2966_s24 = smov 0   ;;  %s2968_s25 = smov 0  }
   0x6   :  { %s2970_s26 = smov 0   ;;  %s2972_s27 = smov 0  }
   0x7 LB: > { %s2987_s28 = sadd.s32 4294967295, %s2914_s27   ;;  %s1815_s29 = sadd.s32 4294967294, %s2914_s27   ;;  %s2914_s27 = sphi %s2972_s27, %s3461_s27   ;;  %s2910_s26 = sphi %s2970_s26, %s3460_s26   ;;  %s2906_s25 = sphi %s2968_s25, %s3459_s25   ;;  %s2902_s24 = sphi %s2966_s24, %s3458_s24  }
   0x8   : > { %p45_p0 = scmp.ne.s32.totalorder %s2906_s25, %s2902_s24  ;;  %p3436_p1 = scmp.eq.s32.totalorder %s2987_s28, 0 }
   0x9   : > { %p201_p3 = scmp.eq.s32.totalorder %s1815_s29, 1  ;;  %p1816_p5 = scmp.ge.s32.totalorder %s2914_s27, 1 }
   0xa   : > { %p2996_p4 = por %p3436_p1, %p45_p0  ;;  %p208_p7 = scmp.lt.s32.totalorder %s2914_s27, 3 }
   0xb   : > { %p3001_p6 = por %p201_p3, %p45_p0  ;;  %s2916_s10 = smov [#allocation7]  }
   0xc   : > { %s3440_s30 = scalar_select %p2996_p4, 1, 0 }
   0xd   : > { %s3441_s8 = scalar_select %p3001_p6, 1, 0 }
   0xe   : > { %p3006_p8 = pnand %p1816_p5, %p208_p7  ;;  %s220_s11 = sshll.u32 %s2916_s10, 4  ;;  %s3010_s11 = int_to_ptr.vmem [resolvable:$true] %s220_s11 }
   0xf   : > { %3442 = sst [smem:[#allocation17_spill]] %s3441_s8  ;;  %s2917_s13 = smov [#allocation9]  }
  0x10   : > { %s3443_s9 = scalar_select %p3006_p8, 1, 0 }
  0x11   : > { %p2660_p9 = pneg %p3006_p8  ;;  %s236_s14 = sshll.u32 %s2917_s13, 4  ;;  %s3021_s14 = int_to_ptr.vmem [resolvable:$true] %s236_s14 }
  0x12   : > { %s2918_s15 = smov [#allocation10]   ;;  %s2726_s19 = scalar_lea.hbm %s3429_s1, 2048 }
  0x13   : > { %p3017_p11 = pnand %p2660_p9, %p3436_p1  ;;  %s3023_s16 = sshll.u32 %s2918_s15, 4  ;;  %s253_s16 = int_to_ptr.vmem [resolvable:$true] %s3023_s16 }
  0x14   : > { %p2727_p12 = scmp.ne.s32.totalorder %s3429_s1, %s2726_s19  ;;  %p2733_p5 = scmp.lt.u32.totalorder %s2726_s19, %s3429_s1 }
  0x15   : > { %p3033_p13 = pneg %p3017_p11 }
  0x17   : > { %p2729_p0 = pnand %p3033_p13, %p2727_p12 }
  0x19   : > { %p2730_p3 = pneg %p2729_p0 }
  0x1b   : > { %p2735_p7 = pnand %p2733_p5, %p2730_p3 }
  0x1d   : > { %2738 = shalt.err (!%p2735_p7)
}
  0x1e   : > { %s2739_s10 = scalar_lea.vmem %s3010_s11, 2048  ;;  %p2747_p2 = scmp.lt.s32.totalorder %s3010_s11, %s3010_s11 }
  0x1f   : > { %p2740_p9 = scmp.ne.s32.totalorder %s3010_s11, %s2739_s10  ;;  %p2748_p6 = scmp.lt.s32.totalorder %s2739_s10, %s2739_s10 }
  0x21   : > { %p2742_p10 = pnand %p2740_p9, %p3033_p13  ;;  %p2749_p12 = por %p2748_p6, %p2747_p2 }
  0x23   : > { %p2743_p1 = pneg %p2742_p10 }
  0x25   : > { %p2750_p0 = pnand %p2749_p12, %p2743_p1 }
  0x27   : > { %2753 = shalt.err (!%p2750_p0)
}
  0x28   : > { %s2919_s13 = smov 128   ;;  %s2920_s15 = smov 8  }
  0x29   : > { %2663 = dma.hbm_to_vmem [thread:$0]  (!%p3017_p11), %s3429_s1, 2048, %s3010_s11, [#allocation8], %s2919_s13, %s2919_s13, %s2920_s15  }
  0x2a   : > { %s2754_s21 = scalar_lea.hbm %s3431_s3, 18432 }
  0x2b   : > { %p2755_p1 = scmp.ne.s32.totalorder %s3431_s3, %s2754_s21  ;;  %p2761_p10 = scmp.lt.u32.totalorder %s2754_s21, %s3431_s3 }
  0x2d   : > { %p2757_p2 = pnand %p2755_p1, %p3033_p13 }
  0x2f   : > { %p2758_p6 = pneg %p2757_p2 }
  0x31   : > { %p2763_p3 = pnand %p2761_p10, %p2758_p6 }
  0x33   : > { %2766 = shalt.err (!%p2763_p3)
}
  0x34   : > { %s2767_s11 = scalar_lea.vmem %s3021_s14, 18432  ;;  %p2775_p12 = scmp.lt.s32.totalorder %s3021_s14, %s3021_s14 }
  0x35   : > { %p2768_p5 = scmp.ne.s32.totalorder %s3021_s14, %s2767_s11  ;;  %p2776_p0 = scmp.lt.s32.totalorder %s2767_s11, %s2767_s11 }
  0x37   : > { %p2770_p7 = pnand %p2768_p5, %p3033_p13  ;;  %p2777_p1 = por %p2776_p0, %p2775_p12 }
  0x39   : > { %p2771_p9 = pneg %p2770_p7 }
  0x3b   : > { %p2778_p2 = pnand %p2777_p1, %p2771_p9 }
  0x3d   : > { %2781 = shalt.err (!%p2778_p2)
}
  0x3e   : > { %2666 = dma.hbm_to_vmem [thread:$0]  (!%p3017_p11), %s3431_s3, 18432, %s3021_s14, [#allocation8], %s2919_s13, %s2919_s13, %s2920_s15  }
  0x3f   : > { %s2782_s20 = scalar_lea.hbm %s3433_s5, 2048 }
  0x40   : > { %p2783_p6 = scmp.ne.s32.totalorder %s3433_s5, %s2782_s20  ;;  %p2789_p5 = scmp.lt.u32.totalorder %s2782_s20, %s3433_s5 }
  0x42   : > { %p2785_p10 = pnand %p2783_p6, %p3033_p13 }
  0x44   : > { %p2786_p3 = pneg %p2785_p10 }
  0x46   : > { %p2791_p7 = pnand %p2789_p5, %p2786_p3 }
  0x48   : > { %2794 = shalt.err (!%p2791_p7)
}
  0x49   : > { %s2795_s11 = scalar_lea.vmem %s253_s16, 2048  ;;  %p2803_p1 = scmp.lt.s32.totalorder %s253_s16, %s253_s16 }
  0x4a   : > { %p2796_p9 = scmp.ne.s32.totalorder %s253_s16, %s2795_s11  ;;  %p2804_p2 = scmp.lt.s32.totalorder %s2795_s11, %s2795_s11 }
  0x4c   : > { %p2798_p12 = pnand %p2796_p9, %p3033_p13  ;;  %p2805_p4 = por %p2804_p2, %p2803_p1 }
  0x4e   : > { %p2799_p0 = pneg %p2798_p12 }
  0x50   : > { %p2806_p8 = pnand %p2805_p4, %p2799_p0 }
  0x52   : > { %2809 = shalt.err (!%p2806_p8)
}
  0x53   : > { %2669 = dma.hbm_to_vmem [thread:$0]  (!%p3017_p11), %s3433_s5, 2048, %s253_s16, [#allocation11], %s2919_s13, %s2919_s13, %s2920_s15  }
  0x54   : > { %s3106_s22 = sadd.s32 1, %s2914_s27   ;;  %s32_s17 = sadd.s32 1, %s2910_s26 }
  0x55   : > { %s29_s12 = ssub.s32 %s2914_s27, %s3106_s22  ;;  %p39_p8 = scmp.ne.s32.totalorder %s2910_s26, %s2906_s25 }
  0x56   : > { %p30_p4 = scmp.eq.s32.totalorder %s29_s12, 0  ;;  %p40_p13 = scmp.eq.s32.totalorder %s2914_s27, 0 }
  0x57   : > { %p2681_p6 = scmp.lt.s32.totalorder %s2914_s27, 2  ;;  %p3446_p3 = scmp.eq.s32.totalorder %s2987_s28, 1 }
  0x58   : > { %s3116_s18 = scalar_select %p30_p4, %s2910_s26, %s32_s17  }
  0x59   : > { %p41_p10 = por %p40_p13, %p39_p8  ;;  %p3120_p5 = por %p3446_p3, %p39_p8 }
  0x5a   : > { %s269_s20 = sand.u32 1, %s2910_s26   ;;  %s1838_s21 = sshll.u32 %s2914_s27, 10 }
  0x5b   : > { %s1821_s16 = sshll.u32 %s269_s20, 6  ;;  %s3129_s10 = scalar_lea.hbm %s3428_s0, %s1838_s21 }
  0x5c   : > { %s273_s11 = scalar_lea.vmem [#allocation4], %s1821_s16  ;;  %p3131_p11 = pnand %p2681_p6, %p41_p10 }
  0x5d   : > { %s280_s14 = sshll.u32 %s273_s11, 4  ;;  %s3137_s12 = scalar_lea.sflag [#allocation5], %s269_s20  ;;  %s3135_s14 = int_to_ptr.vmem [resolvable:$true] %s280_s14 }
  0x5e   : > { %s2810_s17 = scalar_lea.hbm %s3129_s10, 1024  ;;  %p2812_p9 = pneg %p3131_p11 }
  0x5f   : > { %p2811_p7 = scmp.ne.s32.totalorder %s3129_s10, %s2810_s17  ;;  %s2815_s23 = scalar_lea.hbm %s3428_s0, 2048 }
  0x60   : > { %p2816_p1 = scmp.lt.u32.totalorder %s3129_s10, %s3428_s0  ;;  %p2817_p2 = scmp.lt.u32.totalorder %s2815_s23, %s2810_s17 }
  0x61   : > { %p2813_p12 = pnand %p2812_p9, %p2811_p7  ;;  %p2819_p8 = scmp.lt.u32.totalorder %s2810_s17, %s3129_s10 }
  0x62   : > { %p2818_p4 = por %p2817_p2, %p2816_p1 }
  0x63   : > { %p2814_p0 = pneg %p2813_p12 }
  0x64   : > { %p2820_p13 = por %p2819_p8, %p2818_p4 }
  0x66   : > { %p2821_p6 = pnand %p2820_p13, %p2814_p0 }
  0x68   : > { %2824 = shalt.err (!%p2821_p6)
}
  0x69   : > { %s2825_s20 = scalar_lea.vmem %s3135_s14, 1024  ;;  %s2921_s21 = smov [#allocation4]  }
  0x6a   : > { %p2826_p10 = scmp.ne.s32.totalorder %s3135_s14, %s2825_s20  ;;  %s2830_s16 = sshll.u32 %s2921_s21, 4  ;;  %s2831_s16 = int_to_ptr.vmem [resolvable:$false] %s2830_s16 }
  0x6b   : > { %s2832_s29 = scalar_lea.vmem %s2831_s16, 2048  ;;  %p2833_p12 = scmp.lt.s32.totalorder %s3135_s14, %s2831_s16 }
  0x6c   : > { %p2828_p3 = pnand %p2826_p10, %p2812_p9  ;;  %p2834_p1 = scmp.lt.s32.totalorder %s2832_s29, %s2825_s20 }
  0x6e   : > { %p2829_p7 = pneg %p2828_p3  ;;  %p2835_p2 = por %p2834_p1, %p2833_p12 }
  0x70   : > { %p2836_p4 = pnand %p2835_p2, %p2829_p7 }
  0x72   : > { %2839 = shalt.err (!%p2836_p4)
}
  0x73   : > { %2673 = dma.hbm_to_vmem [thread:$0]  (!%p3131_p11), %s3129_s10, 1024, %s3135_s14, %s3137_s12, %s2919_s13, %s2919_s13, %s2920_s15  }
  0x74   : > { %p3449_p9 = scmp.ne.s32.totalorder %s3443_s9, 0 }
  0x75   : > { %s3171_s17 = sand.u32 (!%p3449_p9), 1, %s2906_s25   ;;  %p3450_p0 = scmp.ne.s32.totalorder (!%p3449_p9), %s3440_s30, 0 }
  0x76   : > { %292 = sbr.rel (%p3449_p9) target bundleno = 943 (0x3af), region = 48  ;;  %s1825_s23 = sshll.u32 (!%p3449_p9), %s3171_s17, 6 }
  0x77   : > { %s295_s11 = scalar_lea.sflag (!%p3449_p9), [#allocation5], %s3171_s17  ;;  %s3177_s8 = scalar_lea.vmem (!%p3449_p9), [#allocation4], %s1825_s23 }
  0x7d   : > { %2885 = dma.done.wait (%p3450_p0), %s295_s11, 1024  }
  0x7e   : > { %2887 = vsyncadd (%p3450_p0), %s295_s11, 4294966272  ;;  %p3451_p11 = scmp.eq.s32.totalorder %s2987_s28, 0 }
  0x80   : > { %2889 = dma.done.wait (%p3451_p11), [#allocation8], 20480   ;;  %p3452_p8 = pmov %p3451_p11 }
  0x82   : > { %2891 = vsyncadd (%p3452_p8), [#allocation8], 4294946816  ;;  %p3453_p13 = pmov %p3452_p8 }
  0x83   : > { %p3454_p6 = pmov %p3452_p8 }
  0x84   : > { %2893 = dma.done.wait (%p3453_p13), [#allocation11], 2048  }
  0x85   : > { %2895 = vsyncadd (%p3454_p6), [#allocation11], 4294965248  ;;  %v349_v0 = vld [vmem:[#allocation7] sm:$0xff]  ;;  %v350_v1 = vld [vmem:[#allocation7 + $0x8] sm:$0xff]  ;;  %s3361_s12 = scalar_lea.vmem [#allocation12], %s1825_s23  ;;  %s1839_s21 = sshll.u32 %s2987_s28, 10 }
  0x86   : > { %v351_v2 = vld [vmem:[#allocation7 + $0x10] sm:$0xff]  ;;  %v2348_v3 = vpack.c.bf16 %v350_v1, %v349_v0  ;;  %v352_v4 = vld [vmem:[#allocation7 + $0x18] sm:$0xff]  ;;  %v353_v6 = vld [vmem:[#allocation7 + $0x20] sm:$0xff]  ;;  %s1713_s20 = sshll.u32 %s3361_s12, 4  ;;  %s3382_s23 = scalar_lea.hbm %s3435_s7, %s1839_s21  ;;  %s3377_s20 = int_to_ptr.vmem [resolvable:$true] %s1713_s20 }
  0x87   : > { %v2352_v5 = vpack.c.bf16 %v352_v4, %v351_v2  ;;  %v354_v7 = vld [vmem:[#allocation7 + $0x28] sm:$0xff]  ;;  %v341_v9 = vld [vmem:[%s3177_s8] sm:$0xff]  ;;  %v355_v10 = vld [vmem:[#allocation7 + $0x30] sm:$0xff]  ;;  %s1700_s11 = scalar_lea.sflag [#allocation6], %s3171_s17  ;;  %s2923_s28 = smov [#allocation12]  }
  0x88   : > { %2349 = vmatprep.subr.bf16.mxu0 %v2348_v3  ;;  %v2356_v8 = vpack.c.bf16 %v354_v7, %v353_v6  ;;  %v356_v11 = vld [vmem:[#allocation7 + $0x38] sm:$0xff]  ;;  %2160 = vmatprep.mubr.f32.mxu0 %v341_v9  ;;  %v725_v12 = vld [vmem:[#allocation9 + $0x200] sm:$0xff]  ;;  %v726_v13 = vld [vmem:[#allocation9 + $0x208] sm:$0xff]  ;;  %s2844_s30 = sshll.u32 %s2923_s28, 4  ;;  %s2845_s30 = int_to_ptr.vmem [resolvable:$false] %s2844_s30 }
  0x89   : > { %2351 = vmatpush3.bf16.msra.mxu0 %v2348_v3  ;;  %v2360_v14 = vpack.c.bf16 %v356_v11, %v355_v10  ;;  %v357_v15 = vld [vmem:[#allocation7 + $0x40] sm:$0xff]  ;;  %v2380_v16 = vpack.c.bf16 %v726_v13, %v725_v12  ;;  %v710_v18 = vld [vmem:[#allocation9 + $0x188] sm:$0xff]  ;;  %v727_v21 = vld [vmem:[#allocation9 + $0x210] sm:$0xff]  ;;  %s2846_s9 = scalar_lea.vmem %s2845_s30, 2048  ;;  %p2847_p12 = scmp.lt.s32.totalorder %s3377_s20, %s2845_s30 }
  0x8a   : > { %2353 = vmatprep.subr.bf16.mxu0 %v2352_v5  ;;  %v709_v17 = vld [vmem:[#allocation9 + $0x180] sm:$0xff]  ;;  %v358_v19 = vld [vmem:[#allocation7 + $0x48] sm:$0xff]  ;;  %v728_v22 = vld [vmem:[#allocation9 + $0x218] sm:$0xff] }
  0x8b   : > { %v2382_v20 = vpack.c.bf16 %v710_v18, %v709_v17  ;;  %2381 = vmatprep.subr.bf16.mxu1 %v2380_v16  ;;  %v2384_v23 = vpack.c.bf16 %v728_v22, %v727_v21  ;;  %v711_v24 = vld [vmem:[#allocation9 + $0x190] sm:$0xff]  ;;  %v712_v25 = vld [vmem:[#allocation9 + $0x198] sm:$0xff]  ;;  %v729_v27 = vld [vmem:[#allocation9 + $0x220] sm:$0xff]  ;;  %v2364_v29 = vpack.c.bf16 %v358_v19, %v357_v15 }
  0x8c   : > { %v2386_v26 = vpack.c.bf16 %v712_v25, %v711_v24  ;;  %v730_v28 = vld [vmem:[#allocation9 + $0x228] sm:$0xff]  ;;  %v359_v30 = vld [vmem:[#allocation7 + $0x50] sm:$0xff]  ;;  %v713_v32 = vld [vmem:[#allocation9 + $0x1a0] sm:$0xff] }
  0x8d   : > { %2355 = vmatpush3.bf16.msra.mxu0 %v2352_v5  ;;  %2383 = vmatpush3.bf16.msra.mxu1 %v2382_v20  ;;  %v2388_v31 = vpack.c.bf16 %v730_v28, %v729_v27  ;;  %v714_v33 = vld [vmem:[#allocation9 + $0x1a8] sm:$0xff]  ;;  %v360_v34 = vld [vmem:[#allocation7 + $0x58] sm:$0xff]  ;;  %v731_v35 = vld [vmem:[#allocation9 + $0x230] sm:$0xff] }
  0x8e   : > { %2357 = vmatprep.subr.bf16.mxu0 %v2356_v8  ;;  %2385 = vmatprep.subr.bf16.mxu1 %v2384_v23  ;;  %v732_v36 = vld [vmem:[#allocation9 + $0x238] sm:$0xff]  ;;  %v2390_v37 = vpack.c.bf16 %v714_v33, %v713_v32  ;;  %v2368_v38 = vpack.c.bf16 %v360_v34, %v359_v30  ;;  %v361_v39 = vld [vmem:[#allocation7 + $0x60] sm:$0xff]  ;;  %v715_v41 = vld [vmem:[#allocation9 + $0x1b0] sm:$0xff] }
  0x8f   : > { %v2392_v40 = vpack.c.bf16 %v732_v36, %v731_v35  ;;  %v716_v42 = vld [vmem:[#allocation9 + $0x1b8] sm:$0xff]  ;;  %v362_v43 = vld [vmem:[#allocation7 + $0x68] sm:$0xff]  ;;  %v733_v44 = vld [vmem:[#allocation9 + $0x240] sm:$0xff] }
  0x90   : > { %v734_v45 = vld [vmem:[#allocation9 + $0x248] sm:$0xff]  ;;  %v2394_v46 = vpack.c.bf16 %v716_v42, %v715_v41  ;;  %v2372_v47 = vpack.c.bf16 %v362_v43, %v361_v39  ;;  %v717_v49 = vld [vmem:[#allocation9 + $0x1c0] sm:$0xff]  ;;  %v363_v51 = vld [vmem:[#allocation7 + $0x70] sm:$0xff] }
  0x91   : > { %2359 = vmatpush3.bf16.msra.mxu0 %v2356_v8  ;;  %2387 = vmatpush3.bf16.msra.mxu1 %v2386_v26  ;;  %v2396_v48 = vpack.c.bf16 %v734_v45, %v733_v44  ;;  %v718_v50 = vld [vmem:[#allocation9 + $0x1c8] sm:$0xff]  ;;  %v364_v52 = vld [vmem:[#allocation7 + $0x78] sm:$0xff]  ;;  %v741_v55 = vld [vmem:[#allocation9 + $0x280] sm:$0xff] }
  0x92   : > { %2361 = vmatprep.subr.bf16.mxu0 %v2360_v14  ;;  %2389 = vmatprep.subr.bf16.mxu1 %v2388_v31  ;;  %v2398_v53 = vpack.c.bf16 %v718_v50, %v717_v49  ;;  %v2376_v54 = vpack.c.bf16 %v364_v52, %v363_v51  ;;  %v742_v56 = vld [vmem:[#allocation9 + $0x288] sm:$0xff]  ;;  %v743_v58 = vld [vmem:[#allocation9 + $0x290] sm:$0xff]  ;;  %v744_v59 = vld [vmem:[#allocation9 + $0x298] sm:$0xff]  ;;  %v2922_v31 = vmov 0.0  }
  0x93   : > { %v2412_v57 = vpack.c.bf16 %v742_v56, %v741_v55  ;;  %v342_v60 = vld [vmem:[%s3177_s8 + $0x8] sm:$0xff]  ;;  %v343_v61 = vld [vmem:[%s3177_s8 + $0x10] sm:$0xff]  ;;  %v2416_v62 = vpack.c.bf16 %v744_v59, %v743_v58  ;;  %v745_v63 = vld [vmem:[#allocation9 + $0x2a0] sm:$0xff]  ;;  %501 = vst [vmem:[#allocation2 + $0x28] sm:$0x1] %v2922_v31 }
  0x94   : > { %v746_v0 = vld [vmem:[#allocation9 + $0x2a8] sm:$0xff]  ;;  %v344_v1 = vld [vmem:[%s3177_s8 + $0x18] sm:$0xff]  ;;  %v345_v2 = vld [vmem:[%s3177_s8 + $0x20] sm:$0xff]  ;;  %485 = vst [vmem:[#allocation2] sm:$0xff] %v2922_v31 }
  0x95   : > { %2363 = vmatpush3.bf16.msra.mxu0 %v2360_v14  ;;  %2391 = vmatpush3.bf16.msra.mxu1 %v2390_v37  ;;  %v2420_v3 = vpack.c.bf16 %v746_v0, %v745_v63  ;;  %v747_v4 = vld [vmem:[#allocation9 + $0x2b0] sm:$0xff]  ;;  %v748_v5 = vld [vmem:[#allocation9 + $0x2b8] sm:$0xff]  ;;  %v346_v6 = vld [vmem:[%s3177_s8 + $0x28] sm:$0xff]  ;;  %486 = vst [vmem:[#allocation2 + $0x8] sm:$0xff] %v2922_v31 }
  0x96   : > { %2365 = vmatprep.subr.bf16.mxu0 %v2364_v29  ;;  %2393 = vmatprep.subr.bf16.mxu1 %v2392_v40  ;;  %v347_v7 = vld [vmem:[%s3177_s8 + $0x30] sm:$0xff]  ;;  %v2424_v8 = vpack.c.bf16 %v748_v5, %v747_v4  ;;  %v749_v9 = vld [vmem:[#allocation9 + $0x2c0] sm:$0xff]  ;;  %v750_v10 = vld [vmem:[#allocation9 + $0x2c8] sm:$0xff]  ;;  %487 = vst [vmem:[#allocation2 + $0x10] sm:$0xff] %v2922_v31 }
  0x97   : > { %v348_v11 = vld [vmem:[%s3177_s8 + $0x38] sm:$0xff]  ;;  %v2428_v12 = vpack.c.bf16 %v750_v10, %v749_v9  ;;  %v735_v13 = vld [vmem:[#allocation9 + $0x250] sm:$0xff]  ;;  %v737_v22 = vld [vmem:[#allocation9 + $0x260] sm:$0xff]  ;;  %489 = vst [vmem:[#allocation2 + $0xd8] sm:$0xff] %v2922_v31 }
  0x98   : > { %v736_v14 = vld [vmem:[#allocation9 + $0x258] sm:$0xff]  ;;  %v751_v15 = vld [vmem:[#allocation9 + $0x2d0] sm:$0xff]  ;;  %v738_v23 = vld [vmem:[#allocation9 + $0x268] sm:$0xff]  ;;  %490 = vst [vmem:[#allocation2 + $0xe0] sm:$0xff] %v2922_v31 }
  0x99   : > { %2367 = vmatpush3.bf16.msra.mxu0 %v2364_v29  ;;  %2395 = vmatpush3.bf16.msra.mxu1 %v2394_v46  ;;  %v2400_v16 = vpack.c.bf16 %v736_v14, %v735_v13  ;;  %v752_v17 = vld [vmem:[#allocation9 + $0x2d8] sm:$0xff]  ;;  %v719_v18 = vld [vmem:[#allocation9 + $0x1d0] sm:$0xff]  ;;  %v753_v24 = vld [vmem:[#allocation9 + $0x2e0] sm:$0xff]  ;;  %v2404_v25 = vpack.c.bf16 %v738_v23, %v737_v22  ;;  %491 = vst [vmem:[#allocation2 + $0xe8] sm:$0xff] %v2922_v31 }
  0x9a   : > { %2369 = vmatprep.subr.bf16.mxu0 %v2368_v38  ;;  %2397 = vmatprep.subr.bf16.mxu1 %v2396_v48  ;;  %v2432_v19 = vpack.c.bf16 %v752_v17, %v751_v15  ;;  %v720_v20 = vld [vmem:[#allocation9 + $0x1d8] sm:$0xff]  ;;  %v754_v26 = vld [vmem:[#allocation9 + $0x2e8] sm:$0xff]  ;;  %v721_v27 = vld [vmem:[#allocation9 + $0x1e0] sm:$0xff]  ;;  %493 = vst [vmem:[#allocation2 + $0x1f] sm:$0x1] %v2922_v31 }
  0x9b   : > { %v2402_v21 = vpack.c.bf16 %v720_v20, %v719_v18  ;;  %v722_v28 = vld [vmem:[#allocation9 + $0x1e8] sm:$0xff]  ;;  %v2436_v29 = vpack.c.bf16 %v754_v26, %v753_v24  ;;  %494 = vst [vmem:[#allocation2 + $0x37] sm:$0x1] %v2922_v31  ;;  %495 = vst [vmem:[#allocation2 + $0x4f] sm:$0x1] %v2922_v31  ;;  %v739_v32 = vld [vmem:[#allocation9 + $0x270] sm:$0xff] }
  0x9c   : > { %v2406_v30 = vpack.c.bf16 %v722_v28, %v721_v27  ;;  %496 = vst [vmem:[#allocation2 + $0x67] sm:$0x1] %v2922_v31  ;;  %497 = vst [vmem:[#allocation2 + $0x7f] sm:$0x1] %v2922_v31  ;;  %v740_v33 = vld [vmem:[#allocation9 + $0x278] sm:$0xff]  ;;  %v755_v34 = vld [vmem:[#allocation9 + $0x2f0] sm:$0xff] }
  0x9d   : > { %2371 = vmatpush3.bf16.msra.mxu0 %v2368_v38  ;;  %2399 = vmatpush3.bf16.msra.mxu1 %v2398_v53  ;;  %498 = vst [vmem:[#allocation2 + $0x97] sm:$0x1] %v2922_v31  ;;  %499 = vst [vmem:[#allocation2 + $0xaf] sm:$0x1] %v2922_v31  ;;  %v2408_v35 = vpack.c.bf16 %v740_v33, %v739_v32  ;;  %v756_v36 = vld [vmem:[#allocation9 + $0x2f8] sm:$0xff]  ;;  %v723_v37 = vld [vmem:[#allocation9 + $0x1f0] sm:$0xff] }
  0x9e   : > { %2373 = vmatprep.subr.bf16.mxu0 %v2372_v47  ;;  %2401 = vmatprep.subr.bf16.mxu1 %v2400_v16  ;;  %500 = vst [vmem:[#allocation2 + $0xc7] sm:$0x1] %v2922_v31  ;;  %502 = vst [vmem:[#allocation2 + $0x40] sm:$0x1] %v2922_v31  ;;  %v724_v38 = vld [vmem:[#allocation9 + $0x1f8] sm:$0xff]  ;;  %v2440_v39 = vpack.c.bf16 %v756_v36, %v755_v34  ;;  %v605_v41 = vld [vmem:[#allocation9 + $0x80] sm:$0xff] }
  0x9f   : > { %503 = vst [vmem:[#allocation2 + $0x58] sm:$0x1] %v2922_v31  ;;  %504 = vst [vmem:[#allocation2 + $0x70] sm:$0x1] %v2922_v31  ;;  %v2410_v40 = vpack.c.bf16 %v724_v38, %v723_v37  ;;  %v606_v42 = vld [vmem:[#allocation9 + $0x88] sm:$0xff]  ;;  %v621_v43 = vld [vmem:[#allocation9 + $0x100] sm:$0xff] }
  0xa0   : > { %505 = vst [vmem:[#allocation2 + $0x88] sm:$0x1] %v2922_v31  ;;  %506 = vst [vmem:[#allocation2 + $0xa0] sm:$0x1] %v2922_v31  ;;  %v2444_v44 = vpack.c.bf16 %v606_v42, %v605_v41  ;;  %v622_v45 = vld [vmem:[#allocation9 + $0x108] sm:$0xff]  ;;  %v623_v4 = vld [vmem:[#allocation9 + $0x110] sm:$0xff] }
  0xa1   : > { %2375 = vmatpush3.bf16.msra.mxu0 %v2372_v47  ;;  %2403 = vmatpush3.bf16.msra.mxu1 %v2402_v21  ;;  %507 = vst [vmem:[#allocation2 + $0xb8] sm:$0x1] %v2922_v31  ;;  %508 = vst [vmem:[#allocation2 + $0xd0] sm:$0x1] %v2922_v31  ;;  %v2476_v46 = vpack.c.bf16 %v622_v45, %v621_v43  ;;  %v1830_v47 = vld [vmem:[%s3430_s2] ss:$0 sm:$0xff] }
  0xa2   : > { %2377 = vmatprep.subr.bf16.mxu0 %v2376_v54  ;;  %2405 = vmatprep.subr.bf16.mxu1 %v2404_v25  ;;  %v624_v5 = vld [vmem:[#allocation9 + $0x118] sm:$0xff]  ;;  %v591_v9 = vld [vmem:[#allocation9 + $0x10] sm:$0xff]  ;;  %v610_v18 = vld [vmem:[#allocation9 + $0xa8] sm:$0xff] }
  0xa3   : > { %v592_v10 = vld [vmem:[#allocation9 + $0x18] sm:$0xff]  ;;  %v2480_v16 = vpack.c.bf16 %v624_v5, %v623_v4  ;;  %v625_v21 = vld [vmem:[#allocation9 + $0x120] sm:$0xff]  ;;  %v626_v22 = vld [vmem:[#allocation9 + $0x128] sm:$0xff] }
  0xa4   : > { %v2450_v24 = vpack.c.bf16 %v592_v10, %v591_v9  ;;  %v593_v28 = vld [vmem:[#allocation9 + $0x20] sm:$0xff]  ;;  %v2484_v34 = vpack.c.bf16 %v626_v22, %v625_v21  ;;  %v627_v37 = vld [vmem:[#allocation9 + $0x130] sm:$0xff]  ;;  %v628_v38 = vld [vmem:[#allocation9 + $0x138] sm:$0xff] }
  0xa5   : > { %2379 = vmatpush3.bf16.msra.mxu0 %v2376_v54  ;;  %2407 = vmatpush3.bf16.msra.mxu1 %v2406_v30  ;;  %v611_v30 = vld [vmem:[#allocation9 + $0xb0] sm:$0xff]  ;;  %v596_v43 = vld [vmem:[#allocation9 + $0x38] sm:$0xff]  ;;  %v601_v21 = vld [vmem:[#allocation9 + $0x60] sm:$0xff] }
  0xa6   : > { %2413 = vmatprep.subr.bf16.mxu0 %v2412_v57  ;;  %2409 = vmatprep.subr.bf16.mxu1 %v2408_v35  ;;  %v612_v35 = vld [vmem:[#allocation9 + $0xb8] sm:$0xff]  ;;  %v595_v42 = vld [vmem:[#allocation9 + $0x30] sm:$0xff]  ;;  %v602_v22 = vld [vmem:[#allocation9 + $0x68] sm:$0xff] }
  0xa7   : > { %v2456_v41 = vpack.c.bf16 %v612_v35, %v611_v30  ;;  %v549_v5 = vld [vmem:[#allocation2 + $0x9] sm:$0xff]  ;;  %v599_v9 = vld [vmem:[#allocation9 + $0x50] sm:$0xff]  ;;  %v2470_v35 = vpack.c.bf16 %v602_v22, %v601_v21 }
  0xa8   : > { %2161 = vmatmul.mubr.f32.vlgmr.msra.gmra.mrb[0].mxu0 %v342_v60  ;;  %v600_v10 = vld [vmem:[#allocation9 + $0x58] sm:$0xff]  ;;  %v1272_v22 = vld [vmem:[#allocation9 + $0x3b0] sm:$0xff] }
  0xa9   : > { %2163 = vmatprep.mubr.f32.mxu0 %v343_v61  ;;  %2415 = vmatpush3.bf16.msra.mxu0 %v2412_v57  ;;  %v589_v61 = vld [vmem:[#allocation9] sm:$0xff]  ;;  %v636_v30 = vld [vmem:[#allocation9 + $0x178] sm:$0xff] }
  0xaa   : > { %2417 = vmatprep.subr.bf16.mxu0 %v2416_v62  ;;  %2411 = vmatpush3.bf16.msra.mxu1 %v2410_v40 }
  0xab   : > { %2445 = vmatprep.subr.bf16.mxu1 %v2444_v44  ;;  %v2488_v44 = vpack.c.bf16 %v628_v38, %v627_v37  ;;  %v603_v38 = vld [vmem:[#allocation9 + $0x70] sm:$0xff] }
  0xac   : > { %2164 = vmatmul.mubr.f32.gmra.mrb[2].mxu0 %v344_v1  ;;  %v607_v1 = vld [vmem:[#allocation9 + $0x90] sm:$0xff] }
  0xad   : > { %2166 = vmatprep.mubr.f32.mxu0 %v345_v2  ;;  %2419 = vmatpush3.bf16.msra.mxu0 %v2416_v62  ;;  %v590_v62 = vld [vmem:[#allocation9 + $0x8] sm:$0xff] }
  0xae   : > { %2421 = vmatprep.subr.bf16.mxu0 %v2420_v3 }
  0xb0   : > { %2167 = vmatmul.mubr.f32.gmra.mrb[4].mxu0 %v346_v6 }
  0xb1   : > { %2169 = vmatprep.mubr.f32.mxu0 %v347_v7  ;;  %2423 = vmatpush3.bf16.msra.mxu0 %v2420_v3  ;;  %v608_v3 = vld [vmem:[#allocation9 + $0x98] sm:$0xff]  ;;  %v2446_v7 = vpack.c.bf16 %v590_v62, %v589_v61 }
  0xb2   : > { %2425 = vmatprep.subr.bf16.mxu0 %v2424_v8  ;;  %v2448_v15 = vpack.c.bf16 %v608_v3, %v607_v1  ;;  %v616_v62 = vld [vmem:[#allocation9 + $0xd8] sm:$0xff] }
  0xb3   : > { %v632_v1 = vld [vmem:[#allocation9 + $0x158] sm:$0xff] }
  0xb4   : > { %2170 = vmatmul.mubr.f32.gmra.mrb[6].mxu0 %v348_v11 }
  0xb5   : > { %2427 = vmatpush3.bf16.msra.mxu0 %v2424_v8 }
  0xb6   : > { %2429 = vmatprep.subr.bf16.mxu0 %v2428_v12 }
  0xb9   : > { %2431 = vmatpush3.bf16.msra.mxu0 %v2428_v12  ;;  %v609_v12 = vld [vmem:[#allocation9 + $0xa0] sm:$0xff] }
  0xba   : > { %2433 = vmatprep.subr.bf16.mxu0 %v2432_v19  ;;  %v2452_v26 = vpack.c.bf16 %v610_v18, %v609_v12  ;;  %v617_v12 = vld [vmem:[#allocation9 + $0xe0] sm:$0xff]  ;;  %v2466_v18 = vpack.c.bf16 %v600_v10, %v599_v9 }
  0xbb   : > { %v1270_v10 = vld [vmem:[#allocation9 + $0x3a0] sm:$0xff] }
  0xbd   : > { %2435 = vmatpush3.bf16.msra.mxu0 %v2432_v19 }
  0xbe   : > { %2437 = vmatprep.subr.bf16.mxu0 %v2436_v29 }
  0xc1   : > { %2439 = vmatpush3.bf16.msra.mxu0 %v2436_v29  ;;  %v594_v29 = vld [vmem:[#allocation9 + $0x28] sm:$0xff] }
  0xc2   : > { %2441 = vmatprep.subr.bf16.mxu0 %v2440_v39  ;;  %v2454_v40 = vpack.c.bf16 %v594_v29, %v593_v28  ;;  %v620_v28 = vld [vmem:[#allocation9 + $0xf8] sm:$0xff]  ;;  %v635_v29 = vld [vmem:[#allocation9 + $0x170] sm:$0xff] }
  0xc5   : > { %2443 = vmatpush3.bf16.msra.mxu0 %v2440_v39 }
  0xc6   : > { %2477 = vmatprep.subr.bf16.mxu0 %v2476_v46 }
 0x17b   : > { %v2162_v48 = vpop.f32.mrb[0].mxu0 }
 0x17c   : > { %v444_v49 = vadd.f32 %v2162_v48, %v1830_v47  ;;  %v438_v50 = vpop.f32.mrb[1].mxu0 }
 0x17d   : > { %v439_v51 = vadd.f32 %v1830_v47, %v438_v50  ;;  %v630_v50 = vld [vmem:[#allocation9 + $0x148] sm:$0xff] }
 0x17e   : > { %v3224_v52 = vmax.f32 %v444_v49, 0.0  ;;  %v629_v49 = vld [vmem:[#allocation9 + $0x140] sm:$0xff] }
 0x17f   : > { %v3226_v53 = vmax.f32 %v439_v51, 0.0  ;;  %v2165_v54 = vpop.f32.mrb[2].mxu0  ;;  %v2458_v51 = vpack.c.bf16 %v596_v43, %v595_v42  ;;  %v2492_v61 = vpack.c.bf16 %v630_v50, %v629_v49  ;;  %v1266_v42 = vld [vmem:[#allocation9 + $0x380] sm:$0xff]  ;;  %v1267_v43 = vld [vmem:[#allocation9 + $0x388] sm:$0xff] }
 0x180   : > { %510 = vst [vmem:[#allocation2 + $0x38] sm:$0xff] %v3224_v52  ;;  %v454_v55 = vadd.f32 %v2165_v54, %v1830_v47  ;;  %v448_v56 = vpop.f32.mrb[3].mxu0  ;;  %v2508_v49 = vpack.c.bf16 %v1267_v43, %v1266_v42  ;;  %v1250_v50 = vld [vmem:[#allocation9 + $0x300] sm:$0xff]  ;;  %v1259_v43 = vld [vmem:[#allocation9 + $0x348] sm:$0xff] }
 0x181   : > { %509 = vst [vmem:[#allocation2 + $0x20] sm:$0xff] %v3226_v53  ;;  %v449_v57 = vadd.f32 %v1830_v47, %v448_v56  ;;  %821 = vmatprep.mubr.f32.mxu1 %v3226_v53  ;;  %v598_v56 = vld [vmem:[#allocation9 + $0x48] sm:$0xff]  ;;  %v1258_v42 = vld [vmem:[#allocation9 + $0x340] sm:$0xff] }
 0x182   : > { %v3231_v58 = vmax.f32 %v454_v55, 0.0  ;;  %v597_v55 = vld [vmem:[#allocation9 + $0x40] sm:$0xff] }
 0x183   : > { %v3233_v59 = vmax.f32 %v449_v57, 0.0  ;;  %v2168_v60 = vpop.f32.mrb[4].mxu0  ;;  %v615_v57 = vld [vmem:[#allocation9 + $0xd0] sm:$0xff]  ;;  %v2462_v4 = vpack.c.bf16 %v598_v56, %v597_v55 }
 0x184   : > { %512 = vst [vmem:[#allocation2 + $0x68] sm:$0xff] %v3231_v58  ;;  %v464_v63 = vadd.f32 %v2168_v60, %v1830_v47  ;;  %v458_v0 = vpop.f32.mrb[5].mxu0  ;;  %v1268_v56 = vld [vmem:[#allocation9 + $0x390] sm:$0xff] }
 0x185   : > { %511 = vst [vmem:[#allocation2 + $0x50] sm:$0xff] %v3233_v59  ;;  %v459_v2 = vadd.f32 %v1830_v47, %v458_v0  ;;  %v631_v0 = vld [vmem:[#allocation9 + $0x150] sm:$0xff] }
 0x186   : > { %v3237_v6 = vmax.f32 %v464_v63, 0.0 }
 0x187   : > { %v3239_v8 = vmax.f32 %v459_v2, 0.0  ;;  %v2171_v11 = vpop.f32.mrb[6].mxu0  ;;  %v3249_v20 = vld [vmem:[#allocation2 + $0x39] sm:$0xff] }
 0x188   : > { %514 = vst [vmem:[#allocation2 + $0x98] sm:$0xff] %v3237_v6  ;;  %v3242_v13 = vld [vmem:[#allocation2 + $0x21] sm:$0xff]  ;;  %v474_v17 = vadd.f32 %v2171_v11, %v1830_v47  ;;  %v468_v19 = vpop.f32.mrb[7].mxu0  ;;  %v3257_v32 = vld [vmem:[#allocation2 + $0x37] sm:$0xff]  ;;  %v2496_v11 = vpack.c.bf16 %v632_v1, %v631_v0 }
 0x189   : > { %v3244_v14 = vld [vmem:[#allocation2 + $0x1f] sm:$0xff]  ;;  %2204 = vmatprep.mubr.f32.mxu0 %v3242_v13  ;;  %513 = vst [vmem:[#allocation2 + $0x80] sm:$0xff] %v3239_v8  ;;  %v469_v23 = vadd.f32 %v1830_v47, %v468_v19  ;;  %v1285_v1 = vld [vmem:[#allocation9 + $0x418] sm:$0xff] }
 0x18a   : > { %822 = vmatmul.mubr.f32.vlgmr.msra.gmra.mrb[0].mxu1 %v3244_v14  ;;  %2205 = vmatmul.mubr.f32.vlgmr.msra.gmra.mrb[8].mxu0 %v3249_v20  ;;  %v3252_v25 = vmax.f32 %v474_v17, 0.0  ;;  %v614_v47 = vld [vmem:[#allocation9 + $0xc8] sm:$0xff]  ;;  %v1284_v0 = vld [vmem:[#allocation9 + $0x410] sm:$0xff] }
 0x18b   : > { %2447 = vmatpush3.bf16.msra.mxu1 %v2446_v7  ;;  %2479 = vmatpush3.bf16.msra.mxu0 %v2476_v46  ;;  %v3255_v27 = vmax.f32 %v469_v23, 0.0  ;;  %v3264_v36 = vld [vmem:[#allocation2 + $0x69] sm:$0xff]  ;;  %v2464_v7 = vpack.c.bf16 %v616_v62, %v615_v57  ;;  %v634_v17 = vld [vmem:[#allocation9 + $0x168] sm:$0xff]  ;;  %v2544_v9 = vpack.c.bf16 %v1285_v1, %v1284_v0 }
 0x18c   : > { %826 = vmatprep.mubr.f32.mxu1 %v3224_v52  ;;  %2449 = vmatprep.subr.bf16.mxu1 %v2448_v15  ;;  %v3259_v33 = vld [vmem:[#allocation2 + $0x51] sm:$0xff]  ;;  %516 = vst [vmem:[#allocation2 + $0xc8] sm:$0xff] %v3252_v25  ;;  %v3278_v60 = vld [vmem:[#allocation2 + $0x67] sm:$0xff] }
 0x18d   : > { %2481 = vmatprep.subr.bf16.mxu0 %v2480_v16  ;;  %2207 = vmatprep.mubr.f32.mxu0 %v3259_v33  ;;  %515 = vst [vmem:[#allocation2 + $0xb0] sm:$0xff] %v3255_v27  ;;  %v3268_v39 = vld [vmem:[#allocation2 + $0x4f] sm:$0xff]  ;;  %v618_v15 = vld [vmem:[#allocation9 + $0xe8] sm:$0xff] }
 0x18e   : > { %827 = vmatmul.mubr.f32.gmra.mrb[2].mxu1 %v3257_v32  ;;  %2208 = vmatmul.mubr.f32.gmra.mrb[10].mxu0 %v3264_v36  ;;  %v613_v46 = vld [vmem:[#allocation9 + $0xc0] sm:$0xff]  ;;  %v2468_v19 = vpack.c.bf16 %v618_v15, %v617_v12  ;;  %v1269_v57 = vld [vmem:[#allocation9 + $0x398] sm:$0xff]  ;;  %v1279_v1 = vld [vmem:[#allocation9 + $0x3e8] sm:$0xff] }
 0x18f   : > { %2451 = vmatpush3.bf16.msra.mxu1 %v2450_v24  ;;  %831 = vmatprep.mubr.f32.mxu1 %v3233_v59  ;;  %v3275_v48 = vld [vmem:[#allocation2 + $0x99] sm:$0xff]  ;;  %v2460_v54 = vpack.c.bf16 %v614_v47, %v613_v46  ;;  %v1286_v15 = vld [vmem:[#allocation9 + $0x420] sm:$0xff] }
 0x190   : > { %2483 = vmatpush3.bf16.msra.mxu0 %v2480_v16  ;;  %2453 = vmatprep.subr.bf16.mxu1 %v2452_v26  ;;  %v3271_v45 = vld [vmem:[#allocation2 + $0x81] sm:$0xff]  ;;  %v633_v16 = vld [vmem:[#allocation9 + $0x160] sm:$0xff]  ;;  %v1283_v46 = vld [vmem:[#allocation9 + $0x408] sm:$0xff] }
 0x191   : > { %2485 = vmatprep.subr.bf16.mxu0 %v2484_v34  ;;  %2210 = vmatprep.mubr.f32.mxu0 %v3271_v45  ;;  %v3288_v3 = vld [vmem:[#allocation2 + $0x7f] sm:$0xff]  ;;  %v3293_v23 = vld [vmem:[#allocation2 + $0x97] sm:$0xff]  ;;  %v2500_v24 = vpack.c.bf16 %v634_v17, %v633_v16 }
 0x192   : > { %832 = vmatmul.mubr.f32.gmra.mrb[4].mxu1 %v3268_v39  ;;  %2211 = vmatmul.mubr.f32.gmra.mrb[12].mxu0 %v3275_v48  ;;  %v619_v26 = vld [vmem:[#allocation9 + $0xf0] sm:$0xff]  ;;  %v1287_v16 = vld [vmem:[#allocation9 + $0x428] sm:$0xff]  ;;  %v1254_v17 = vld [vmem:[#allocation9 + $0x320] sm:$0xff] }
 0x193   : > { %2455 = vmatpush3.bf16.msra.mxu1 %v2454_v40  ;;  %836 = vmatprep.mubr.f32.mxu1 %v3231_v58  ;;  %v3285_v2 = vld [vmem:[#allocation2 + $0xc9] sm:$0xff]  ;;  %v2472_v37 = vpack.c.bf16 %v620_v28, %v619_v26  ;;  %v2548_v21 = vpack.c.bf16 %v1287_v16, %v1286_v15  ;;  %v1288_v26 = vld [vmem:[#allocation9 + $0x430] sm:$0xff] }
 0x194   : > { %2487 = vmatpush3.bf16.msra.mxu0 %v2484_v34  ;;  %2457 = vmatprep.subr.bf16.mxu1 %v2456_v41  ;;  %v3281_v63 = vld [vmem:[#allocation2 + $0xb1] sm:$0xff]  ;;  %v604_v40 = vld [vmem:[#allocation9 + $0x78] sm:$0xff]  ;;  %v2504_v41 = vpack.c.bf16 %v636_v30, %v635_v29  ;;  %v1256_v29 = vld [vmem:[#allocation9 + $0x330] sm:$0xff] }
 0x195   : > { %2489 = vmatprep.subr.bf16.mxu0 %v2488_v44  ;;  %2213 = vmatprep.mubr.f32.mxu0 %v3281_v63  ;;  %v3297_v34 = vld [vmem:[#allocation2 + $0xaf] sm:$0xff]  ;;  %v2474_v47 = vpack.c.bf16 %v604_v40, %v603_v38  ;;  %v1296_v16 = vld [vmem:[#allocation9 + $0x470] sm:$0xff] }
 0x196   : > { %837 = vmatmul.mubr.f32.gmra.mrb[6].mxu1 %v3278_v60  ;;  %2214 = vmatmul.mubr.f32.gmra.mrb[14].mxu0 %v3285_v2  ;;  %v1289_v28 = vld [vmem:[#allocation9 + $0x438] sm:$0xff]  ;;  %v1290_v40 = vld [vmem:[#allocation9 + $0x440] sm:$0xff] }
 0x197   : > { %2459 = vmatpush3.bf16.msra.mxu1 %v2458_v51  ;;  %841 = vmatprep.mubr.f32.mxu1 %v3239_v8  ;;  %v1251_v51 = vld [vmem:[#allocation9 + $0x308] sm:$0xff]  ;;  %v1257_v30 = vld [vmem:[#allocation9 + $0x338] sm:$0xff]  ;;  %v1278_v0 = vld [vmem:[#allocation9 + $0x3e0] sm:$0xff] }
 0x198   : > { %2491 = vmatpush3.bf16.msra.mxu0 %v2488_v44  ;;  %2461 = vmatprep.subr.bf16.mxu1 %v2460_v54  ;;  %v1282_v44 = vld [vmem:[#allocation9 + $0x400] sm:$0xff]  ;;  %v3301_v54 = vld [vmem:[#allocation2 + $0xc7] sm:$0xff]  ;;  %v2510_v62 = vpack.c.bf16 %v1251_v51, %v1250_v50  ;;  %v2522_v38 = vpack.c.bf16 %v1257_v30, %v1256_v29 }
 0x199   : > { %2493 = vmatprep.subr.bf16.mxu0 %v2492_v61  ;;  %2248 = vmatprep.mubr.f32.mxu0 %v549_v5  ;;  %v2540_v55 = vpack.c.bf16 %v1283_v46, %v1282_v44  ;;  %v1253_v5 = vld [vmem:[#allocation9 + $0x318] sm:$0xff]  ;;  %v1276_v46 = vld [vmem:[#allocation9 + $0x3d0] sm:$0xff] }
 0x19a   : > { %842 = vmatmul.mubr.f32.gmra.mrb[8].mxu1 %v3288_v3  ;;  %v1292_v50 = vld [vmem:[#allocation9 + $0x450] sm:$0xff]  ;;  %v1293_v51 = vld [vmem:[#allocation9 + $0x458] sm:$0xff] }
 0x19b   : > { %2463 = vmatpush3.bf16.msra.mxu1 %v2462_v4  ;;  %846 = vmatprep.mubr.f32.mxu1 %v3237_v6  ;;  %v1252_v4 = vld [vmem:[#allocation9 + $0x310] sm:$0xff]  ;;  %v1281_v15 = vld [vmem:[#allocation9 + $0x3f8] sm:$0xff] }
 0x19c   : > { %2495 = vmatpush3.bf16.msra.mxu0 %v2492_v61  ;;  %2465 = vmatprep.subr.bf16.mxu1 %v2464_v7  ;;  %v517_v61 = vld [vmem:[#allocation2 + $0x7] sm:$0xff]  ;;  %v2512_v7 = vpack.c.bf16 %v1269_v57, %v1268_v56  ;;  %v2514_v12 = vpack.c.bf16 %v1253_v5, %v1252_v4  ;;  %v1294_v4 = vld [vmem:[#allocation9 + $0x460] sm:$0xff]  ;;  %v1295_v5 = vld [vmem:[#allocation9 + $0x468] sm:$0xff] }
 0x19d   : > { %2497 = vmatprep.subr.bf16.mxu0 %v2496_v11  ;;  %v1260_v57 = vld [vmem:[#allocation9 + $0x350] sm:$0xff]  ;;  %v1554_v30 = vld [vmem:[#allocation10 + $0x78] sm:$0xff] }
 0x19e   : > { %847 = vmatmul.mubr.f32.gmra.mrb[10].mxu1 %v3293_v23  ;;  %v1553_v29 = vld [vmem:[#allocation10 + $0x70] sm:$0xff] }
 0x19f   : > { %2467 = vmatpush3.bf16.msra.mxu1 %v2466_v18  ;;  %851 = vmatprep.mubr.f32.mxu1 %v3255_v27  ;;  %v1255_v18 = vld [vmem:[#allocation9 + $0x328] sm:$0xff] }
 0x1a0   : > { %2499 = vmatpush3.bf16.msra.mxu0 %v2496_v11  ;;  %2469 = vmatprep.subr.bf16.mxu1 %v2468_v19  ;;  %v1271_v11 = vld [vmem:[#allocation9 + $0x3a8] sm:$0xff] }
 0x1a1   : > { %2501 = vmatprep.subr.bf16.mxu0 %v2500_v24  ;;  %v2516_v19 = vpack.c.bf16 %v1271_v11, %v1270_v10  ;;  %v1263_v10 = vld [vmem:[#allocation9 + $0x368] sm:$0xff]  ;;  %v2564_v11 = vpack.c.bf16 %v1295_v5, %v1294_v4 }
 0x1a2   : > { %852 = vmatmul.mubr.f32.gmra.mrb[12].mxu1 %v3297_v34 }
 0x1a3   : > { %2471 = vmatpush3.bf16.msra.mxu1 %v2470_v35  ;;  %856 = vmatprep.mubr.f32.mxu1 %v3252_v25  ;;  %v1274_v35 = vld [vmem:[#allocation9 + $0x3c0] sm:$0xff] }
 0x1a4   : > { %2503 = vmatpush3.bf16.msra.mxu0 %v2500_v24  ;;  %2473 = vmatprep.subr.bf16.mxu1 %v2472_v37  ;;  %v1273_v24 = vld [vmem:[#allocation9 + $0x3b8] sm:$0xff]  ;;  %v1275_v37 = vld [vmem:[#allocation9 + $0x3c8] sm:$0xff] }
 0x1a5   : > { %2505 = vmatprep.subr.bf16.mxu0 %v2504_v41  ;;  %v2524_v44 = vpack.c.bf16 %v1275_v37, %v1274_v35 }
 0x1a6   : > { %857 = vmatmul.mubr.f32.gmra.mrb[14].mxu1 %v3301_v54 }
 0x1a7   : > { %2475 = vmatpush3.bf16.msra.mxu1 %v2474_v47  ;;  %1031 = vmatprep.mubr.f32.mxu1 %v2922_v31  ;;  %v1277_v47 = vld [vmem:[#allocation9 + $0x3d8] sm:$0xff] }
 0x1a8   : > { %2507 = vmatpush3.bf16.msra.mxu0 %v2504_v41  ;;  %2509 = vmatprep.subr.bf16.mxu1 %v2508_v49  ;;  %v1291_v41 = vld [vmem:[#allocation9 + $0x448] sm:$0xff]  ;;  %v2528_v56 = vpack.c.bf16 %v1277_v47, %v1276_v46 }
 0x1a9   : > { %2541 = vmatprep.subr.bf16.mxu0 %v2540_v55  ;;  %v2556_v49 = vpack.c.bf16 %v1291_v41, %v1290_v40 }
 0x1aa   : > { %1032 = vmatmul.mubr.f32.vlgmr.msra.gmra.mrb[16].mxu1 %v517_v61  ;;  %v1261_v61 = vld [vmem:[#allocation9 + $0x358] sm:$0xff] }
 0x1ab   : > { %2249 = vmatmul.mubr.f32.vlgmr.msra.gmra.mrb[8].mxu0 %v3242_v13  ;;  %2511 = vmatpush3.bf16.msra.mxu1 %v2510_v62  ;;  %v2518_v13 = vpack.c.bf16 %v1255_v18, %v1254_v17  ;;  %v2560_v62 = vpack.c.bf16 %v1293_v51, %v1292_v50  ;;  %v1297_v17 = vld [vmem:[#allocation9 + $0x478] sm:$0xff] }
 0x1ac   : > { %2251 = vmatprep.mubr.f32.mxu0 %v3249_v20  ;;  %2543 = vmatpush3.bf16.msra.mxu0 %v2540_v55  ;;  %v2526_v55 = vpack.c.bf16 %v1259_v43, %v1258_v42 }
 0x1ad   : > { %1036 = vmatprep.mubr.f32.mxu1 %v3226_v53  ;;  %2513 = vmatprep.subr.bf16.mxu1 %v2512_v7  ;;  %v2520_v53 = vpack.c.bf16 %v1273_v24, %v1272_v22  ;;  %v2530_v7 = vpack.c.bf16 %v1261_v61, %v1260_v57  ;;  %v1265_v22 = vld [vmem:[#allocation9 + $0x378] sm:$0xff]  ;;  %v2568_v24 = vpack.c.bf16 %v1297_v17, %v1296_v16 }
 0x1ae   : > { %2545 = vmatprep.subr.bf16.mxu0 %v2544_v9  ;;  %1037 = vmatmul.mubr.f32.gmra.mrb[18].mxu1 %v3244_v14  ;;  %v2552_v14 = vpack.c.bf16 %v1289_v28, %v1288_v26  ;;  %v1552_v26 = vld [vmem:[#allocation10 + $0x68] sm:$0xff] }
 0x1af   : > { %2252 = vmatmul.mubr.f32.gmra.mrb[10].mxu0 %v3259_v33  ;;  %2515 = vmatpush3.bf16.msra.mxu1 %v2514_v12  ;;  %v1280_v12 = vld [vmem:[#allocation9 + $0x3f0] sm:$0xff] }
 0x1b0   : > { %2254 = vmatprep.mubr.f32.mxu0 %v3264_v36  ;;  %2547 = vmatpush3.bf16.msra.mxu0 %v2544_v9  ;;  %v1262_v9 = vld [vmem:[#allocation9 + $0x360] sm:$0xff] }
 0x1b1   : > { %1041 = vmatprep.mubr.f32.mxu1 %v3224_v52  ;;  %2517 = vmatprep.subr.bf16.mxu1 %v2516_v19  ;;  %v2534_v18 = vpack.c.bf16 %v1263_v10, %v1262_v9  ;;  %v2536_v19 = vpack.c.bf16 %v1281_v15, %v1280_v12 }
 0x1b2   : > { %2549 = vmatprep.subr.bf16.mxu0 %v2548_v21  ;;  %1042 = vmatmul.mubr.f32.gmra.mrb[20].mxu1 %v3257_v32 }
 0x1b3   : > { %2255 = vmatmul.mubr.f32.gmra.mrb[12].mxu0 %v3271_v45  ;;  %2519 = vmatpush3.bf16.msra.mxu1 %v2518_v13 }
 0x1b4   : > { %2257 = vmatprep.mubr.f32.mxu0 %v3275_v48  ;;  %2551 = vmatpush3.bf16.msra.mxu0 %v2548_v21  ;;  %v1264_v21 = vld [vmem:[#allocation9 + $0x370] sm:$0xff] }
 0x1b5   : > { %1046 = vmatprep.mubr.f32.mxu1 %v3233_v59  ;;  %2521 = vmatprep.subr.bf16.mxu1 %v2520_v53  ;;  %v2538_v13 = vpack.c.bf16 %v1265_v22, %v1264_v21  ;;  %v2600_v53 = vpack.c.bf16 %v1554_v30, %v1553_v29 }
 0x1b6   : > { %2553 = vmatprep.subr.bf16.mxu0 %v2552_v14  ;;  %1047 = vmatmul.mubr.f32.gmra.mrb[22].mxu1 %v3268_v39 }
 0x1b7   : > { %2258 = vmatmul.mubr.f32.gmra.mrb[14].mxu0 %v3281_v63  ;;  %2523 = vmatpush3.bf16.msra.mxu1 %v2522_v38 }
 0x1b8   : > { %2555 = vmatpush3.bf16.msra.mxu0 %v2552_v14  ;;  %2292 = vmatprep.mubr.f32.mxu0 %v3249_v20  ;;  %v2532_v20 = vpack.c.bf16 %v1279_v1, %v1278_v0 }
 0x1b9   : > { %1051 = vmatprep.mubr.f32.mxu1 %v3231_v58  ;;  %2525 = vmatprep.subr.bf16.mxu1 %v2524_v44 }
 0x1ba   : > { %2557 = vmatprep.subr.bf16.mxu0 %v2556_v49  ;;  %1052 = vmatmul.mubr.f32.gmra.mrb[24].mxu1 %v3278_v60 }
 0x1bb   : > { %2527 = vmatpush3.bf16.msra.mxu1 %v2526_v55  ;;  %1056 = vmatprep.mubr.f32.mxu1 %v3239_v8 }
 0x1bc   : > { %2559 = vmatpush3.bf16.msra.mxu0 %v2556_v49  ;;  %2529 = vmatprep.subr.bf16.mxu1 %v2528_v56 }
 0x1bd   : > { %2561 = vmatprep.subr.bf16.mxu0 %v2560_v62 }
 0x1be   : > { %1057 = vmatmul.mubr.f32.gmra.mrb[26].mxu1 %v3288_v3 }
 0x1bf   : > { %2531 = vmatpush3.bf16.msra.mxu1 %v2530_v7  ;;  %1061 = vmatprep.mubr.f32.mxu1 %v3237_v6 }
 0x1c0   : > { %2563 = vmatpush3.bf16.msra.mxu0 %v2560_v62  ;;  %2533 = vmatprep.subr.bf16.mxu1 %v2532_v20 }
 0x1c1   : > { %2565 = vmatprep.subr.bf16.mxu0 %v2564_v11 }
 0x1c2   : > { %1062 = vmatmul.mubr.f32.gmra.mrb[28].mxu1 %v3293_v23 }
 0x1c3   : > { %2535 = vmatpush3.bf16.msra.mxu1 %v2534_v18  ;;  %1066 = vmatprep.mubr.f32.mxu1 %v3255_v27 }
 0x1c4   : > { %2567 = vmatpush3.bf16.msra.mxu0 %v2564_v11  ;;  %2537 = vmatprep.subr.bf16.mxu1 %v2536_v19 }
 0x1c5   : > { %2569 = vmatprep.subr.bf16.mxu0 %v2568_v24 }
 0x1c6   : > { %1067 = vmatmul.mubr.f32.gmra.mrb[30].mxu1 %v3297_v34 }
 0x1c7   : > { %2539 = vmatpush3.bf16.msra.mxu1 %v2538_v13  ;;  %1362 = vmatprep.mubr.f32.mxu1 %v3224_v52  ;;  %v1217_v52 = vld [vmem:[#allocation2 + $0xe1] sm:$0xff] }
 0x1c8   : > { %2571 = vmatpush3.bf16.msra.mxu0 %v2568_v24 }
 0x1ca   : > { %1363 = vmatmul.mubr.f32.vlgmr.msra.gmra.mrb[32].mxu1 %v3257_v32 }
 0x1cb   : > { %2293 = vmatmul.mubr.f32.vlgmr.msra.gmra.mrb[8].mxu0 %v3259_v33  ;;  %1367 = vmatprep.mubr.f32.mxu1 %v3233_v59  ;;  %v1539_v59 = vld [vmem:[#allocation10] sm:$0xff]  ;;  %v1542_v33 = vld [vmem:[#allocation10 + $0x18] sm:$0xff] }
 0x1cc   : > { %2295 = vmatprep.mubr.f32.mxu0 %v3264_v36 }
 0x1ce   : > { %1368 = vmatmul.mubr.f32.gmra.mrb[34].mxu1 %v3268_v39  ;;  %v1544_v39 = vld [vmem:[#allocation10 + $0x28] sm:$0xff] }
 0x1cf   : > { %2296 = vmatmul.mubr.f32.gmra.mrb[10].mxu0 %v3271_v45  ;;  %1372 = vmatprep.mubr.f32.mxu1 %v3231_v58  ;;  %v1185_v58 = vld [vmem:[#allocation2 + $0xdf] sm:$0xff] }
 0x1d0   : > { %2298 = vmatprep.mubr.f32.mxu0 %v3275_v48  ;;  %v1546_v48 = vld [vmem:[#allocation10 + $0x38] sm:$0xff] }
 0x1d2   : > { %1373 = vmatmul.mubr.f32.gmra.mrb[36].mxu1 %v3278_v60  ;;  %v1547_v60 = vld [vmem:[#allocation10 + $0x40] sm:$0xff] }
 0x1d3   : > { %2299 = vmatmul.mubr.f32.gmra.mrb[12].mxu0 %v3281_v63  ;;  %1377 = vmatprep.mubr.f32.mxu1 %v3239_v8  ;;  %v1540_v8 = vld [vmem:[#allocation10 + $0x8] sm:$0xff] }
 0x1d4   : > { %2301 = vmatprep.mubr.f32.mxu0 %v3285_v2  ;;  %v2572_v32 = vpack.c.bf16 %v1540_v8, %v1539_v59  ;;  %v1548_v63 = vld [vmem:[#allocation10 + $0x48] sm:$0xff] }
 0x1d5   : > { %v2588_v2 = vpack.c.bf16 %v1548_v63, %v1547_v60 }
 0x1d6   : > { %1378 = vmatmul.mubr.f32.gmra.mrb[38].mxu1 %v3288_v3  ;;  %2573 = vmatprep.subr.bf16.mxu1 %v2572_v32  ;;  %v1549_v3 = vld [vmem:[#allocation10 + $0x50] sm:$0xff] }
 0x1d7   : > { %2302 = vmatmul.mubr.f32.gmra.mrb[14].mxu0 %v1217_v52  ;;  %1382 = vmatprep.mubr.f32.mxu1 %v3237_v6  ;;  %v1541_v6 = vld [vmem:[#allocation10 + $0x10] sm:$0xff] }
 0x1d8   : > { %2575 = vmatpush3.bf16.msra.mxu1 %v2572_v32  ;;  %v2576_v36 = vpack.c.bf16 %v1542_v33, %v1541_v6 }
 0x1da   : > { %1383 = vmatmul.mubr.f32.gmra.mrb[40].mxu1 %v3293_v23  ;;  %2577 = vmatprep.subr.bf16.mxu1 %v2576_v36  ;;  %v1550_v23 = vld [vmem:[#allocation10 + $0x58] sm:$0xff] }
 0x1db   : > { %1387 = vmatprep.mubr.f32.mxu1 %v3255_v27  ;;  %v1543_v27 = vld [vmem:[#allocation10 + $0x20] sm:$0xff] }
 0x1dc   : > { %2579 = vmatpush3.bf16.msra.mxu1 %v2576_v36  ;;  %v2580_v45 = vpack.c.bf16 %v1544_v39, %v1543_v27 }
 0x1de   : > { %1388 = vmatmul.mubr.f32.gmra.mrb[42].mxu1 %v3297_v34  ;;  %2581 = vmatprep.subr.bf16.mxu1 %v2580_v45  ;;  %v2592_v34 = vpack.c.bf16 %v1550_v23, %v1549_v3 }
 0x1df   : > { %1392 = vmatprep.mubr.f32.mxu1 %v3252_v25  ;;  %v1545_v25 = vld [vmem:[#allocation10 + $0x30] sm:$0xff] }
 0x1e0   : > { %2583 = vmatpush3.bf16.msra.mxu1 %v2580_v45 }
 0x1e2   : > { %1393 = vmatmul.mubr.f32.gmra.mrb[44].mxu1 %v3301_v54  ;;  %v1551_v54 = vld [vmem:[#allocation10 + $0x60] sm:$0xff] }
 0x1e3   : > { %1397 = vmatprep.mubr.f32.mxu1 %v2922_v31  ;;  %v2584_v31 = vpack.c.bf16 %v1546_v48, %v1545_v25  ;;  %v2596_v28 = vpack.c.bf16 %v1552_v26, %v1551_v54 }
 0x1e5   : > { %2585 = vmatprep.subr.bf16.mxu1 %v2584_v31 }
 0x1e6   : > { %1398 = vmatmul.mubr.f32.gmra.mrb[46].mxu1 %v1185_v58 }
 0x1e7   : > { %2587 = vmatpush3.bf16.msra.mxu1 %v2584_v31 }
 0x1e8   : > { %2589 = vmatprep.subr.bf16.mxu1 %v2588_v2 }
 0x1eb   : > { %2591 = vmatpush3.bf16.msra.mxu1 %v2588_v2 }
 0x1ec   : > { %2593 = vmatprep.subr.bf16.mxu1 %v2592_v34 }
 0x1ef   : > { %2595 = vmatpush3.bf16.msra.mxu1 %v2592_v34 }
 0x1f0   : > { %2597 = vmatprep.subr.bf16.mxu1 %v2596_v28 }
 0x1f3   : > { %2599 = vmatpush3.bf16.msra.mxu1 %v2596_v28 }
 0x1f4   : > { %2601 = vmatprep.subr.bf16.mxu1 %v2600_v53 }
 0x1f7   : > { %2603 = vmatpush3.bf16.msra.mxu1 %v2600_v53 }
 0x25d   : > { %v1896_v14 = vpop.f32.mrb[0].mxu1 }
 0x25e   : > { %v1897_v35 = vpop.f32.mrb[1].mxu1 }
 0x25f   : > { %v1898_v37 = vadd.f32 %v1897_v35, %v1896_v14  ;;  %v1831_v35 = vld [vmem:[%s3432_s4] ss:$0 sm:$0xff] }
 0x261   : > { %v1899_v38 = vpop.f32.mrb[2].mxu1 }
 0x262   : > { %v1900_v40 = vpop.f32.mrb[3].mxu1 }
 0x263   : > { %v1901_v41 = vadd.f32 %v1900_v40, %v1899_v38 }
 0x265   : > { %v1902_v42 = vpop.f32.mrb[4].mxu1 }
 0x266   : > { %v1903_v43 = vpop.f32.mrb[5].mxu1 }
 0x267   : > { %v1904_v44 = vadd.f32 %v1903_v43, %v1902_v42 }
 0x269   : > { %v1905_v46 = vpop.f32.mrb[6].mxu1 }
 0x26a   : > { %v1906_v47 = vpop.f32.mrb[7].mxu1 }
 0x26b   : > { %v1907_v49 = vadd.f32 %v1906_v47, %v1905_v46 }
 0x26d   : > { %v1908_v50 = vpop.f32.mrb[8].mxu1 }
 0x26e   : > { %v1909_v51 = vpop.f32.mrb[9].mxu1 }
 0x26f   : > { %v1910_v55 = vadd.f32 %v1909_v51, %v1908_v50 }
 0x271   : > { %v1911_v56 = vpop.f32.mrb[10].mxu1 }
 0x272   : > { %v1912_v57 = vpop.f32.mrb[11].mxu1 }
 0x273   : > { %v1913_v61 = vadd.f32 %v1912_v57, %v1911_v56 }
 0x275   : > { %v1914_v62 = vpop.f32.mrb[12].mxu1 }
 0x276   : > { %v1915_v0 = vpop.f32.mrb[13].mxu1 }
 0x277   : > { %v1916_v1 = vadd.f32 %v1915_v0, %v1914_v62 }
 0x279   : > { %v1917_v4 = vpop.f32.mrb[14].mxu1 }
 0x27a   : > { %v1918_v5 = vpop.f32.mrb[15].mxu1 }
 0x27b   : > { %v1919_v7 = vadd.f32 %v1918_v5, %v1917_v4 }
 0x27d   : > { %v1976_v20 = vpop.f32.mrb[16].mxu1 }
 0x27e   : > { %v1977_v9 = vpop.f32.mrb[17].mxu1 }
 0x27f   : > { %v1978_v10 = vadd.f32 %v1977_v9, %v1976_v20 }
 0x281   : > { %v2607_v11 = vadd.f32 %v1978_v10, %v1898_v37  ;;  %v1979_v12 = vpop.f32.mrb[18].mxu1 }
 0x282   : > { %v1980_v15 = vpop.f32.mrb[19].mxu1 }
 0x283   : > { %v1981_v16 = vadd.f32 %v1980_v15, %v1979_v12 }
 0x285   : > { %v2604_v17 = vadd.f32 %v1981_v16, %v1901_v41  ;;  %v1982_v18 = vpop.f32.mrb[20].mxu1 }
 0x286   : > { %v1983_v19 = vpop.f32.mrb[21].mxu1 }
 0x287   : > { %v1984_v21 = vadd.f32 %v1983_v19, %v1982_v18 }
 0x289   : > { %v2613_v22 = vadd.f32 %v1984_v21, %v1904_v44  ;;  %v1985_v24 = vpop.f32.mrb[22].mxu1 }
 0x28a   : > { %v1986_v13 = vpop.f32.mrb[23].mxu1 }
 0x28b   : > { %v1987_v52 = vadd.f32 %v1986_v13, %v1985_v24 }
 0x28d   : > { %v2610_v58 = vadd.f32 %v1987_v52, %v1907_v49  ;;  %v1988_v59 = vpop.f32.mrb[24].mxu1 }
 0x28e   : > { %v1989_v8 = vpop.f32.mrb[25].mxu1 }
 0x28f   : > { %v1990_v32 = vadd.f32 %v1989_v8, %v1988_v59 }
 0x291   : > { %v2619_v6 = vadd.f32 %v1990_v32, %v1910_v55  ;;  %v1991_v33 = vpop.f32.mrb[26].mxu1 }
 0x292   : > { %v1992_v36 = vpop.f32.mrb[27].mxu1 }
 0x293   : > { %v1993_v27 = vadd.f32 %v1992_v36, %v1991_v33 }
 0x295   : > { %v2616_v39 = vadd.f32 %v1993_v27, %v1913_v61  ;;  %v1994_v45 = vpop.f32.mrb[28].mxu1 }
 0x296   : > { %v1995_v25 = vpop.f32.mrb[29].mxu1 }
 0x297   : > { %v1996_v48 = vadd.f32 %v1995_v25, %v1994_v45 }
 0x299   : > { %v2625_v31 = vadd.f32 %v1996_v48, %v1916_v1  ;;  %v1997_v60 = vpop.f32.mrb[30].mxu1 }
 0x29a   : > { %v1998_v63 = vpop.f32.mrb[31].mxu1 }
 0x29b   : > { %v1999_v2 = vadd.f32 %v1998_v63, %v1997_v60 }
 0x29d   : > { %v3348_v3 = vadd.f32 %v1999_v2, %v1919_v7  ;;  %v2056_v23 = vpop.f32.mrb[32].mxu1 }
 0x29e   : > { %v2294_v34 = vpop.f32.mrb[8].mxu0  ;;  %v2057_v54 = vpop.f32.mrb[33].mxu1 }
 0x29f   : > { %v1469_v26 = vpop.f32.mrb[9].mxu0  ;;  %v2058_v28 = vadd.f32 %v2057_v54, %v2056_v23 }
 0x2a1   : > { %v2608_v29 = vadd.f32 %v2607_v11, %v2058_v28  ;;  %v2059_v30 = vpop.f32.mrb[34].mxu1 }
 0x2a2   : > { %v2297_v53 = vpop.f32.mrb[10].mxu0  ;;  %v2060_v14 = vpop.f32.mrb[35].mxu1 }
 0x2a3   : > { %v2609_v37 = vadd.f32 %v2608_v29, %v1469_v26  ;;  %v1479_v38 = vpop.f32.mrb[11].mxu0  ;;  %v2061_v40 = vadd.f32 %v2060_v14, %v2059_v30  ;;  %v1556_v26 = vld [vmem:[%s3177_s8 + $0x8] sm:$0xff]  ;;  %v1555_v30 = vld [vmem:[%s3177_s8] sm:$0xff] }
 0x2a5   : > { %v2605_v41 = vadd.f32 %v2604_v17, %v2061_v40  ;;  %v2062_v42 = vpop.f32.mrb[36].mxu1  ;;  %v1523_v43 = vadd.f32 %v2609_v37, %v1831_v35 }
 0x2a6   : > { %v2300_v44 = vpop.f32.mrb[12].mxu0  ;;  %v2063_v46 = vpop.f32.mrb[37].mxu1 }
 0x2a7   : > { %v2606_v47 = vadd.f32 %v2605_v41, %v2294_v34  ;;  %v1489_v49 = vpop.f32.mrb[13].mxu0  ;;  %v2064_v50 = vadd.f32 %v2063_v46, %v2062_v42  ;;  %v1531_v51 = vmax.f32 %v1523_v43, 0.0  ;;  %v1557_v43 = vld [vmem:[%s3177_s8 + $0x10] sm:$0xff] }
 0x2a9   : > { %v1524_v55 = vadd.f32 %v2606_v47, %v1831_v35  ;;  %v2614_v56 = vadd.f32 %v2613_v22, %v2064_v50  ;;  %v2065_v57 = vpop.f32.mrb[38].mxu1  ;;  %2336 = vmatprep.mubr.f32.mxu1 %v1531_v51 }
 0x2aa   : > { %v2303_v61 = vpop.f32.mrb[14].mxu0  ;;  %v2066_v62 = vpop.f32.mrb[39].mxu1 }
 0x2ab   : > { %v1532_v0 = vmax.f32 %v1524_v55, 0.0  ;;  %v2615_v1 = vadd.f32 %v2614_v56, %v1479_v38  ;;  %v1499_v4 = vpop.f32.mrb[15].mxu0  ;;  %v2067_v5 = vadd.f32 %v2066_v62, %v2065_v57  ;;  %v1560_v55 = vld [vmem:[%s3177_s8 + $0x28] sm:$0xff] }
 0x2ad   : > { %v2611_v7 = vadd.f32 %v2610_v58, %v2067_v5  ;;  %v2068_v20 = vpop.f32.mrb[40].mxu1  ;;  %2337 = vmatmul.mubr.f32.vlgmr.msra.gmra.mrb[48].mxu1 %v1532_v0  ;;  %v1525_v9 = vadd.f32 %v2615_v1, %v1831_v35 }
 0x2ae   : > { %v2069_v10 = vpop.f32.mrb[41].mxu1 }
 0x2af   : > { %v2612_v11 = vadd.f32 %v2611_v7, %v2297_v53  ;;  %v2070_v12 = vadd.f32 %v2069_v10, %v2068_v20  ;;  %v1533_v15 = vmax.f32 %v1525_v9, 0.0  ;;  %v1562_v20 = vld [vmem:[%s3177_s8 + $0x38] sm:$0xff] }
 0x2b1   : > { %v2620_v16 = vadd.f32 %v2619_v6, %v2070_v12  ;;  %v2071_v17 = vpop.f32.mrb[42].mxu1  ;;  %2339 = vmatprep.mubr.f32.mxu1 %v1533_v15  ;;  %v1526_v18 = vadd.f32 %v2612_v11, %v1831_v35  ;;  %v1561_v11 = vld [vmem:[%s3177_s8 + $0x30] sm:$0xff] }
 0x2b2   : > { %v2072_v19 = vpop.f32.mrb[43].mxu1 }
 0x2b3   : > { %v2621_v21 = vadd.f32 %v2620_v16, %v1489_v49  ;;  %v2073_v22 = vadd.f32 %v2072_v19, %v2071_v17  ;;  %v1534_v24 = vmax.f32 %v1526_v18, 0.0 }
 0x2b5   : > { %v2617_v13 = vadd.f32 %v2616_v39, %v2073_v22  ;;  %v2074_v52 = vpop.f32.mrb[44].mxu1  ;;  %2340 = vmatmul.mubr.f32.gmra.mrb[50].mxu1 %v1534_v24  ;;  %v1527_v59 = vadd.f32 %v2621_v21, %v1831_v35 }
 0x2b6   : > { %v2075_v58 = vpop.f32.mrb[45].mxu1 }
 0x2b7   : > { %v2618_v8 = vadd.f32 %v2617_v13, %v2300_v44  ;;  %v2076_v32 = vadd.f32 %v2075_v58, %v2074_v52  ;;  %v1535_v33 = vmax.f32 %v1527_v59, 0.0 }
 0x2b9   : > { %v2626_v36 = vadd.f32 %v2625_v31, %v2076_v32  ;;  %v2077_v27 = vpop.f32.mrb[46].mxu1  ;;  %2342 = vmatprep.mubr.f32.mxu1 %v1535_v33  ;;  %v1528_v6 = vadd.f32 %v2618_v8, %v1831_v35  ;;  %v1832_v31 = vld [vmem:[%s3434_s6] ss:$0 sm:$0xff] }
 0x2ba   : > { %v2078_v45 = vpop.f32.mrb[47].mxu1 }
 0x2bb   : > { %v2627_v25 = vadd.f32 %v2626_v36, %v1499_v4  ;;  %v2079_v48 = vadd.f32 %v2078_v45, %v2077_v27  ;;  %v1536_v60 = vmax.f32 %v1528_v6, 0.0 }
 0x2bd   : > { %v2623_v63 = vadd.f32 %v3348_v3, %v2079_v48  ;;  %2343 = vmatmul.mubr.f32.gmra.mrb[52].mxu1 %v1536_v60  ;;  %v1529_v39 = vadd.f32 %v2627_v25, %v1831_v35 }
 0x2bf   : > { %v2624_v2 = vadd.f32 %v2623_v63, %v2303_v61  ;;  %v1537_v23 = vmax.f32 %v1529_v39, 0.0  ;;  %v1559_v61 = vld [vmem:[%s3177_s8 + $0x20] sm:$0xff] }
 0x2c1   : > { %2345 = vmatprep.mubr.f32.mxu1 %v1537_v23  ;;  %v1530_v34 = vadd.f32 %v2624_v2, %v1831_v35  ;;  %v1558_v35 = vld [vmem:[%s3177_s8 + $0x18] sm:$0xff]  ;;  %s2840_s8 = scalar_lea.vmem %s3377_s20, 1024 }
 0x2c2   : > { %p2841_p10 = scmp.ne.s32.totalorder %s3377_s20, %s2840_s8  ;;  %p2848_p1 = scmp.lt.s32.totalorder %s2846_s9, %s2840_s8 }
 0x2c3   : > { %v1538_v54 = vmax.f32 %v1530_v34, 0.0 }
 0x2c4   : > { %p2842_p3 = pnand %p2841_p10, %p3120_p5  ;;  %p2849_p2 = por %p2848_p1, %p2847_p12 }
 0x2c5   : > { %2346 = vmatmul.mubr.f32.gmra.mrb[54].mxu1 %v1538_v54 }
 0x2c6   : > { %p2843_p7 = pneg %p2842_p3 }
 0x2c8   : > { %p2850_p4 = pnand %p2849_p2, %p2843_p7 }
 0x380   : > { %v2338_v28 = vpop.f32.mrb[48].mxu1 }
 0x381   : > { %v1642_v29 = vadd.f32 %v2338_v28, %v1832_v31  ;;  %v1636_v3 = vpop.f32.mrb[49].mxu1 }
 0x382   : > { %v1637_v53 = vadd.f32 %v1832_v31, %v1636_v3 }
 0x383   : > { %v1676_v14 = vadd.f32 %v1642_v29, %v1556_v26 }
 0x384   : > { %v1675_v37 = vadd.f32 %v1637_v53, %v1555_v30 }
 0x385   : > { %v1684_v38 = vmax.f32 %v1676_v14, 0.0 }
 0x386   : > { %v1683_v40 = vmax.f32 %v1675_v37, 0.0 }
 0x387   : > { %1692 = vst [vmem:[%s3361_s12 + $0x8] sm:$0xff] %v1684_v38 }
 0x388   : > { %1691 = vst [vmem:[%s3361_s12] sm:$0xff] %v1683_v40  ;;  %v2341_v41 = vpop.f32.mrb[50].mxu1 }
 0x389   : > { %v1652_v42 = vadd.f32 %v2341_v41, %v1832_v31  ;;  %v1646_v44 = vpop.f32.mrb[51].mxu1 }
 0x38a   : > { %v1647_v46 = vadd.f32 %v1832_v31, %v1646_v44 }
 0x38b   : > { %v1678_v47 = vadd.f32 %v1652_v42, %v1558_v35 }
 0x38c   : > { %v1677_v49 = vadd.f32 %v1647_v46, %v1557_v43 }
 0x38d   : > { %v1686_v50 = vmax.f32 %v1678_v47, 0.0 }
 0x38e   : > { %v1685_v51 = vmax.f32 %v1677_v49, 0.0 }
 0x38f   : > { %1694 = vst [vmem:[%s3361_s12 + $0x18] sm:$0xff] %v1686_v50 }
 0x390   : > { %1693 = vst [vmem:[%s3361_s12 + $0x10] sm:$0xff] %v1685_v51  ;;  %v2344_v56 = vpop.f32.mrb[52].mxu1 }
 0x391   : > { %v1662_v57 = vadd.f32 %v2344_v56, %v1832_v31  ;;  %v1656_v62 = vpop.f32.mrb[53].mxu1 }
 0x392   : > { %v1657_v0 = vadd.f32 %v1832_v31, %v1656_v62 }
 0x393   : > { %v1680_v1 = vadd.f32 %v1662_v57, %v1560_v55 }
 0x394   : > { %v1679_v4 = vadd.f32 %v1657_v0, %v1559_v61 }
 0x395   : > { %v1688_v5 = vmax.f32 %v1680_v1, 0.0 }
 0x396   : > { %v1687_v7 = vmax.f32 %v1679_v4, 0.0 }
 0x397   : > { %1696 = vst [vmem:[%s3361_s12 + $0x28] sm:$0xff] %v1688_v5 }
 0x398   : > { %1695 = vst [vmem:[%s3361_s12 + $0x20] sm:$0xff] %v1687_v7  ;;  %v2347_v9 = vpop.f32.mrb[54].mxu1 }
 0x399   : > { %v1672_v10 = vadd.f32 %v2347_v9, %v1832_v31  ;;  %v1666_v12 = vpop.f32.mrb[55].mxu1 }
 0x39a   : > { %v1667_v15 = vadd.f32 %v1832_v31, %v1666_v12 }
 0x39b   : > { %v1682_v16 = vadd.f32 %v1672_v10, %v1562_v20 }
 0x39c   : > { %v1681_v17 = vadd.f32 %v1667_v15, %v1561_v11 }
 0x39d   : > { %v1690_v18 = vmax.f32 %v1682_v16, 0.0 }
 0x39e   : > { %v1689_v19 = vmax.f32 %v1681_v17, 0.0 }
 0x39f   : > { %1698 = vst [vmem:[%s3361_s12 + $0x38] sm:$0xff] %v1690_v18 }
 0x3a0   : > { %1697 = vst [vmem:[%s3361_s12 + $0x30] sm:$0xff] %v1689_v19 }
 0x3a1   : > { %2853 = shalt.err (!%p2850_p4)
}
 0x3a2   : > { %s2854_s13 = scalar_lea.hbm %s3382_s23, 1024  ;;  %s2858_s14 = scalar_lea.hbm %s3435_s7, 2048 }
 0x3a3   : > { %p2855_p9 = scmp.ne.s32.totalorder %s3382_s23, %s2854_s13  ;;  %p2859_p8 = scmp.lt.u32.totalorder %s3382_s23, %s3435_s7 }
 0x3a4   : > { %p2860_p13 = scmp.lt.u32.totalorder %s2858_s14, %s2854_s13  ;;  %p2862_p10 = scmp.lt.u32.totalorder %s2854_s13, %s3382_s23 }
 0x3a5   : > { %p2856_p0 = pnand %p2855_p9, %p3120_p5 }
 0x3a6   : > { %p2861_p6 = por %p2860_p13, %p2859_p8 }
 0x3a7   : > { %p2857_p11 = pneg %p2856_p0 }
 0x3a8   : > { %p2863_p3 = por %p2862_p10, %p2861_p6 }
 0x3aa   : > { %p2864_p7 = pnand %p2863_p3, %p2857_p11 }
 0x3ac   : > { %2867 = shalt.err (!%p2864_p7)
}
 0x3ad   : > { %s2924_s16 = smov 128   ;;  %s2925_s29 = smov 8  }
 0x3ae   : > { %2658 = dma.vmem_to_hbm [thread:$0]  (%p3120_p5), %s3377_s20, 1024, %s3382_s23, %s1700_s11, %s2924_s16, %s2924_s16, %s2925_s29  }
 0x3af PF: > { %s3455_s8 = sld [smem:[#allocation17_spill]]  ;;  %s1728_s28 = sand.u32 1, %s2902_s24  }
 0x3b0   : > { %p3457_p1 = scmp.ge.s32.totalorder %s2914_s27, 2  ;;  %s1729_s30 = scalar_lea.sflag [#allocation6], %s1728_s28 }
 0x3b5   : > { %p3456_p12 = scmp.ne.s32.totalorder %s3455_s8, 0 }
 0x3b7   : > { %p2675_p2 = pnand %p3457_p1, %p3456_p12 }
 0x3b9   : > { %2897 = dma.done.wait (!%p2675_p2), %s1729_s30, 1024  }
 0x3ba   : > { %2899 = vsyncadd (!%p2675_p2), %s1729_s30, 4294966272  ;;  %p22_p4 = scmp.ge.s32.totalorder %s3106_s22, 4   ;;  %s3458_s24 = smov %s2906_s25 }
 0x3bb   : > { %s3459_s25 = smov %s2910_s26  ;;  %s3460_s26 = smov %s3116_s18 }
 0x3bc   : > { %s3461_s27 = smov %s3106_s22  ;;  %24 = sbr.rel (!%p22_p4) target bundleno = 7 (0x7), region = 108 }
 0x3c3   :  { %1734 = vsyncpa [#allocation5], 1 }
 0x3c4   :  { %1736 = vsyncpa [#allocation5 + $0x1], 1 }
 0x3c5   :  { %1737 = vsyncpa [#allocation8], 1 }
 0x3c6   :  { %1738 = vsyncpa [#allocation11], 1 }
 0x3c7   :  { %1739 = vsyncpa [#allocation6], 1 }
 0x3c8   :  { %1741 = vsyncpa [#allocation6 + $0x1], 1 }

// kernel: tpu_custom_call.1
= control target key start
LH: loop header
LB: loop body
LE: loop exit
PB: predicated region body
PF: predicated region fallthrough
CT: control target
= control target key end

     0   :  { %12 = vsyncpa [#allocation5], 0  ;;  %s3428_s0 = inlined_call_operand.hbm [shape: f32[2,8,8,128], index: 0, kind: input, shape index: {}]   ;;  %s3429_s1 = inlined_call_operand.hbm [shape: f32[128,128], index: 1, kind: input, shape index: {}]   ;;  %s3430_s2 = inlined_call_operand.vmem [shape: f32[1,128], index: 2, kind: input, shape index: {}]   ;;  %s3431_s3 = inlined_call_operand.hbm [shape: f32[1152,128], index: 3, kind: input, shape index: {}]   ;;  %s3432_s4 = inlined_call_operand.vmem [shape: f32[1,128], index: 4, kind: input, shape index: {}]   ;;  %s3433_s5 = inlined_call_operand.hbm [shape: f32[128,128], index: 5, kind: input, shape index: {}]   ;;  %s3434_s6 = inlined_call_operand.vmem [shape: f32[1,128], index: 6, kind: input, shape index: {}]   ;;  %s3435_s7 = inlined_call_operand.hbm [shape: f32[2,8,8,128], index: 7, kind: output, shape index: {}]  }
   0x1   :  { %14 = vsyncpa [#allocation5 + $0x1], 0 }
   0x2   :  { %15 = vsyncpa [#allocation8], 0 }
   0x3   :  { %16 = vsyncpa [#allocation11], 0 }
   0x4   :  { %17 = vsyncpa [#allocation6], 0 }
   0x5   :  { %19 = vsyncpa [#allocation6 + $0x1], 0  ;;  %s2966_s24 = smov 0   ;;  %s2968_s25 = smov 0  }
   0x6   :  { %s2970_s26 = smov 0   ;;  %s2972_s27 = smov 0  }
   0x7 LB: > { %s2987_s28 = sadd.s32 4294967295, %s2914_s27   ;;  %s1815_s29 = sadd.s32 4294967294, %s2914_s27   ;;  %s2914_s27 = sphi %s2972_s27, %s3461_s27   ;;  %s2910_s26 = sphi %s2970_s26, %s3460_s26   ;;  %s2906_s25 = sphi %s2968_s25, %s3459_s25   ;;  %s2902_s24 = sphi %s2966_s24, %s3458_s24  }
   0x8   : > { %p45_p0 = scmp.ne.s32.totalorder %s2906_s25, %s2902_s24  ;;  %p3436_p1 = scmp.eq.s32.totalorder %s2987_s28, 0 }
   0x9   : > { %p201_p3 = scmp.eq.s32.totalorder %s1815_s29, 1  ;;  %p1816_p5 = scmp.ge.s32.totalorder %s2914_s27, 1 }
   0xa   : > { %p2996_p4 = por %p3436_p1, %p45_p0  ;;  %p208_p7 = scmp.lt.s32.totalorder %s2914_s27, 3 }
   0xb   : > { %p3001_p6 = por %p201_p3, %p45_p0  ;;  %s2916_s10 = smov [#allocation7]  }
   0xc   : > { %s3440_s30 = scalar_select %p2996_p4, 1, 0 }
   0xd   : > { %s3441_s8 = scalar_select %p3001_p6, 1, 0 }
   0xe   : > { %p3006_p8 = pnand %p1816_p5, %p208_p7  ;;  %s220_s11 = sshll.u32 %s2916_s10, 4  ;;  %s3010_s11 = int_to_ptr.vmem [resolvable:$true] %s220_s11 }
   0xf   : > { %3442 = sst [smem:[#allocation17_spill]] %s3441_s8  ;;  %s2917_s13 = smov [#allocation9]  }
  0x10   : > { %s3443_s9 = scalar_select %p3006_p8, 1, 0 }
  0x11   : > { %p2660_p9 = pneg %p3006_p8  ;;  %s236_s14 = sshll.u32 %s2917_s13, 4  ;;  %s3021_s14 = int_to_ptr.vmem [resolvable:$true] %s236_s14 }
  0x12   : > { %s2918_s15 = smov [#allocation10]   ;;  %s2726_s19 = scalar_lea.hbm %s3429_s1, 2048 }
  0x13   : > { %p3017_p11 = pnand %p2660_p9, %p3436_p1  ;;  %s3023_s16 = sshll.u32 %s2918_s15, 4  ;;  %s253_s16 = int_to_ptr.vmem [resolvable:$true] %s3023_s16 }
  0x14   : > { %p2727_p12 = scmp.ne.s32.totalorder %s3429_s1, %s2726_s19  ;;  %p2733_p5 = scmp.lt.u32.totalorder %s2726_s19, %s3429_s1 }
  0x15   : > { %p3033_p13 = pneg %p3017_p11 }
  0x17   : > { %p2729_p0 = pnand %p3033_p13, %p2727_p12 }
  0x19   : > { %p2730_p3 = pneg %p2729_p0 }
  0x1b   : > { %p2735_p7 = pnand %p2733_p5, %p2730_p3 }
  0x1d   : > { %2738 = shalt.err (!%p2735_p7)
}
  0x1e   : > { %s2739_s10 = scalar_lea.vmem %s3010_s11, 2048  ;;  %p2747_p2 = scmp.lt.s32.totalorder %s3010_s11, %s3010_s11 }
  0x1f   : > { %p2740_p9 = scmp.ne.s32.totalorder %s3010_s11, %s2739_s10  ;;  %p2748_p6 = scmp.lt.s32.totalorder %s2739_s10, %s2739_s10 }
  0x21   : > { %p2742_p10 = pnand %p2740_p9, %p3033_p13  ;;  %p2749_p12 = por %p2748_p6, %p2747_p2 }
  0x23   : > { %p2743_p1 = pneg %p2742_p10 }
  0x25   : > { %p2750_p0 = pnand %p2749_p12, %p2743_p1 }
  0x27   : > { %2753 = shalt.err (!%p2750_p0)
}
  0x28   : > { %s2919_s13 = smov 128   ;;  %s2920_s15 = smov 8  }
  0x29   : > { %2663 = dma.hbm_to_vmem [thread:$0]  (!%p3017_p11), %s3429_s1, 2048, %s3010_s11, [#allocation8], %s2919_s13, %s2919_s13, %s2920_s15  }
  0x2a   : > { %s2754_s21 = scalar_lea.hbm %s3431_s3, 18432 }
  0x2b   : > { %p2755_p1 = scmp.ne.s32.totalorder %s3431_s3, %s2754_s21  ;;  %p2761_p10 = scmp.lt.u32.totalorder %s2754_s21, %s3431_s3 }
  0x2d   : > { %p2757_p2 = pnand %p2755_p1, %p3033_p13 }
  0x2f   : > { %p2758_p6 = pneg %p2757_p2 }
  0x31   : > { %p2763_p3 = pnand %p2761_p10, %p2758_p6 }
  0x33   : > { %2766 = shalt.err (!%p2763_p3)
}
  0x34   : > { %s2767_s11 = scalar_lea.vmem %s3021_s14, 18432  ;;  %p2775_p12 = scmp.lt.s32.totalorder %s3021_s14, %s3021_s14 }
  0x35   : > { %p2768_p5 = scmp.ne.s32.totalorder %s3021_s14, %s2767_s11  ;;  %p2776_p0 = scmp.lt.s32.totalorder %s2767_s11, %s2767_s11 }
  0x37   : > { %p2770_p7 = pnand %p2768_p5, %p3033_p13  ;;  %p2777_p1 = por %p2776_p0, %p2775_p12 }
  0x39   : > { %p2771_p9 = pneg %p2770_p7 }
  0x3b   : > { %p2778_p2 = pnand %p2777_p1, %p2771_p9 }
  0x3d   : > { %2781 = shalt.err (!%p2778_p2)
}
  0x3e   : > { %2666 = dma.hbm_to_vmem [thread:$0]  (!%p3017_p11), %s3431_s3, 18432, %s3021_s14, [#allocation8], %s2919_s13, %s2919_s13, %s2920_s15  }
  0x3f   : > { %s2782_s20 = scalar_lea.hbm %s3433_s5, 2048 }
  0x40   : > { %p2783_p6 = scmp.ne.s32.totalorder %s3433_s5, %s2782_s20  ;;  %p2789_p5 = scmp.lt.u32.totalorder %s2782_s20, %s3433_s5 }
  0x42   : > { %p2785_p10 = pnand %p2783_p6, %p3033_p13 }
  0x44   : > { %p2786_p3 = pneg %p2785_p10 }
  0x46   : > { %p2791_p7 = pnand %p2789_p5, %p2786_p3 }
  0x48   : > { %2794 = shalt.err (!%p2791_p7)
}
  0x49   : > { %s2795_s11 = scalar_lea.vmem %s253_s16, 2048  ;;  %p2803_p1 = scmp.lt.s32.totalorder %s253_s16, %s253_s16 }
  0x4a   : > { %p2796_p9 = scmp.ne.s32.totalorder %s253_s16, %s2795_s11  ;;  %p2804_p2 = scmp.lt.s32.totalorder %s2795_s11, %s2795_s11 }
  0x4c   : > { %p2798_p12 = pnand %p2796_p9, %p3033_p13  ;;  %p2805_p4 = por %p2804_p2, %p2803_p1 }
  0x4e   : > { %p2799_p0 = pneg %p2798_p12 }
  0x50   : > { %p2806_p8 = pnand %p2805_p4, %p2799_p0 }
  0x52   : > { %2809 = shalt.err (!%p2806_p8)
}
  0x53   : > { %2669 = dma.hbm_to_vmem [thread:$0]  (!%p3017_p11), %s3433_s5, 2048, %s253_s16, [#allocation11], %s2919_s13, %s2919_s13, %s2920_s15  }
  0x54   : > { %s3106_s22 = sadd.s32 1, %s2914_s27   ;;  %s32_s17 = sadd.s32 1, %s2910_s26 }
  0x55   : > { %s29_s12 = ssub.s32 %s2914_s27, %s3106_s22  ;;  %p39_p8 = scmp.ne.s32.totalorder %s2910_s26, %s2906_s25 }
  0x56   : > { %p30_p4 = scmp.eq.s32.totalorder %s29_s12, 0  ;;  %p40_p13 = scmp.eq.s32.totalorder %s2914_s27, 0 }
  0x57   : > { %p2681_p6 = scmp.lt.s32.totalorder %s2914_s27, 2  ;;  %p3446_p3 = scmp.eq.s32.totalorder %s2987_s28, 1 }
  0x58   : > { %s3116_s18 = scalar_select %p30_p4, %s2910_s26, %s32_s17  }
  0x59   : > { %p41_p10 = por %p40_p13, %p39_p8  ;;  %p3120_p5 = por %p3446_p3, %p39_p8 }
  0x5a   : > { %s269_s20 = sand.u32 1, %s2910_s26   ;;  %s1838_s21 = sshll.u32 %s2914_s27, 10 }
  0x5b   : > { %s1821_s16 = sshll.u32 %s269_s20, 6  ;;  %s3129_s10 = scalar_lea.hbm %s3428_s0, %s1838_s21 }
  0x5c   : > { %s273_s11 = scalar_lea.vmem [#allocation4], %s1821_s16  ;;  %p3131_p11 = pnand %p2681_p6, %p41_p10 }
  0x5d   : > { %s280_s14 = sshll.u32 %s273_s11, 4  ;;  %s3137_s12 = scalar_lea.sflag [#allocation5], %s269_s20  ;;  %s3135_s14 = int_to_ptr.vmem [resolvable:$true] %s280_s14 }
  0x5e   : > { %s2810_s17 = scalar_lea.hbm %s3129_s10, 1024  ;;  %p2812_p9 = pneg %p3131_p11 }
  0x5f   : > { %p2811_p7 = scmp.ne.s32.totalorder %s3129_s10, %s2810_s17  ;;  %s2815_s23 = scalar_lea.hbm %s3428_s0, 2048 }
  0x60   : > { %p2816_p1 = scmp.lt.u32.totalorder %s3129_s10, %s3428_s0  ;;  %p2817_p2 = scmp.lt.u32.totalorder %s2815_s23, %s2810_s17 }
  0x61   : > { %p2813_p12 = pnand %p2812_p9, %p2811_p7  ;;  %p2819_p8 = scmp.lt.u32.totalorder %s2810_s17, %s3129_s10 }
  0x62   : > { %p2818_p4 = por %p2817_p2, %p2816_p1 }
  0x63   : > { %p2814_p0 = pneg %p2813_p12 }
  0x64   : > { %p2820_p13 = por %p2819_p8, %p2818_p4 }
  0x66   : > { %p2821_p6 = pnand %p2820_p13, %p2814_p0 }
  0x68   : > { %2824 = shalt.err (!%p2821_p6)
}
  0x69   : > { %s2825_s20 = scalar_lea.vmem %s3135_s14, 1024  ;;  %s2921_s21 = smov [#allocation4]  }
  0x6a   : > { %p2826_p10 = scmp.ne.s32.totalorder %s3135_s14, %s2825_s20  ;;  %s2830_s16 = sshll.u32 %s2921_s21, 4  ;;  %s2831_s16 = int_to_ptr.vmem [resolvable:$false] %s2830_s16 }
  0x6b   : > { %s2832_s29 = scalar_lea.vmem %s2831_s16, 2048  ;;  %p2833_p12 = scmp.lt.s32.totalorder %s3135_s14, %s2831_s16 }
  0x6c   : > { %p2828_p3 = pnand %p2826_p10, %p2812_p9  ;;  %p2834_p1 = scmp.lt.s32.totalorder %s2832_s29, %s2825_s20 }
  0x6e   : > { %p2829_p7 = pneg %p2828_p3  ;;  %p2835_p2 = por %p2834_p1, %p2833_p12 }
  0x70   : > { %p2836_p4 = pnand %p2835_p2, %p2829_p7 }
  0x72   : > { %2839 = shalt.err (!%p2836_p4)
}
  0x73   : > { %2673 = dma.hbm_to_vmem [thread:$0]  (!%p3131_p11), %s3129_s10, 1024, %s3135_s14, %s3137_s12, %s2919_s13, %s2919_s13, %s2920_s15  }
  0x74   : > { %p3449_p9 = scmp.ne.s32.totalorder %s3443_s9, 0 }
  0x75   : > { %s3171_s17 = sand.u32 (!%p3449_p9), 1, %s2906_s25   ;;  %p3450_p0 = scmp.ne.s32.totalorder (!%p3449_p9), %s3440_s30, 0 }
  0x76   : > { %292 = sbr.rel (%p3449_p9) target bundleno = 943 (0x3af), region = 48  ;;  %s1825_s23 = sshll.u32 (!%p3449_p9), %s3171_s17, 6 }
  0x77   : > { %s295_s11 = scalar_lea.sflag (!%p3449_p9), [#allocation5], %s3171_s17  ;;  %s3177_s8 = scalar_lea.vmem (!%p3449_p9), [#allocation4], %s1825_s23 }
  0x7d   : > { %2885 = dma.done.wait (%p3450_p0), %s295_s11, 1024  }
  0x7e   : > { %2887 = vsyncadd (%p3450_p0), %s295_s11, 4294966272  ;;  %p3451_p11 = scmp.eq.s32.totalorder %s2987_s28, 0 }
  0x80   : > { %2889 = dma.done.wait (%p3451_p11), [#allocation8], 20480   ;;  %p3452_p8 = pmov %p3451_p11 }
  0x82   : > { %2891 = vsyncadd (%p3452_p8), [#allocation8], 4294946816  ;;  %p3453_p13 = pmov %p3452_p8 }
  0x83   : > { %p3454_p6 = pmov %p3452_p8 }
  0x84   : > { %2893 = dma.done.wait (%p3453_p13), [#allocation11], 2048  }
  0x85   : > { %2895 = vsyncadd (%p3454_p6), [#allocation11], 4294965248  ;;  %v349_v0 = vld [vmem:[#allocation7] sm:$0xff]  ;;  %v350_v1 = vld [vmem:[#allocation7 + $0x8] sm:$0xff]  ;;  %s3361_s12 = scalar_lea.vmem [#allocation12], %s1825_s23  ;;  %s1839_s21 = sshll.u32 %s2987_s28, 10 }
  0x86   : > { %v351_v2 = vld [vmem:[#allocation7 + $0x10] sm:$0xff]  ;;  %v2348_v3 = vpack.c.bf16 %v350_v1, %v349_v0  ;;  %v352_v4 = vld [vmem:[#allocation7 + $0x18] sm:$0xff]  ;;  %v353_v6 = vld [vmem:[#allocation7 + $0x20] sm:$0xff]  ;;  %s1713_s20 = sshll.u32 %s3361_s12, 4  ;;  %s3382_s23 = scalar_lea.hbm %s3435_s7, %s1839_s21  ;;  %s3377_s20 = int_to_ptr.vmem [resolvable:$true] %s1713_s20 }
  0x87   : > { %v2352_v5 = vpack.c.bf16 %v352_v4, %v351_v2  ;;  %v354_v7 = vld [vmem:[#allocation7 + $0x28] sm:$0xff]  ;;  %v341_v9 = vld [vmem:[%s3177_s8] sm:$0xff]  ;;  %v355_v10 = vld [vmem:[#allocation7 + $0x30] sm:$0xff]  ;;  %s1700_s11 = scalar_lea.sflag [#allocation6], %s3171_s17  ;;  %s2923_s28 = smov [#allocation12]  }
  0x88   : > { %2349 = vmatprep.subr.bf16.mxu0 %v2348_v3  ;;  %v2356_v8 = vpack.c.bf16 %v354_v7, %v353_v6  ;;  %v356_v11 = vld [vmem:[#allocation7 + $0x38] sm:$0xff]  ;;  %2160 = vmatprep.mubr.f32.mxu0 %v341_v9  ;;  %v725_v12 = vld [vmem:[#allocation9 + $0x200] sm:$0xff]  ;;  %v726_v13 = vld [vmem:[#allocation9 + $0x208] sm:$0xff]  ;;  %s2844_s30 = sshll.u32 %s2923_s28, 4  ;;  %s2845_s30 = int_to_ptr.vmem [resolvable:$false] %s2844_s30 }
  0x89   : > { %2351 = vmatpush3.bf16.msra.mxu0 %v2348_v3  ;;  %v2360_v14 = vpack.c.bf16 %v356_v11, %v355_v10  ;;  %v357_v15 = vld [vmem:[#allocation7 + $0x40] sm:$0xff]  ;;  %v2380_v16 = vpack.c.bf16 %v726_v13, %v725_v12  ;;  %v710_v18 = vld [vmem:[#allocation9 + $0x188] sm:$0xff]  ;;  %v727_v21 = vld [vmem:[#allocation9 + $0x210] sm:$0xff]  ;;  %s2846_s9 = scalar_lea.vmem %s2845_s30, 2048  ;;  %p2847_p12 = scmp.lt.s32.totalorder %s3377_s20, %s2845_s30 }
  0x8a   : > { %2353 = vmatprep.subr.bf16.mxu0 %v2352_v5  ;;  %v709_v17 = vld [vmem:[#allocation9 + $0x180] sm:$0xff]  ;;  %v358_v19 = vld [vmem:[#allocation7 + $0x48] sm:$0xff]  ;;  %v728_v22 = vld [vmem:[#allocation9 + $0x218] sm:$0xff] }
  0x8b   : > { %v2382_v20 = vpack.c.bf16 %v710_v18, %v709_v17  ;;  %2381 = vmatprep.subr.bf16.mxu1 %v2380_v16  ;;  %v2384_v23 = vpack.c.bf16 %v728_v22, %v727_v21  ;;  %v711_v24 = vld [vmem:[#allocation9 + $0x190] sm:$0xff]  ;;  %v712_v25 = vld [vmem:[#allocation9 + $0x198] sm:$0xff]  ;;  %v729_v27 = vld [vmem:[#allocation9 + $0x220] sm:$0xff]  ;;  %v2364_v29 = vpack.c.bf16 %v358_v19, %v357_v15 }
  0x8c   : > { %v2386_v26 = vpack.c.bf16 %v712_v25, %v711_v24  ;;  %v730_v28 = vld [vmem:[#allocation9 + $0x228] sm:$0xff]  ;;  %v359_v30 = vld [vmem:[#allocation7 + $0x50] sm:$0xff]  ;;  %v713_v32 = vld [vmem:[#allocation9 + $0x1a0] sm:$0xff] }
  0x8d   : > { %2355 = vmatpush3.bf16.msra.mxu0 %v2352_v5  ;;  %2383 = vmatpush3.bf16.msra.mxu1 %v2382_v20  ;;  %v2388_v31 = vpack.c.bf16 %v730_v28, %v729_v27  ;;  %v714_v33 = vld [vmem:[#allocation9 + $0x1a8] sm:$0xff]  ;;  %v360_v34 = vld [vmem:[#allocation7 + $0x58] sm:$0xff]  ;;  %v731_v35 = vld [vmem:[#allocation9 + $0x230] sm:$0xff] }
  0x8e   : > { %2357 = vmatprep.subr.bf16.mxu0 %v2356_v8  ;;  %2385 = vmatprep.subr.bf16.mxu1 %v2384_v23  ;;  %v732_v36 = vld [vmem:[#allocation9 + $0x238] sm:$0xff]  ;;  %v2390_v37 = vpack.c.bf16 %v714_v33, %v713_v32  ;;  %v2368_v38 = vpack.c.bf16 %v360_v34, %v359_v30  ;;  %v361_v39 = vld [vmem:[#allocation7 + $0x60] sm:$0xff]  ;;  %v715_v41 = vld [vmem:[#allocation9 + $0x1b0] sm:$0xff] }
  0x8f   : > { %v2392_v40 = vpack.c.bf16 %v732_v36, %v731_v35  ;;  %v716_v42 = vld [vmem:[#allocation9 + $0x1b8] sm:$0xff]  ;;  %v362_v43 = vld [vmem:[#allocation7 + $0x68] sm:$0xff]  ;;  %v733_v44 = vld [vmem:[#allocation9 + $0x240] sm:$0xff] }
  0x90   : > { %v734_v45 = vld [vmem:[#allocation9 + $0x248] sm:$0xff]  ;;  %v2394_v46 = vpack.c.bf16 %v716_v42, %v715_v41  ;;  %v2372_v47 = vpack.c.bf16 %v362_v43, %v361_v39  ;;  %v717_v49 = vld [vmem:[#allocation9 + $0x1c0] sm:$0xff]  ;;  %v363_v51 = vld [vmem:[#allocation7 + $0x70] sm:$0xff] }
  0x91   : > { %2359 = vmatpush3.bf16.msra.mxu0 %v2356_v8  ;;  %2387 = vmatpush3.bf16.msra.mxu1 %v2386_v26  ;;  %v2396_v48 = vpack.c.bf16 %v734_v45, %v733_v44  ;;  %v718_v50 = vld [vmem:[#allocation9 + $0x1c8] sm:$0xff]  ;;  %v364_v52 = vld [vmem:[#allocation7 + $0x78] sm:$0xff]  ;;  %v741_v55 = vld [vmem:[#allocation9 + $0x280] sm:$0xff] }
  0x92   : > { %2361 = vmatprep.subr.bf16.mxu0 %v2360_v14  ;;  %2389 = vmatprep.subr.bf16.mxu1 %v2388_v31  ;;  %v2398_v53 = vpack.c.bf16 %v718_v50, %v717_v49  ;;  %v2376_v54 = vpack.c.bf16 %v364_v52, %v363_v51  ;;  %v742_v56 = vld [vmem:[#allocation9 + $0x288] sm:$0xff]  ;;  %v743_v58 = vld [vmem:[#allocation9 + $0x290] sm:$0xff]  ;;  %v744_v59 = vld [vmem:[#allocation9 + $0x298] sm:$0xff]  ;;  %v2922_v31 = vmov 0.0  }
  0x93   : > { %v2412_v57 = vpack.c.bf16 %v742_v56, %v741_v55  ;;  %v342_v60 = vld [vmem:[%s3177_s8 + $0x8] sm:$0xff]  ;;  %v343_v61 = vld [vmem:[%s3177_s8 + $0x10] sm:$0xff]  ;;  %v2416_v62 = vpack.c.bf16 %v744_v59, %v743_v58  ;;  %v745_v63 = vld [vmem:[#allocation9 + $0x2a0] sm:$0xff]  ;;  %501 = vst [vmem:[#allocation2 + $0x28] sm:$0x1] %v2922_v31 }
  0x94   : > { %v746_v0 = vld [vmem:[#allocation9 + $0x2a8] sm:$0xff]  ;;  %v344_v1 = vld [vmem:[%s3177_s8 + $0x18] sm:$0xff]  ;;  %v345_v2 = vld [vmem:[%s3177_s8 + $0x20] sm:$0xff]  ;;  %485 = vst [vmem:[#allocation2] sm:$0xff] %v2922_v31 }
  0x95   : > { %2363 = vmatpush3.bf16.msra.mxu0 %v2360_v14  ;;  %2391 = vmatpush3.bf16.msra.mxu1 %v2390_v37  ;;  %v2420_v3 = vpack.c.bf16 %v746_v0, %v745_v63  ;;  %v747_v4 = vld [vmem:[#allocation9 + $0x2b0] sm:$0xff]  ;;  %v748_v5 = vld [vmem:[#allocation9 + $0x2b8] sm:$0xff]  ;;  %v346_v6 = vld [vmem:[%s3177_s8 + $0x28] sm:$0xff]  ;;  %486 = vst [vmem:[#allocation2 + $0x8] sm:$0xff] %v2922_v31 }
  0x96   : > { %2365 = vmatprep.subr.bf16.mxu0 %v2364_v29  ;;  %2393 = vmatprep.subr.bf16.mxu1 %v2392_v40  ;;  %v347_v7 = vld [vmem:[%s3177_s8 + $0x30] sm:$0xff]  ;;  %v2424_v8 = vpack.c.bf16 %v748_v5, %v747_v4  ;;  %v749_v9 = vld [vmem:[#allocation9 + $0x2c0] sm:$0xff]  ;;  %v750_v10 = vld [vmem:[#allocation9 + $0x2c8] sm:$0xff]  ;;  %487 = vst [vmem:[#allocation2 + $0x10] sm:$0xff] %v2922_v31 }
  0x97   : > { %v348_v11 = vld [vmem:[%s3177_s8 + $0x38] sm:$0xff]  ;;  %v2428_v12 = vpack.c.bf16 %v750_v10, %v749_v9  ;;  %v735_v13 = vld [vmem:[#allocation9 + $0x250] sm:$0xff]  ;;  %v737_v22 = vld [vmem:[#allocation9 + $0x260] sm:$0xff]  ;;  %489 = vst [vmem:[#allocation2 + $0xd8] sm:$0xff] %v2922_v31 }
  0x98   : > { %v736_v14 = vld [vmem:[#allocation9 + $0x258] sm:$0xff]  ;;  %v751_v15 = vld [vmem:[#allocation9 + $0x2d0] sm:$0xff]  ;;  %v738_v23 = vld [vmem:[#allocation9 + $0x268] sm:$0xff]  ;;  %490 = vst [vmem:[#allocation2 + $0xe0] sm:$0xff] %v2922_v31 }
  0x99   : > { %2367 = vmatpush3.bf16.msra.mxu0 %v2364_v29  ;;  %2395 = vmatpush3.bf16.msra.mxu1 %v2394_v46  ;;  %v2400_v16 = vpack.c.bf16 %v736_v14, %v735_v13  ;;  %v752_v17 = vld [vmem:[#allocation9 + $0x2d8] sm:$0xff]  ;;  %v719_v18 = vld [vmem:[#allocation9 + $0x1d0] sm:$0xff]  ;;  %v753_v24 = vld [vmem:[#allocation9 + $0x2e0] sm:$0xff]  ;;  %v2404_v25 = vpack.c.bf16 %v738_v23, %v737_v22  ;;  %491 = vst [vmem:[#allocation2 + $0xe8] sm:$0xff] %v2922_v31 }
  0x9a   : > { %2369 = vmatprep.subr.bf16.mxu0 %v2368_v38  ;;  %2397 = vmatprep.subr.bf16.mxu1 %v2396_v48  ;;  %v2432_v19 = vpack.c.bf16 %v752_v17, %v751_v15  ;;  %v720_v20 = vld [vmem:[#allocation9 + $0x1d8] sm:$0xff]  ;;  %v754_v26 = vld [vmem:[#allocation9 + $0x2e8] sm:$0xff]  ;;  %v721_v27 = vld [vmem:[#allocation9 + $0x1e0] sm:$0xff]  ;;  %493 = vst [vmem:[#allocation2 + $0x1f] sm:$0x1] %v2922_v31 }
  0x9b   : > { %v2402_v21 = vpack.c.bf16 %v720_v20, %v719_v18  ;;  %v722_v28 = vld [vmem:[#allocation9 + $0x1e8] sm:$0xff]  ;;  %v2436_v29 = vpack.c.bf16 %v754_v26, %v753_v24  ;;  %494 = vst [vmem:[#allocation2 + $0x37] sm:$0x1] %v2922_v31  ;;  %495 = vst [vmem:[#allocation2 + $0x4f] sm:$0x1] %v2922_v31  ;;  %v739_v32 = vld [vmem:[#allocation9 + $0x270] sm:$0xff] }
  0x9c   : > { %v2406_v30 = vpack.c.bf16 %v722_v28, %v721_v27  ;;  %496 = vst [vmem:[#allocation2 + $0x67] sm:$0x1] %v2922_v31  ;;  %497 = vst [vmem:[#allocation2 + $0x7f] sm:$0x1] %v2922_v31  ;;  %v740_v33 = vld [vmem:[#allocation9 + $0x278] sm:$0xff]  ;;  %v755_v34 = vld [vmem:[#allocation9 + $0x2f0] sm:$0xff] }
  0x9d   : > { %2371 = vmatpush3.bf16.msra.mxu0 %v2368_v38  ;;  %2399 = vmatpush3.bf16.msra.mxu1 %v2398_v53  ;;  %498 = vst [vmem:[#allocation2 + $0x97] sm:$0x1] %v2922_v31  ;;  %499 = vst [vmem:[#allocation2 + $0xaf] sm:$0x1] %v2922_v31  ;;  %v2408_v35 = vpack.c.bf16 %v740_v33, %v739_v32  ;;  %v756_v36 = vld [vmem:[#allocation9 + $0x2f8] sm:$0xff]  ;;  %v723_v37 = vld [vmem:[#allocation9 + $0x1f0] sm:$0xff] }
  0x9e   : > { %2373 = vmatprep.subr.bf16.mxu0 %v2372_v47  ;;  %2401 = vmatprep.subr.bf16.mxu1 %v2400_v16  ;;  %500 = vst [vmem:[#allocation2 + $0xc7] sm:$0x1] %v2922_v31  ;;  %502 = vst [vmem:[#allocation2 + $0x40] sm:$0x1] %v2922_v31  ;;  %v724_v38 = vld [vmem:[#allocation9 + $0x1f8] sm:$0xff]  ;;  %v2440_v39 = vpack.c.bf16 %v756_v36, %v755_v34  ;;  %v605_v41 = vld [vmem:[#allocation9 + $0x80] sm:$0xff] }
  0x9f   : > { %503 = vst [vmem:[#allocation2 + $0x58] sm:$0x1] %v2922_v31  ;;  %504 = vst [vmem:[#allocation2 + $0x70] sm:$0x1] %v2922_v31  ;;  %v2410_v40 = vpack.c.bf16 %v724_v38, %v723_v37  ;;  %v606_v42 = vld [vmem:[#allocation9 + $0x88] sm:$0xff]  ;;  %v621_v43 = vld [vmem:[#allocation9 + $0x100] sm:$0xff] }
  0xa0   : > { %505 = vst [vmem:[#allocation2 + $0x88] sm:$0x1] %v2922_v31  ;;  %506 = vst [vmem:[#allocation2 + $0xa0] sm:$0x1] %v2922_v31  ;;  %v2444_v44 = vpack.c.bf16 %v606_v42, %v605_v41  ;;  %v622_v45 = vld [vmem:[#allocation9 + $0x108] sm:$0xff]  ;;  %v623_v4 = vld [vmem:[#allocation9 + $0x110] sm:$0xff] }
  0xa1   : > { %2375 = vmatpush3.bf16.msra.mxu0 %v2372_v47  ;;  %2403 = vmatpush3.bf16.msra.mxu1 %v2402_v21  ;;  %507 = vst [vmem:[#allocation2 + $0xb8] sm:$0x1] %v2922_v31  ;;  %508 = vst [vmem:[#allocation2 + $0xd0] sm:$0x1] %v2922_v31  ;;  %v2476_v46 = vpack.c.bf16 %v622_v45, %v621_v43  ;;  %v1830_v47 = vld [vmem:[%s3430_s2] ss:$0 sm:$0xff] }
  0xa2   : > { %2377 = vmatprep.subr.bf16.mxu0 %v2376_v54  ;;  %2405 = vmatprep.subr.bf16.mxu1 %v2404_v25  ;;  %v624_v5 = vld [vmem:[#allocation9 + $0x118] sm:$0xff]  ;;  %v591_v9 = vld [vmem:[#allocation9 + $0x10] sm:$0xff]  ;;  %v610_v18 = vld [vmem:[#allocation9 + $0xa8] sm:$0xff] }
  0xa3   : > { %v592_v10 = vld [vmem:[#allocation9 + $0x18] sm:$0xff]  ;;  %v2480_v16 = vpack.c.bf16 %v624_v5, %v623_v4  ;;  %v625_v21 = vld [vmem:[#allocation9 + $0x120] sm:$0xff]  ;;  %v626_v22 = vld [vmem:[#allocation9 + $0x128] sm:$0xff] }
  0xa4   : > { %v2450_v24 = vpack.c.bf16 %v592_v10, %v591_v9  ;;  %v593_v28 = vld [vmem:[#allocation9 + $0x20] sm:$0xff]  ;;  %v2484_v34 = vpack.c.bf16 %v626_v22, %v625_v21  ;;  %v627_v37 = vld [vmem:[#allocation9 + $0x130] sm:$0xff]  ;;  %v628_v38 = vld [vmem:[#allocation9 + $0x138] sm:$0xff] }
  0xa5   : > { %2379 = vmatpush3.bf16.msra.mxu0 %v2376_v54  ;;  %2407 = vmatpush3.bf16.msra.mxu1 %v2406_v30  ;;  %v611_v30 = vld [vmem:[#allocation9 + $0xb0] sm:$0xff]  ;;  %v596_v43 = vld [vmem:[#allocation9 + $0x38] sm:$0xff]  ;;  %v601_v21 = vld [vmem:[#allocation9 + $0x60] sm:$0xff] }
  0xa6   : > { %2413 = vmatprep.subr.bf16.mxu0 %v2412_v57  ;;  %2409 = vmatprep.subr.bf16.mxu1 %v2408_v35  ;;  %v612_v35 = vld [vmem:[#allocation9 + $0xb8] sm:$0xff]  ;;  %v595_v42 = vld [vmem:[#allocation9 + $0x30] sm:$0xff]  ;;  %v602_v22 = vld [vmem:[#allocation9 + $0x68] sm:$0xff] }
  0xa7   : > { %v2456_v41 = vpack.c.bf16 %v612_v35, %v611_v30  ;;  %v549_v5 = vld [vmem:[#allocation2 + $0x9] sm:$0xff]  ;;  %v599_v9 = vld [vmem:[#allocation9 + $0x50] sm:$0xff]  ;;  %v2470_v35 = vpack.c.bf16 %v602_v22, %v601_v21 }
  0xa8   : > { %2161 = vmatmul.mubr.f32.vlgmr.msra.gmra.mrb[0].mxu0 %v342_v60  ;;  %v600_v10 = vld [vmem:[#allocation9 + $0x58] sm:$0xff]  ;;  %v1272_v22 = vld [vmem:[#allocation9 + $0x3b0] sm:$0xff] }
  0xa9   : > { %2163 = vmatprep.mubr.f32.mxu0 %v343_v61  ;;  %2415 = vmatpush3.bf16.msra.mxu0 %v2412_v57  ;;  %v589_v61 = vld [vmem:[#allocation9] sm:$0xff]  ;;  %v636_v30 = vld [vmem:[#allocation9 + $0x178] sm:$0xff] }
  0xaa   : > { %2417 = vmatprep.subr.bf16.mxu0 %v2416_v62  ;;  %2411 = vmatpush3.bf16.msra.mxu1 %v2410_v40 }
  0xab   : > { %2445 = vmatprep.subr.bf16.mxu1 %v2444_v44  ;;  %v2488_v44 = vpack.c.bf16 %v628_v38, %v627_v37  ;;  %v603_v38 = vld [vmem:[#allocation9 + $0x70] sm:$0xff] }
  0xac   : > { %2164 = vmatmul.mubr.f32.gmra.mrb[2].mxu0 %v344_v1  ;;  %v607_v1 = vld [vmem:[#allocation9 + $0x90] sm:$0xff] }
  0xad   : > { %2166 = vmatprep.mubr.f32.mxu0 %v345_v2  ;;  %2419 = vmatpush3.bf16.msra.mxu0 %v2416_v62  ;;  %v590_v62 = vld [vmem:[#allocation9 + $0x8] sm:$0xff] }
  0xae   : > { %2421 = vmatprep.subr.bf16.mxu0 %v2420_v3 }
  0xb0   : > { %2167 = vmatmul.mubr.f32.gmra.mrb[4].mxu0 %v346_v6 }
  0xb1   : > { %2169 = vmatprep.mubr.f32.mxu0 %v347_v7  ;;  %2423 = vmatpush3.bf16.msra.mxu0 %v2420_v3  ;;  %v608_v3 = vld [vmem:[#allocation9 + $0x98] sm:$0xff]  ;;  %v2446_v7 = vpack.c.bf16 %v590_v62, %v589_v61 }
  0xb2   : > { %2425 = vmatprep.subr.bf16.mxu0 %v2424_v8  ;;  %v2448_v15 = vpack.c.bf16 %v608_v3, %v607_v1  ;;  %v616_v62 = vld [vmem:[#allocation9 + $0xd8] sm:$0xff] }
  0xb3   : > { %v632_v1 = vld [vmem:[#allocation9 + $0x158] sm:$0xff] }
  0xb4   : > { %2170 = vmatmul.mubr.f32.gmra.mrb[6].mxu0 %v348_v11 }
  0xb5   : > { %2427 = vmatpush3.bf16.msra.mxu0 %v2424_v8 }
  0xb6   : > { %2429 = vmatprep.subr.bf16.mxu0 %v2428_v12 }
  0xb9   : > { %2431 = vmatpush3.bf16.msra.mxu0 %v2428_v12  ;;  %v609_v12 = vld [vmem:[#allocation9 + $0xa0] sm:$0xff] }
  0xba   : > { %2433 = vmatprep.subr.bf16.mxu0 %v2432_v19  ;;  %v2452_v26 = vpack.c.bf16 %v610_v18, %v609_v12  ;;  %v617_v12 = vld [vmem:[#allocation9 + $0xe0] sm:$0xff]  ;;  %v2466_v18 = vpack.c.bf16 %v600_v10, %v599_v9 }
  0xbb   : > { %v1270_v10 = vld [vmem:[#allocation9 + $0x3a0] sm:$0xff] }
  0xbd   : > { %2435 = vmatpush3.bf16.msra.mxu0 %v2432_v19 }
  0xbe   : > { %2437 = vmatprep.subr.bf16.mxu0 %v2436_v29 }
  0xc1   : > { %2439 = vmatpush3.bf16.msra.mxu0 %v2436_v29  ;;  %v594_v29 = vld [vmem:[#allocation9 + $0x28] sm:$0xff] }
  0xc2   : > { %2441 = vmatprep.subr.bf16.mxu0 %v2440_v39  ;;  %v2454_v40 = vpack.c.bf16 %v594_v29, %v593_v28  ;;  %v620_v28 = vld [vmem:[#allocation9 + $0xf8] sm:$0xff]  ;;  %v635_v29 = vld [vmem:[#allocation9 + $0x170] sm:$0xff] }
  0xc5   : > { %2443 = vmatpush3.bf16.msra.mxu0 %v2440_v39 }
  0xc6   : > { %2477 = vmatprep.subr.bf16.mxu0 %v2476_v46 }
 0x17b   : > { %v2162_v48 = vpop.f32.mrb[0].mxu0 }
 0x17c   : > { %v444_v49 = vadd.f32 %v2162_v48, %v1830_v47  ;;  %v438_v50 = vpop.f32.mrb[1].mxu0 }
 0x17d   : > { %v439_v51 = vadd.f32 %v1830_v47, %v438_v50  ;;  %v630_v50 = vld [vmem:[#allocation9 + $0x148] sm:$0xff] }
 0x17e   : > { %v3224_v52 = vmax.f32 %v444_v49, 0.0  ;;  %v629_v49 = vld [vmem:[#allocation9 + $0x140] sm:$0xff] }
 0x17f   : > { %v3226_v53 = vmax.f32 %v439_v51, 0.0  ;;  %v2165_v54 = vpop.f32.mrb[2].mxu0  ;;  %v2458_v51 = vpack.c.bf16 %v596_v43, %v595_v42  ;;  %v2492_v61 = vpack.c.bf16 %v630_v50, %v629_v49  ;;  %v1266_v42 = vld [vmem:[#allocation9 + $0x380] sm:$0xff]  ;;  %v1267_v43 = vld [vmem:[#allocation9 + $0x388] sm:$0xff] }
 0x180   : > { %510 = vst [vmem:[#allocation2 + $0x38] sm:$0xff] %v3224_v52  ;;  %v454_v55 = vadd.f32 %v2165_v54, %v1830_v47  ;;  %v448_v56 = vpop.f32.mrb[3].mxu0  ;;  %v2508_v49 = vpack.c.bf16 %v1267_v43, %v1266_v42  ;;  %v1250_v50 = vld [vmem:[#allocation9 + $0x300] sm:$0xff]  ;;  %v1259_v43 = vld [vmem:[#allocation9 + $0x348] sm:$0xff] }
 0x181   : > { %509 = vst [vmem:[#allocation2 + $0x20] sm:$0xff] %v3226_v53  ;;  %v449_v57 = vadd.f32 %v1830_v47, %v448_v56  ;;  %821 = vmatprep.mubr.f32.mxu1 %v3226_v53  ;;  %v598_v56 = vld [vmem:[#allocation9 + $0x48] sm:$0xff]  ;;  %v1258_v42 = vld [vmem:[#allocation9 + $0x340] sm:$0xff] }
 0x182   : > { %v3231_v58 = vmax.f32 %v454_v55, 0.0  ;;  %v597_v55 = vld [vmem:[#allocation9 + $0x40] sm:$0xff] }
 0x183   : > { %v3233_v59 = vmax.f32 %v449_v57, 0.0  ;;  %v2168_v60 = vpop.f32.mrb[4].mxu0  ;;  %v615_v57 = vld [vmem:[#allocation9 + $0xd0] sm:$0xff]  ;;  %v2462_v4 = vpack.c.bf16 %v598_v56, %v597_v55 }
 0x184   : > { %512 = vst [vmem:[#allocation2 + $0x68] sm:$0xff] %v3231_v58  ;;  %v464_v63 = vadd.f32 %v2168_v60, %v1830_v47  ;;  %v458_v0 = vpop.f32.mrb[5].mxu0  ;;  %v1268_v56 = vld [vmem:[#allocation9 + $0x390] sm:$0xff] }
 0x185   : > { %511 = vst [vmem:[#allocation2 + $0x50] sm:$0xff] %v3233_v59  ;;  %v459_v2 = vadd.f32 %v1830_v47, %v458_v0  ;;  %v631_v0 = vld [vmem:[#allocation9 + $0x150] sm:$0xff] }
 0x186   : > { %v3237_v6 = vmax.f32 %v464_v63, 0.0 }
 0x187   : > { %v3239_v8 = vmax.f32 %v459_v2, 0.0  ;;  %v2171_v11 = vpop.f32.mrb[6].mxu0  ;;  %v3249_v20 = vld [vmem:[#allocation2 + $0x39] sm:$0xff] }
 0x188   : > { %514 = vst [vmem:[#allocation2 + $0x98] sm:$0xff] %v3237_v6  ;;  %v3242_v13 = vld [vmem:[#allocation2 + $0x21] sm:$0xff]  ;;  %v474_v17 = vadd.f32 %v2171_v11, %v1830_v47  ;;  %v468_v19 = vpop.f32.mrb[7].mxu0  ;;  %v3257_v32 = vld [vmem:[#allocation2 + $0x37] sm:$0xff]  ;;  %v2496_v11 = vpack.c.bf16 %v632_v1, %v631_v0 }
 0x189   : > { %v3244_v14 = vld [vmem:[#allocation2 + $0x1f] sm:$0xff]  ;;  %2204 = vmatprep.mubr.f32.mxu0 %v3242_v13  ;;  %513 = vst [vmem:[#allocation2 + $0x80] sm:$0xff] %v3239_v8  ;;  %v469_v23 = vadd.f32 %v1830_v47, %v468_v19  ;;  %v1285_v1 = vld [vmem:[#allocation9 + $0x418] sm:$0xff] }
 0x18a   : > { %822 = vmatmul.mubr.f32.vlgmr.msra.gmra.mrb[0].mxu1 %v3244_v14  ;;  %2205 = vmatmul.mubr.f32.vlgmr.msra.gmra.mrb[8].mxu0 %v3249_v20  ;;  %v3252_v25 = vmax.f32 %v474_v17, 0.0  ;;  %v614_v47 = vld [vmem:[#allocation9 + $0xc8] sm:$0xff]  ;;  %v1284_v0 = vld [vmem:[#allocation9 + $0x410] sm:$0xff] }
 0x18b   : > { %2447 = vmatpush3.bf16.msra.mxu1 %v2446_v7  ;;  %2479 = vmatpush3.bf16.msra.mxu0 %v2476_v46  ;;  %v3255_v27 = vmax.f32 %v469_v23, 0.0  ;;  %v3264_v36 = vld [vmem:[#allocation2 + $0x69] sm:$0xff]  ;;  %v2464_v7 = vpack.c.bf16 %v616_v62, %v615_v57  ;;  %v634_v17 = vld [vmem:[#allocation9 + $0x168] sm:$0xff]  ;;  %v2544_v9 = vpack.c.bf16 %v1285_v1, %v1284_v0 }
 0x18c   : > { %826 = vmatprep.mubr.f32.mxu1 %v3224_v52  ;;  %2449 = vmatprep.subr.bf16.mxu1 %v2448_v15  ;;  %v3259_v33 = vld [vmem:[#allocation2 + $0x51] sm:$0xff]  ;;  %516 = vst [vmem:[#allocation2 + $0xc8] sm:$0xff] %v3252_v25  ;;  %v3278_v60 = vld [vmem:[#allocation2 + $0x67] sm:$0xff] }
 0x18d   : > { %2481 = vmatprep.subr.bf16.mxu0 %v2480_v16  ;;  %2207 = vmatprep.mubr.f32.mxu0 %v3259_v33  ;;  %515 = vst [vmem:[#allocation2 + $0xb0] sm:$0xff] %v3255_v27  ;;  %v3268_v39 = vld [vmem:[#allocation2 + $0x4f] sm:$0xff]  ;;  %v618_v15 = vld [vmem:[#allocation9 + $0xe8] sm:$0xff] }
 0x18e   : > { %827 = vmatmul.mubr.f32.gmra.mrb[2].mxu1 %v3257_v32  ;;  %2208 = vmatmul.mubr.f32.gmra.mrb[10].mxu0 %v3264_v36  ;;  %v613_v46 = vld [vmem:[#allocation9 + $0xc0] sm:$0xff]  ;;  %v2468_v19 = vpack.c.bf16 %v618_v15, %v617_v12  ;;  %v1269_v57 = vld [vmem:[#allocation9 + $0x398] sm:$0xff]  ;;  %v1279_v1 = vld [vmem:[#allocation9 + $0x3e8] sm:$0xff] }
 0x18f   : > { %2451 = vmatpush3.bf16.msra.mxu1 %v2450_v24  ;;  %831 = vmatprep.mubr.f32.mxu1 %v3233_v59  ;;  %v3275_v48 = vld [vmem:[#allocation2 + $0x99] sm:$0xff]  ;;  %v2460_v54 = vpack.c.bf16 %v614_v47, %v613_v46  ;;  %v1286_v15 = vld [vmem:[#allocation9 + $0x420] sm:$0xff] }
 0x190   : > { %2483 = vmatpush3.bf16.msra.mxu0 %v2480_v16  ;;  %2453 = vmatprep.subr.bf16.mxu1 %v2452_v26  ;;  %v3271_v45 = vld [vmem:[#allocation2 + $0x81] sm:$0xff]  ;;  %v633_v16 = vld [vmem:[#allocation9 + $0x160] sm:$0xff]  ;;  %v1283_v46 = vld [vmem:[#allocation9 + $0x408] sm:$0xff] }
 0x191   : > { %2485 = vmatprep.subr.bf16.mxu0 %v2484_v34  ;;  %2210 = vmatprep.mubr.f32.mxu0 %v3271_v45  ;;  %v3288_v3 = vld [vmem:[#allocation2 + $0x7f] sm:$0xff]  ;;  %v3293_v23 = vld [vmem:[#allocation2 + $0x97] sm:$0xff]  ;;  %v2500_v24 = vpack.c.bf16 %v634_v17, %v633_v16 }
 0x192   : > { %832 = vmatmul.mubr.f32.gmra.mrb[4].mxu1 %v3268_v39  ;;  %2211 = vmatmul.mubr.f32.gmra.mrb[12].mxu0 %v3275_v48  ;;  %v619_v26 = vld [vmem:[#allocation9 + $0xf0] sm:$0xff]  ;;  %v1287_v16 = vld [vmem:[#allocation9 + $0x428] sm:$0xff]  ;;  %v1254_v17 = vld [vmem:[#allocation9 + $0x320] sm:$0xff] }
 0x193   : > { %2455 = vmatpush3.bf16.msra.mxu1 %v2454_v40  ;;  %836 = vmatprep.mubr.f32.mxu1 %v3231_v58  ;;  %v3285_v2 = vld [vmem:[#allocation2 + $0xc9] sm:$0xff]  ;;  %v2472_v37 = vpack.c.bf16 %v620_v28, %v619_v26  ;;  %v2548_v21 = vpack.c.bf16 %v1287_v16, %v1286_v15  ;;  %v1288_v26 = vld [vmem:[#allocation9 + $0x430] sm:$0xff] }
 0x194   : > { %2487 = vmatpush3.bf16.msra.mxu0 %v2484_v34  ;;  %2457 = vmatprep.subr.bf16.mxu1 %v2456_v41  ;;  %v3281_v63 = vld [vmem:[#allocation2 + $0xb1] sm:$0xff]  ;;  %v604_v40 = vld [vmem:[#allocation9 + $0x78] sm:$0xff]  ;;  %v2504_v41 = vpack.c.bf16 %v636_v30, %v635_v29  ;;  %v1256_v29 = vld [vmem:[#allocation9 + $0x330] sm:$0xff] }
 0x195   : > { %2489 = vmatprep.subr.bf16.mxu0 %v2488_v44  ;;  %2213 = vmatprep.mubr.f32.mxu0 %v3281_v63  ;;  %v3297_v34 = vld [vmem:[#allocation2 + $0xaf] sm:$0xff]  ;;  %v2474_v47 = vpack.c.bf16 %v604_v40, %v603_v38  ;;  %v1296_v16 = vld [vmem:[#allocation9 + $0x470] sm:$0xff] }
 0x196   : > { %837 = vmatmul.mubr.f32.gmra.mrb[6].mxu1 %v3278_v60  ;;  %2214 = vmatmul.mubr.f32.gmra.mrb[14].mxu0 %v3285_v2  ;;  %v1289_v28 = vld [vmem:[#allocation9 + $0x438] sm:$0xff]  ;;  %v1290_v40 = vld [vmem:[#allocation9 + $0x440] sm:$0xff] }
 0x197   : > { %2459 = vmatpush3.bf16.msra.mxu1 %v2458_v51  ;;  %841 = vmatprep.mubr.f32.mxu1 %v3239_v8  ;;  %v1251_v51 = vld [vmem:[#allocation9 + $0x308] sm:$0xff]  ;;  %v1257_v30 = vld [vmem:[#allocation9 + $0x338] sm:$0xff]  ;;  %v1278_v0 = vld [vmem:[#allocation9 + $0x3e0] sm:$0xff] }
 0x198   : > { %2491 = vmatpush3.bf16.msra.mxu0 %v2488_v44  ;;  %2461 = vmatprep.subr.bf16.mxu1 %v2460_v54  ;;  %v1282_v44 = vld [vmem:[#allocation9 + $0x400] sm:$0xff]  ;;  %v3301_v54 = vld [vmem:[#allocation2 + $0xc7] sm:$0xff]  ;;  %v2510_v62 = vpack.c.bf16 %v1251_v51, %v1250_v50  ;;  %v2522_v38 = vpack.c.bf16 %v1257_v30, %v1256_v29 }
 0x199   : > { %2493 = vmatprep.subr.bf16.mxu0 %v2492_v61  ;;  %2248 = vmatprep.mubr.f32.mxu0 %v549_v5  ;;  %v2540_v55 = vpack.c.bf16 %v1283_v46, %v1282_v44  ;;  %v1253_v5 = vld [vmem:[#allocation9 + $0x318] sm:$0xff]  ;;  %v1276_v46 = vld [vmem:[#allocation9 + $0x3d0] sm:$0xff] }
 0x19a   : > { %842 = vmatmul.mubr.f32.gmra.mrb[8].mxu1 %v3288_v3  ;;  %v1292_v50 = vld [vmem:[#allocation9 + $0x450] sm:$0xff]  ;;  %v1293_v51 = vld [vmem:[#allocation9 + $0x458] sm:$0xff] }
 0x19b   : > { %2463 = vmatpush3.bf16.msra.mxu1 %v2462_v4  ;;  %846 = vmatprep.mubr.f32.mxu1 %v3237_v6  ;;  %v1252_v4 = vld [vmem:[#allocation9 + $0x310] sm:$0xff]  ;;  %v1281_v15 = vld [vmem:[#allocation9 + $0x3f8] sm:$0xff] }
 0x19c   : > { %2495 = vmatpush3.bf16.msra.mxu0 %v2492_v61  ;;  %2465 = vmatprep.subr.bf16.mxu1 %v2464_v7  ;;  %v517_v61 = vld [vmem:[#allocation2 + $0x7] sm:$0xff]  ;;  %v2512_v7 = vpack.c.bf16 %v1269_v57, %v1268_v56  ;;  %v2514_v12 = vpack.c.bf16 %v1253_v5, %v1252_v4  ;;  %v1294_v4 = vld [vmem:[#allocation9 + $0x460] sm:$0xff]  ;;  %v1295_v5 = vld [vmem:[#allocation9 + $0x468] sm:$0xff] }
 0x19d   : > { %2497 = vmatprep.subr.bf16.mxu0 %v2496_v11  ;;  %v1260_v57 = vld [vmem:[#allocation9 + $0x350] sm:$0xff]  ;;  %v1554_v30 = vld [vmem:[#allocation10 + $0x78] sm:$0xff] }
 0x19e   : > { %847 = vmatmul.mubr.f32.gmra.mrb[10].mxu1 %v3293_v23  ;;  %v1553_v29 = vld [vmem:[#allocation10 + $0x70] sm:$0xff] }
 0x19f   : > { %2467 = vmatpush3.bf16.msra.mxu1 %v2466_v18  ;;  %851 = vmatprep.mubr.f32.mxu1 %v3255_v27  ;;  %v1255_v18 = vld [vmem:[#allocation9 + $0x328] sm:$0xff] }
 0x1a0   : > { %2499 = vmatpush3.bf16.msra.mxu0 %v2496_v11  ;;  %2469 = vmatprep.subr.bf16.mxu1 %v2468_v19  ;;  %v1271_v11 = vld [vmem:[#allocation9 + $0x3a8] sm:$0xff] }
 0x1a1   : > { %2501 = vmatprep.subr.bf16.mxu0 %v2500_v24  ;;  %v2516_v19 = vpack.c.bf16 %v1271_v11, %v1270_v10  ;;  %v1263_v10 = vld [vmem:[#allocation9 + $0x368] sm:$0xff]  ;;  %v2564_v11 = vpack.c.bf16 %v1295_v5, %v1294_v4 }
 0x1a2   : > { %852 = vmatmul.mubr.f32.gmra.mrb[12].mxu1 %v3297_v34 }
 0x1a3   : > { %2471 = vmatpush3.bf16.msra.mxu1 %v2470_v35  ;;  %856 = vmatprep.mubr.f32.mxu1 %v3252_v25  ;;  %v1274_v35 = vld [vmem:[#allocation9 + $0x3c0] sm:$0xff] }
 0x1a4   : > { %2503 = vmatpush3.bf16.msra.mxu0 %v2500_v24  ;;  %2473 = vmatprep.subr.bf16.mxu1 %v2472_v37  ;;  %v1273_v24 = vld [vmem:[#allocation9 + $0x3b8] sm:$0xff]  ;;  %v1275_v37 = vld [vmem:[#allocation9 + $0x3c8] sm:$0xff] }
 0x1a5   : > { %2505 = vmatprep.subr.bf16.mxu0 %v2504_v41  ;;  %v2524_v44 = vpack.c.bf16 %v1275_v37, %v1274_v35 }
 0x1a6   : > { %857 = vmatmul.mubr.f32.gmra.mrb[14].mxu1 %v3301_v54 }
 0x1a7   : > { %2475 = vmatpush3.bf16.msra.mxu1 %v2474_v47  ;;  %1031 = vmatprep.mubr.f32.mxu1 %v2922_v31  ;;  %v1277_v47 = vld [vmem:[#allocation9 + $0x3d8] sm:$0xff] }
 0x1a8   : > { %2507 = vmatpush3.bf16.msra.mxu0 %v2504_v41  ;;  %2509 = vmatprep.subr.bf16.mxu1 %v2508_v49  ;;  %v1291_v41 = vld [vmem:[#allocation9 + $0x448] sm:$0xff]  ;;  %v2528_v56 = vpack.c.bf16 %v1277_v47, %v1276_v46 }
 0x1a9   : > { %2541 = vmatprep.subr.bf16.mxu0 %v2540_v55  ;;  %v2556_v49 = vpack.c.bf16 %v1291_v41, %v1290_v40 }
 0x1aa   : > { %1032 = vmatmul.mubr.f32.vlgmr.msra.gmra.mrb[16].mxu1 %v517_v61  ;;  %v1261_v61 = vld [vmem:[#allocation9 + $0x358] sm:$0xff] }
 0x1ab   : > { %2249 = vmatmul.mubr.f32.vlgmr.msra.gmra.mrb[8].mxu0 %v3242_v13  ;;  %2511 = vmatpush3.bf16.msra.mxu1 %v2510_v62  ;;  %v2518_v13 = vpack.c.bf16 %v1255_v18, %v1254_v17  ;;  %v2560_v62 = vpack.c.bf16 %v1293_v51, %v1292_v50  ;;  %v1297_v17 = vld [vmem:[#allocation9 + $0x478] sm:$0xff] }
 0x1ac   : > { %2251 = vmatprep.mubr.f32.mxu0 %v3249_v20  ;;  %2543 = vmatpush3.bf16.msra.mxu0 %v2540_v55  ;;  %v2526_v55 = vpack.c.bf16 %v1259_v43, %v1258_v42 }
 0x1ad   : > { %1036 = vmatprep.mubr.f32.mxu1 %v3226_v53  ;;  %2513 = vmatprep.subr.bf16.mxu1 %v2512_v7  ;;  %v2520_v53 = vpack.c.bf16 %v1273_v24, %v1272_v22  ;;  %v2530_v7 = vpack.c.bf16 %v1261_v61, %v1260_v57  ;;  %v1265_v22 = vld [vmem:[#allocation9 + $0x378] sm:$0xff]  ;;  %v2568_v24 = vpack.c.bf16 %v1297_v17, %v1296_v16 }
 0x1ae   : > { %2545 = vmatprep.subr.bf16.mxu0 %v2544_v9  ;;  %1037 = vmatmul.mubr.f32.gmra.mrb[18].mxu1 %v3244_v14  ;;  %v2552_v14 = vpack.c.bf16 %v1289_v28, %v1288_v26  ;;  %v1552_v26 = vld [vmem:[#allocation10 + $0x68] sm:$0xff] }
 0x1af   : > { %2252 = vmatmul.mubr.f32.gmra.mrb[10].mxu0 %v3259_v33  ;;  %2515 = vmatpush3.bf16.msra.mxu1 %v2514_v12  ;;  %v1280_v12 = vld [vmem:[#allocation9 + $0x3f0] sm:$0xff] }
 0x1b0   : > { %2254 = vmatprep.mubr.f32.mxu0 %v3264_v36  ;;  %2547 = vmatpush3.bf16.msra.mxu0 %v2544_v9  ;;  %v1262_v9 = vld [vmem:[#allocation9 + $0x360] sm:$0xff] }
 0x1b1   : > { %1041 = vmatprep.mubr.f32.mxu1 %v3224_v52  ;;  %2517 = vmatprep.subr.bf16.mxu1 %v2516_v19  ;;  %v2534_v18 = vpack.c.bf16 %v1263_v10, %v1262_v9  ;;  %v2536_v19 = vpack.c.bf16 %v1281_v15, %v1280_v12 }
 0x1b2   : > { %2549 = vmatprep.subr.bf16.mxu0 %v2548_v21  ;;  %1042 = vmatmul.mubr.f32.gmra.mrb[20].mxu1 %v3257_v32 }
 0x1b3   : > { %2255 = vmatmul.mubr.f32.gmra.mrb[12].mxu0 %v3271_v45  ;;  %2519 = vmatpush3.bf16.msra.mxu1 %v2518_v13 }
 0x1b4   : > { %2257 = vmatprep.mubr.f32.mxu0 %v3275_v48  ;;  %2551 = vmatpush3.bf16.msra.mxu0 %v2548_v21  ;;  %v1264_v21 = vld [vmem:[#allocation9 + $0x370] sm:$0xff] }
 0x1b5   : > { %1046 = vmatprep.mubr.f32.mxu1 %v3233_v59  ;;  %2521 = vmatprep.subr.bf16.mxu1 %v2520_v53  ;;  %v2538_v13 = vpack.c.bf16 %v1265_v22, %v1264_v21  ;;  %v2600_v53 = vpack.c.bf16 %v1554_v30, %v1553_v29 }
 0x1b6   : > { %2553 = vmatprep.subr.bf16.mxu0 %v2552_v14  ;;  %1047 = vmatmul.mubr.f32.gmra.mrb[22].mxu1 %v3268_v39 }
 0x1b7   : > { %2258 = vmatmul.mubr.f32.gmra.mrb[14].mxu0 %v3281_v63  ;;  %2523 = vmatpush3.bf16.msra.mxu1 %v2522_v38 }
 0x1b8   : > { %2555 = vmatpush3.bf16.msra.mxu0 %v2552_v14  ;;  %2292 = vmatprep.mubr.f32.mxu0 %v3249_v20  ;;  %v2532_v20 = vpack.c.bf16 %v1279_v1, %v1278_v0 }
 0x1b9   : > { %1051 = vmatprep.mubr.f32.mxu1 %v3231_v58  ;;  %2525 = vmatprep.subr.bf16.mxu1 %v2524_v44 }
 0x1ba   : > { %2557 = vmatprep.subr.bf16.mxu0 %v2556_v49  ;;  %1052 = vmatmul.mubr.f32.gmra.mrb[24].mxu1 %v3278_v60 }
 0x1bb   : > { %2527 = vmatpush3.bf16.msra.mxu1 %v2526_v55  ;;  %1056 = vmatprep.mubr.f32.mxu1 %v3239_v8 }
 0x1bc   : > { %2559 = vmatpush3.bf16.msra.mxu0 %v2556_v49  ;;  %2529 = vmatprep.subr.bf16.mxu1 %v2528_v56 }
 0x1bd   : > { %2561 = vmatprep.subr.bf16.mxu0 %v2560_v62 }
 0x1be   : > { %1057 = vmatmul.mubr.f32.gmra.mrb[26].mxu1 %v3288_v3 }
 0x1bf   : > { %2531 = vmatpush3.bf16.msra.mxu1 %v2530_v7  ;;  %1061 = vmatprep.mubr.f32.mxu1 %v3237_v6 }
 0x1c0   : > { %2563 = vmatpush3.bf16.msra.mxu0 %v2560_v62  ;;  %2533 = vmatprep.subr.bf16.mxu1 %v2532_v20 }
 0x1c1   : > { %2565 = vmatprep.subr.bf16.mxu0 %v2564_v11 }
 0x1c2   : > { %1062 = vmatmul.mubr.f32.gmra.mrb[28].mxu1 %v3293_v23 }
 0x1c3   : > { %2535 = vmatpush3.bf16.msra.mxu1 %v2534_v18  ;;  %1066 = vmatprep.mubr.f32.mxu1 %v3255_v27 }
 0x1c4   : > { %2567 = vmatpush3.bf16.msra.mxu0 %v2564_v11  ;;  %2537 = vmatprep.subr.bf16.mxu1 %v2536_v19 }
 0x1c5   : > { %2569 = vmatprep.subr.bf16.mxu0 %v2568_v24 }
 0x1c6   : > { %1067 = vmatmul.mubr.f32.gmra.mrb[30].mxu1 %v3297_v34 }
 0x1c7   : > { %2539 = vmatpush3.bf16.msra.mxu1 %v2538_v13  ;;  %1362 = vmatprep.mubr.f32.mxu1 %v3224_v52  ;;  %v1217_v52 = vld [vmem:[#allocation2 + $0xe1] sm:$0xff] }
 0x1c8   : > { %2571 = vmatpush3.bf16.msra.mxu0 %v2568_v24 }
 0x1ca   : > { %1363 = vmatmul.mubr.f32.vlgmr.msra.gmra.mrb[32].mxu1 %v3257_v32 }
 0x1cb   : > { %2293 = vmatmul.mubr.f32.vlgmr.msra.gmra.mrb[8].mxu0 %v3259_v33  ;;  %1367 = vmatprep.mubr.f32.mxu1 %v3233_v59  ;;  %v1539_v59 = vld [vmem:[#allocation10] sm:$0xff]  ;;  %v1542_v33 = vld [vmem:[#allocation10 + $0x18] sm:$0xff] }
 0x1cc   : > { %2295 = vmatprep.mubr.f32.mxu0 %v3264_v36 }
 0x1ce   : > { %1368 = vmatmul.mubr.f32.gmra.mrb[34].mxu1 %v3268_v39  ;;  %v1544_v39 = vld [vmem:[#allocation10 + $0x28] sm:$0xff] }
 0x1cf   : > { %2296 = vmatmul.mubr.f32.gmra.mrb[10].mxu0 %v3271_v45  ;;  %1372 = vmatprep.mubr.f32.mxu1 %v3231_v58  ;;  %v1185_v58 = vld [vmem:[#allocation2 + $0xdf] sm:$0xff] }
 0x1d0   : > { %2298 = vmatprep.mubr.f32.mxu0 %v3275_v48  ;;  %v1546_v48 = vld [vmem:[#allocation10 + $0x38] sm:$0xff] }
 0x1d2   : > { %1373 = vmatmul.mubr.f32.gmra.mrb[36].mxu1 %v3278_v60  ;;  %v1547_v60 = vld [vmem:[#allocation10 + $0x40] sm:$0xff] }
 0x1d3   : > { %2299 = vmatmul.mubr.f32.gmra.mrb[12].mxu0 %v3281_v63  ;;  %1377 = vmatprep.mubr.f32.mxu1 %v3239_v8  ;;  %v1540_v8 = vld [vmem:[#allocation10 + $0x8] sm:$0xff] }
 0x1d4   : > { %2301 = vmatprep.mubr.f32.mxu0 %v3285_v2  ;;  %v2572_v32 = vpack.c.bf16 %v1540_v8, %v1539_v59  ;;  %v1548_v63 = vld [vmem:[#allocation10 + $0x48] sm:$0xff] }
 0x1d5   : > { %v2588_v2 = vpack.c.bf16 %v1548_v63, %v1547_v60 }
 0x1d6   : > { %1378 = vmatmul.mubr.f32.gmra.mrb[38].mxu1 %v3288_v3  ;;  %2573 = vmatprep.subr.bf16.mxu1 %v2572_v32  ;;  %v1549_v3 = vld [vmem:[#allocation10 + $0x50] sm:$0xff] }
 0x1d7   : > { %2302 = vmatmul.mubr.f32.gmra.mrb[14].mxu0 %v1217_v52  ;;  %1382 = vmatprep.mubr.f32.mxu1 %v3237_v6  ;;  %v1541_v6 = vld [vmem:[#allocation10 + $0x10] sm:$0xff] }
 0x1d8   : > { %2575 = vmatpush3.bf16.msra.mxu1 %v2572_v32  ;;  %v2576_v36 = vpack.c.bf16 %v1542_v33, %v1541_v6 }
 0x1da   : > { %1383 = vmatmul.mubr.f32.gmra.mrb[40].mxu1 %v3293_v23  ;;  %2577 = vmatprep.subr.bf16.mxu1 %v2576_v36  ;;  %v1550_v23 = vld [vmem:[#allocation10 + $0x58] sm:$0xff] }
 0x1db   : > { %1387 = vmatprep.mubr.f32.mxu1 %v3255_v27  ;;  %v1543_v27 = vld [vmem:[#allocation10 + $0x20] sm:$0xff] }
 0x1dc   : > { %2579 = vmatpush3.bf16.msra.mxu1 %v2576_v36  ;;  %v2580_v45 = vpack.c.bf16 %v1544_v39, %v1543_v27 }
 0x1de   : > { %1388 = vmatmul.mubr.f32.gmra.mrb[42].mxu1 %v3297_v34  ;;  %2581 = vmatprep.subr.bf16.mxu1 %v2580_v45  ;;  %v2592_v34 = vpack.c.bf16 %v1550_v23, %v1549_v3 }
 0x1df   : > { %1392 = vmatprep.mubr.f32.mxu1 %v3252_v25  ;;  %v1545_v25 = vld [vmem:[#allocation10 + $0x30] sm:$0xff] }
 0x1e0   : > { %2583 = vmatpush3.bf16.msra.mxu1 %v2580_v45 }
 0x1e2   : > { %1393 = vmatmul.mubr.f32.gmra.mrb[44].mxu1 %v3301_v54  ;;  %v1551_v54 = vld [vmem:[#allocation10 + $0x60] sm:$0xff] }
 0x1e3   : > { %1397 = vmatprep.mubr.f32.mxu1 %v2922_v31  ;;  %v2584_v31 = vpack.c.bf16 %v1546_v48, %v1545_v25  ;;  %v2596_v28 = vpack.c.bf16 %v1552_v26, %v1551_v54 }
 0x1e5   : > { %2585 = vmatprep.subr.bf16.mxu1 %v2584_v31 }
 0x1e6   : > { %1398 = vmatmul.mubr.f32.gmra.mrb[46].mxu1 %v1185_v58 }
 0x1e7   : > { %2587 = vmatpush3.bf16.msra.mxu1 %v2584_v31 }
 0x1e8   : > { %2589 = vmatprep.subr.bf16.mxu1 %v2588_v2 }
 0x1eb   : > { %2591 = vmatpush3.bf16.msra.mxu1 %v2588_v2 }
 0x1ec   : > { %2593 = vmatprep.subr.bf16.mxu1 %v2592_v34 }
 0x1ef   : > { %2595 = vmatpush3.bf16.msra.mxu1 %v2592_v34 }
 0x1f0   : > { %2597 = vmatprep.subr.bf16.mxu1 %v2596_v28 }
 0x1f3   : > { %2599 = vmatpush3.bf16.msra.mxu1 %v2596_v28 }
 0x1f4   : > { %2601 = vmatprep.subr.bf16.mxu1 %v2600_v53 }
 0x1f7   : > { %2603 = vmatpush3.bf16.msra.mxu1 %v2600_v53 }
 0x25d   : > { %v1896_v14 = vpop.f32.mrb[0].mxu1 }
 0x25e   : > { %v1897_v35 = vpop.f32.mrb[1].mxu1 }
 0x25f   : > { %v1898_v37 = vadd.f32 %v1897_v35, %v1896_v14  ;;  %v1831_v35 = vld [vmem:[%s3432_s4] ss:$0 sm:$0xff] }
 0x261   : > { %v1899_v38 = vpop.f32.mrb[2].mxu1 }
 0x262   : > { %v1900_v40 = vpop.f32.mrb[3].mxu1 }
 0x263   : > { %v1901_v41 = vadd.f32 %v1900_v40, %v1899_v38 }
 0x265   : > { %v1902_v42 = vpop.f32.mrb[4].mxu1 }
 0x266   : > { %v1903_v43 = vpop.f32.mrb[5].mxu1 }
 0x267   : > { %v1904_v44 = vadd.f32 %v1903_v43, %v1902_v42 }
 0x269   : > { %v1905_v46 = vpop.f32.mrb[6].mxu1 }
 0x26a   : > { %v1906_v47 = vpop.f32.mrb[7].mxu1 }
 0x26b   : > { %v1907_v49 = vadd.f32 %v1906_v47, %v1905_v46 }
 0x26d   : > { %v1908_v50 = vpop.f32.mrb[8].mxu1 }
 0x26e   : > { %v1909_v51 = vpop.f32.mrb[9].mxu1 }
 0x26f   : > { %v1910_v55 = vadd.f32 %v1909_v51, %v1908_v50 }
 0x271   : > { %v1911_v56 = vpop.f32.mrb[10].mxu1 }
 0x272   : > { %v1912_v57 = vpop.f32.mrb[11].mxu1 }
 0x273   : > { %v1913_v61 = vadd.f32 %v1912_v57, %v1911_v56 }
 0x275   : > { %v1914_v62 = vpop.f32.mrb[12].mxu1 }
 0x276   : > { %v1915_v0 = vpop.f32.mrb[13].mxu1 }
 0x277   : > { %v1916_v1 = vadd.f32 %v1915_v0, %v1914_v62 }
 0x279   : > { %v1917_v4 = vpop.f32.mrb[14].mxu1 }
 0x27a   : > { %v1918_v5 = vpop.f32.mrb[15].mxu1 }
 0x27b   : > { %v1919_v7 = vadd.f32 %v1918_v5, %v1917_v4 }
 0x27d   : > { %v1976_v20 = vpop.f32.mrb[16].mxu1 }
 0x27e   : > { %v1977_v9 = vpop.f32.mrb[17].mxu1 }
 0x27f   : > { %v1978_v10 = vadd.f32 %v1977_v9, %v1976_v20 }
 0x281   : > { %v2607_v11 = vadd.f32 %v1978_v10, %v1898_v37  ;;  %v1979_v12 = vpop.f32.mrb[18].mxu1 }
 0x282   : > { %v1980_v15 = vpop.f32.mrb[19].mxu1 }
 0x283   : > { %v1981_v16 = vadd.f32 %v1980_v15, %v1979_v12 }
 0x285   : > { %v2604_v17 = vadd.f32 %v1981_v16, %v1901_v41  ;;  %v1982_v18 = vpop.f32.mrb[20].mxu1 }
 0x286   : > { %v1983_v19 = vpop.f32.mrb[21].mxu1 }
 0x287   : > { %v1984_v21 = vadd.f32 %v1983_v19, %v1982_v18 }
 0x289   : > { %v2613_v22 = vadd.f32 %v1984_v21, %v1904_v44  ;;  %v1985_v24 = vpop.f32.mrb[22].mxu1 }
 0x28a   : > { %v1986_v13 = vpop.f32.mrb[23].mxu1 }
 0x28b   : > { %v1987_v52 = vadd.f32 %v1986_v13, %v1985_v24 }
 0x28d   : > { %v2610_v58 = vadd.f32 %v1987_v52, %v1907_v49  ;;  %v1988_v59 = vpop.f32.mrb[24].mxu1 }
 0x28e   : > { %v1989_v8 = vpop.f32.mrb[25].mxu1 }
 0x28f   : > { %v1990_v32 = vadd.f32 %v1989_v8, %v1988_v59 }
 0x291   : > { %v2619_v6 = vadd.f32 %v1990_v32, %v1910_v55  ;;  %v1991_v33 = vpop.f32.mrb[26].mxu1 }
 0x292   : > { %v1992_v36 = vpop.f32.mrb[27].mxu1 }
 0x293   : > { %v1993_v27 = vadd.f32 %v1992_v36, %v1991_v33 }
 0x295   : > { %v2616_v39 = vadd.f32 %v1993_v27, %v1913_v61  ;;  %v1994_v45 = vpop.f32.mrb[28].mxu1 }
 0x296   : > { %v1995_v25 = vpop.f32.mrb[29].mxu1 }
 0x297   : > { %v1996_v48 = vadd.f32 %v1995_v25, %v1994_v45 }
 0x299   : > { %v2625_v31 = vadd.f32 %v1996_v48, %v1916_v1  ;;  %v1997_v60 = vpop.f32.mrb[30].mxu1 }
 0x29a   : > { %v1998_v63 = vpop.f32.mrb[31].mxu1 }
 0x29b   : > { %v1999_v2 = vadd.f32 %v1998_v63, %v1997_v60 }
 0x29d   : > { %v3348_v3 = vadd.f32 %v1999_v2, %v1919_v7  ;;  %v2056_v23 = vpop.f32.mrb[32].mxu1 }
 0x29e   : > { %v2294_v34 = vpop.f32.mrb[8].mxu0  ;;  %v2057_v54 = vpop.f32.mrb[33].mxu1 }
 0x29f   : > { %v1469_v26 = vpop.f32.mrb[9].mxu0  ;;  %v2058_v28 = vadd.f32 %v2057_v54, %v2056_v23 }
 0x2a1   : > { %v2608_v29 = vadd.f32 %v2607_v11, %v2058_v28  ;;  %v2059_v30 = vpop.f32.mrb[34].mxu1 }
 0x2a2   : > { %v2297_v53 = vpop.f32.mrb[10].mxu0  ;;  %v2060_v14 = vpop.f32.mrb[35].mxu1 }
 0x2a3   : > { %v2609_v37 = vadd.f32 %v2608_v29, %v1469_v26  ;;  %v1479_v38 = vpop.f32.mrb[11].mxu0  ;;  %v2061_v40 = vadd.f32 %v2060_v14, %v2059_v30  ;;  %v1556_v26 = vld [vmem:[%s3177_s8 + $0x8] sm:$0xff]  ;;  %v1555_v30 = vld [vmem:[%s3177_s8] sm:$0xff] }
 0x2a5   : > { %v2605_v41 = vadd.f32 %v2604_v17, %v2061_v40  ;;  %v2062_v42 = vpop.f32.mrb[36].mxu1  ;;  %v1523_v43 = vadd.f32 %v2609_v37, %v1831_v35 }
 0x2a6   : > { %v2300_v44 = vpop.f32.mrb[12].mxu0  ;;  %v2063_v46 = vpop.f32.mrb[37].mxu1 }
 0x2a7   : > { %v2606_v47 = vadd.f32 %v2605_v41, %v2294_v34  ;;  %v1489_v49 = vpop.f32.mrb[13].mxu0  ;;  %v2064_v50 = vadd.f32 %v2063_v46, %v2062_v42  ;;  %v1531_v51 = vmax.f32 %v1523_v43, 0.0  ;;  %v1557_v43 = vld [vmem:[%s3177_s8 + $0x10] sm:$0xff] }
 0x2a9   : > { %v1524_v55 = vadd.f32 %v2606_v47, %v1831_v35  ;;  %v2614_v56 = vadd.f32 %v2613_v22, %v2064_v50  ;;  %v2065_v57 = vpop.f32.mrb[38].mxu1  ;;  %2336 = vmatprep.mubr.f32.mxu1 %v1531_v51 }
 0x2aa   : > { %v2303_v61 = vpop.f32.mrb[14].mxu0  ;;  %v2066_v62 = vpop.f32.mrb[39].mxu1 }
 0x2ab   : > { %v1532_v0 = vmax.f32 %v1524_v55, 0.0  ;;  %v2615_v1 = vadd.f32 %v2614_v56, %v1479_v38  ;;  %v1499_v4 = vpop.f32.mrb[15].mxu0  ;;  %v2067_v5 = vadd.f32 %v2066_v62, %v2065_v57  ;;  %v1560_v55 = vld [vmem:[%s3177_s8 + $0x28] sm:$0xff] }
 0x2ad   : > { %v2611_v7 = vadd.f32 %v2610_v58, %v2067_v5  ;;  %v2068_v20 = vpop.f32.mrb[40].mxu1  ;;  %2337 = vmatmul.mubr.f32.vlgmr.msra.gmra.mrb[48].mxu1 %v1532_v0  ;;  %v1525_v9 = vadd.f32 %v2615_v1, %v1831_v35 }
 0x2ae   : > { %v2069_v10 = vpop.f32.mrb[41].mxu1 }
 0x2af   : > { %v2612_v11 = vadd.f32 %v2611_v7, %v2297_v53  ;;  %v2070_v12 = vadd.f32 %v2069_v10, %v2068_v20  ;;  %v1533_v15 = vmax.f32 %v1525_v9, 0.0  ;;  %v1562_v20 = vld [vmem:[%s3177_s8 + $0x38] sm:$0xff] }
 0x2b1   : > { %v2620_v16 = vadd.f32 %v2619_v6, %v2070_v12  ;;  %v2071_v17 = vpop.f32.mrb[42].mxu1  ;;  %2339 = vmatprep.mubr.f32.mxu1 %v1533_v15  ;;  %v1526_v18 = vadd.f32 %v2612_v11, %v1831_v35  ;;  %v1561_v11 = vld [vmem:[%s3177_s8 + $0x30] sm:$0xff] }
 0x2b2   : > { %v2072_v19 = vpop.f32.mrb[43].mxu1 }
 0x2b3   : > { %v2621_v21 = vadd.f32 %v2620_v16, %v1489_v49  ;;  %v2073_v22 = vadd.f32 %v2072_v19, %v2071_v17  ;;  %v1534_v24 = vmax.f32 %v1526_v18, 0.0 }
 0x2b5   : > { %v2617_v13 = vadd.f32 %v2616_v39, %v2073_v22  ;;  %v2074_v52 = vpop.f32.mrb[44].mxu1  ;;  %2340 = vmatmul.mubr.f32.gmra.mrb[50].mxu1 %v1534_v24  ;;  %v1527_v59 = vadd.f32 %v2621_v21, %v1831_v35 }
 0x2b6   : > { %v2075_v58 = vpop.f32.mrb[45].mxu1 }
 0x2b7   : > { %v2618_v8 = vadd.f32 %v2617_v13, %v2300_v44  ;;  %v2076_v32 = vadd.f32 %v2075_v58, %v2074_v52  ;;  %v1535_v33 = vmax.f32 %v1527_v59, 0.0 }
 0x2b9   : > { %v2626_v36 = vadd.f32 %v2625_v31, %v2076_v32  ;;  %v2077_v27 = vpop.f32.mrb[46].mxu1  ;;  %2342 = vmatprep.mubr.f32.mxu1 %v1535_v33  ;;  %v1528_v6 = vadd.f32 %v2618_v8, %v1831_v35  ;;  %v1832_v31 = vld [vmem:[%s3434_s6] ss:$0 sm:$0xff] }
 0x2ba   : > { %v2078_v45 = vpop.f32.mrb[47].mxu1 }
 0x2bb   : > { %v2627_v25 = vadd.f32 %v2626_v36, %v1499_v4  ;;  %v2079_v48 = vadd.f32 %v2078_v45, %v2077_v27  ;;  %v1536_v60 = vmax.f32 %v1528_v6, 0.0 }
 0x2bd   : > { %v2623_v63 = vadd.f32 %v3348_v3, %v2079_v48  ;;  %2343 = vmatmul.mubr.f32.gmra.mrb[52].mxu1 %v1536_v60  ;;  %v1529_v39 = vadd.f32 %v2627_v25, %v1831_v35 }
 0x2bf   : > { %v2624_v2 = vadd.f32 %v2623_v63, %v2303_v61  ;;  %v1537_v23 = vmax.f32 %v1529_v39, 0.0  ;;  %v1559_v61 = vld [vmem:[%s3177_s8 + $0x20] sm:$0xff] }
 0x2c1   : > { %2345 = vmatprep.mubr.f32.mxu1 %v1537_v23  ;;  %v1530_v34 = vadd.f32 %v2624_v2, %v1831_v35  ;;  %v1558_v35 = vld [vmem:[%s3177_s8 + $0x18] sm:$0xff]  ;;  %s2840_s8 = scalar_lea.vmem %s3377_s20, 1024 }
 0x2c2   : > { %p2841_p10 = scmp.ne.s32.totalorder %s3377_s20, %s2840_s8  ;;  %p2848_p1 = scmp.lt.s32.totalorder %s2846_s9, %s2840_s8 }
 0x2c3   : > { %v1538_v54 = vmax.f32 %v1530_v34, 0.0 }
 0x2c4   : > { %p2842_p3 = pnand %p2841_p10, %p3120_p5  ;;  %p2849_p2 = por %p2848_p1, %p2847_p12 }
 0x2c5   : > { %2346 = vmatmul.mubr.f32.gmra.mrb[54].mxu1 %v1538_v54 }
 0x2c6   : > { %p2843_p7 = pneg %p2842_p3 }
 0x2c8   : > { %p2850_p4 = pnand %p2849_p2, %p2843_p7 }
 0x380   : > { %v2338_v28 = vpop.f32.mrb[48].mxu1 }
 0x381   : > { %v1642_v29 = vadd.f32 %v2338_v28, %v1832_v31  ;;  %v1636_v3 = vpop.f32.mrb[49].mxu1 }
 0x382   : > { %v1637_v53 = vadd.f32 %v1832_v31, %v1636_v3 }
 0x383   : > { %v1676_v14 = vadd.f32 %v1642_v29, %v1556_v26 }
 0x384   : > { %v1675_v37 = vadd.f32 %v1637_v53, %v1555_v30 }
 0x385   : > { %v1684_v38 = vmax.f32 %v1676_v14, 0.0 }
 0x386   : > { %v1683_v40 = vmax.f32 %v1675_v37, 0.0 }
 0x387   : > { %1692 = vst [vmem:[%s3361_s12 + $0x8] sm:$0xff] %v1684_v38 }
 0x388   : > { %1691 = vst [vmem:[%s3361_s12] sm:$0xff] %v1683_v40  ;;  %v2341_v41 = vpop.f32.mrb[50].mxu1 }
 0x389   : > { %v1652_v42 = vadd.f32 %v2341_v41, %v1832_v31  ;;  %v1646_v44 = vpop.f32.mrb[51].mxu1 }
 0x38a   : > { %v1647_v46 = vadd.f32 %v1832_v31, %v1646_v44 }
 0x38b   : > { %v1678_v47 = vadd.f32 %v1652_v42, %v1558_v35 }
 0x38c   : > { %v1677_v49 = vadd.f32 %v1647_v46, %v1557_v43 }
 0x38d   : > { %v1686_v50 = vmax.f32 %v1678_v47, 0.0 }
 0x38e   : > { %v1685_v51 = vmax.f32 %v1677_v49, 0.0 }
 0x38f   : > { %1694 = vst [vmem:[%s3361_s12 + $0x18] sm:$0xff] %v1686_v50 }
 0x390   : > { %1693 = vst [vmem:[%s3361_s12 + $0x10] sm:$0xff] %v1685_v51  ;;  %v2344_v56 = vpop.f32.mrb[52].mxu1 }
 0x391   : > { %v1662_v57 = vadd.f32 %v2344_v56, %v1832_v31  ;;  %v1656_v62 = vpop.f32.mrb[53].mxu1 }
 0x392   : > { %v1657_v0 = vadd.f32 %v1832_v31, %v1656_v62 }
 0x393   : > { %v1680_v1 = vadd.f32 %v1662_v57, %v1560_v55 }
 0x394   : > { %v1679_v4 = vadd.f32 %v1657_v0, %v1559_v61 }
 0x395   : > { %v1688_v5 = vmax.f32 %v1680_v1, 0.0 }
 0x396   : > { %v1687_v7 = vmax.f32 %v1679_v4, 0.0 }
 0x397   : > { %1696 = vst [vmem:[%s3361_s12 + $0x28] sm:$0xff] %v1688_v5 }
 0x398   : > { %1695 = vst [vmem:[%s3361_s12 + $0x20] sm:$0xff] %v1687_v7  ;;  %v2347_v9 = vpop.f32.mrb[54].mxu1 }
 0x399   : > { %v1672_v10 = vadd.f32 %v2347_v9, %v1832_v31  ;;  %v1666_v12 = vpop.f32.mrb[55].mxu1 }
 0x39a   : > { %v1667_v15 = vadd.f32 %v1832_v31, %v1666_v12 }
 0x39b   : > { %v1682_v16 = vadd.f32 %v1672_v10, %v1562_v20 }
 0x39c   : > { %v1681_v17 = vadd.f32 %v1667_v15, %v1561_v11 }
 0x39d   : > { %v1690_v18 = vmax.f32 %v1682_v16, 0.0 }
 0x39e   : > { %v1689_v19 = vmax.f32 %v1681_v17, 0.0 }
 0x39f   : > { %1698 = vst [vmem:[%s3361_s12 + $0x38] sm:$0xff] %v1690_v18 }
 0x3a0   : > { %1697 = vst [vmem:[%s3361_s12 + $0x30] sm:$0xff] %v1689_v19 }
 0x3a1   : > { %2853 = shalt.err (!%p2850_p4)
}
 0x3a2   : > { %s2854_s13 = scalar_lea.hbm %s3382_s23, 1024  ;;  %s2858_s14 = scalar_lea.hbm %s3435_s7, 2048 }
 0x3a3   : > { %p2855_p9 = scmp.ne.s32.totalorder %s3382_s23, %s2854_s13  ;;  %p2859_p8 = scmp.lt.u32.totalorder %s3382_s23, %s3435_s7 }
 0x3a4   : > { %p2860_p13 = scmp.lt.u32.totalorder %s2858_s14, %s2854_s13  ;;  %p2862_p10 = scmp.lt.u32.totalorder %s2854_s13, %s3382_s23 }
 0x3a5   : > { %p2856_p0 = pnand %p2855_p9, %p3120_p5 }
 0x3a6   : > { %p2861_p6 = por %p2860_p13, %p2859_p8 }
 0x3a7   : > { %p2857_p11 = pneg %p2856_p0 }
 0x3a8   : > { %p2863_p3 = por %p2862_p10, %p2861_p6 }
 0x3aa   : > { %p2864_p7 = pnand %p2863_p3, %p2857_p11 }
 0x3ac   : > { %2867 = shalt.err (!%p2864_p7)
}
 0x3ad   : > { %s2924_s16 = smov 128   ;;  %s2925_s29 = smov 8  }
 0x3ae   : > { %2658 = dma.vmem_to_hbm [thread:$0]  (%p3120_p5), %s3377_s20, 1024, %s3382_s23, %s1700_s11, %s2924_s16, %s2924_s16, %s2925_s29  }
 0x3af PF: > { %s3455_s8 = sld [smem:[#allocation17_spill]]  ;;  %s1728_s28 = sand.u32 1, %s2902_s24  }
 0x3b0   : > { %p3457_p1 = scmp.ge.s32.totalorder %s2914_s27, 2  ;;  %s1729_s30 = scalar_lea.sflag [#allocation6], %s1728_s28 }
 0x3b5   : > { %p3456_p12 = scmp.ne.s32.totalorder %s3455_s8, 0 }
 0x3b7   : > { %p2675_p2 = pnand %p3457_p1, %p3456_p12 }
 0x3b9   : > { %2897 = dma.done.wait (!%p2675_p2), %s1729_s30, 1024  }
 0x3ba   : > { %2899 = vsyncadd (!%p2675_p2), %s1729_s30, 4294966272  ;;  %p22_p4 = scmp.ge.s32.totalorder %s3106_s22, 4   ;;  %s3458_s24 = smov %s2906_s25 }
 0x3bb   : > { %s3459_s25 = smov %s2910_s26  ;;  %s3460_s26 = smov %s3116_s18 }
 0x3bc   : > { %s3461_s27 = smov %s3106_s22  ;;  %24 = sbr.rel (!%p22_p4) target bundleno = 7 (0x7), region = 108 }
 0x3c3   :  { %1734 = vsyncpa [#allocation5], 1 }
 0x3c4   :  { %1736 = vsyncpa [#allocation5 + $0x1], 1 }
 0x3c5   :  { %1737 = vsyncpa [#allocation8], 1 }
 0x3c6   :  { %1738 = vsyncpa [#allocation11], 1 }
 0x3c7   :  { %1739 = vsyncpa [#allocation6], 1 }
 0x3c8   :  { %1741 = vsyncpa [#allocation6 + $0x1], 1 }

</bundles_post_ra>
